<compile_context>
chip_gen: v5e
topology: v5e:2x2
jax: 0.10.0
libtpu: 0.0.40
codegen_flags: <defaults>
</compile_context>

<pallas_src>
import functools
import math

import jax
import jax.numpy as jnp
from jax.experimental import pallas as pl
from jax.experimental.pallas import tpu as pltpu

LRELU_SLOPE = 0.1


def _round_up(x, m):
    return ((x + m - 1) // m) * m


@functools.lru_cache(maxsize=None)
def _vmem_cap_bytes():
    phys = 64 * 2**20                      # conservative default (v7x per-TC physical VMEM)
    try:
        info = pltpu.get_tpu_info()
        v = int(getattr(info, "vmem_capacity_bytes", 0) or 0)
        if v > 0:
            phys = v
    except Exception:
        pass
    # leave headroom below physical; ~48 MiB on v7x, ~96 MiB on v5e/v6e
    return max(32 * 2**20, min(100 * 2**20, (phys * 3) // 4))


def _vmem_limit_bytes(est_bytes):
    return int(min(_vmem_cap_bytes(), max(32 * 2**20, est_bytes + 16 * 2**20)))


def _pick_rows(l_out, inner, halo_rows, target, lane_mod):
    """Choose rows-per-block for the merged (row, inner) spatial axis -> (mc_rows, nt)."""
    if l_out * inner <= target or l_out <= halo_rows + 1:
        return l_out, 1                                   # single block == full dim
    unit = lane_mod // math.gcd(inner, lane_mod)          # rows making MC a lane_mod multiple
    mc_rows = max(unit, (target // (inner * unit)) * unit)
    mc_rows = max(mc_rows, _round_up(max(halo_rows, 1), unit))   # halo must fit one window
    nt = -(-l_out // mc_rows)
    if nt == 1:
        return l_out, 1
    return mc_rows, nt


# --------------------------------------------------------------------------
# Pallas kernels
# --------------------------------------------------------------------------
def _dense_conv_kernel(x_ref, w_ref, b_ref, o_ref, *, K, stride, mc, inner, apply_lrelu):
    # Channels-last path (large Cin): per-tap MXU dots with full-depth contraction.
    # x_ref: (1, s, 1, mc + halo, Cin)   bf16 (merged (row, inner) spatial on sublanes)
    # w_ref: (K, Cin, Cout)              bf16, resident across the grid
    # b_ref: (1, Cout)                   f32
    # o_ref: (1, mc, Cout)               lane-dense (Cout on lanes)
    cout = o_ref.shape[2]
    acc = jnp.zeros((mc, cout), jnp.float32)
    for k in range(K):
        r, off = k % stride, k // stride
        lhs = x_ref[0, r, 0, off * inner:off * inner + mc, :]            # [mc, Cin] bf16
        acc = acc + jnp.dot(lhs, w_ref[k], preferred_element_type=jnp.float32)
    y = acc + b_ref[...]
    if apply_lrelu:
        y = jnp.maximum(y, LRELU_SLOPE * y)
    o_ref[0] = y.astype(o_ref.dtype)


def _tconv_kernel(x_ref, w_ref, b_ref, o_ref, a_scr, *, K, stride, Cg, Gp, mc, inner,
                  apply_lrelu):
    # Transposed path (grouped convs + small-Cin dense convs as groups=1):
    #   spatial on lanes, taps folded into the K*Cg contraction, lane-dense stores.
    # x_ref: (1, Gp, 1, s*Cg, mc + halo)  bf16, rows ordered phase-major r*Cg + cg
    # w_ref: (Gp, Co_g, K*Cg)             bf16, cols ordered k*Cg + cg
    # b_ref: (Gp, Co_g, 1)                f32
    # o_ref: (1, Gp, Co_g, mc)
    # a_scr: (Gp, K*Cg, mc)               bf16 VMEM scratch (per-group im2col tile)
    sCg = stride * Cg
    n_full = K // stride
    rem = K - n_full * stride
    # Merged per-phase-offset assembly: the `stride` taps sharing the same offset `off`
    # land on contiguous scratch rows in exactly the source row order -> one slab copy.
    for off in range(n_full):
        a_scr[:, off * sCg:(off + 1) * sCg, :] = (
            x_ref[0, :, 0, :, off * inner:off * inner + mc])
    if rem:
        a_scr[:, n_full * sCg:n_full * sCg + rem * Cg, :] = (
            x_ref[0, :, 0, 0:rem * Cg, n_full * inner:n_full * inner + mc])
    for p in range(Gp):
        y = jnp.dot(w_ref[p], a_scr[p], preferred_element_type=jnp.float32)  # [Co_g, mc]
        y = y + b_ref[p]
        if apply_lrelu:
            y = jnp.maximum(y, LRELU_SLOPE * y)
        o_ref[0, p] = y.astype(o_ref.dtype)


# --------------------------------------------------------------------------
# Conv wrappers (layout plumbing in plain JAX, conv math in Pallas)
# Both take x as [B, Cin, L, W]: the conv runs along L; W ("inner") rides along and is
# merged into the matmul M dimension (W = period for DiscriminatorP, W = 1 for 1D convs).
# --------------------------------------------------------------------------
@functools.partial(jax.jit, static_argnums=(3, 4, 5, 6))
def _conv_dense(x4, w, b, stride, padding, apply_lrelu, out_dtype):
    """Dense Conv (groups=1, large Cin). x4: [B,Cin,L,W]; w: [Cout,Cin,K]; b: [Cout]."""
    B, Cin, L, W = x4.shape
    Cout, _, K = w.shape
    s = int(stride)
    inner = W
    L_out = (L + 2 * padding - K) // s + 1
    Hr = (K - 1) // s
    HH = Hr * inner
    Cin_p = max(_round_up(Cin, 8), 8)
    Cout_p = max(_round_up(Cout, 8), 8)

    mc_rows, nt = _pick_rows(L_out, inner, Hr, target=512, lane_mod=8)
    MC = mc_rows * inner
    P_rows = max(nt * mc_rows + Hr, -(-(L + 2 * padding) // s))

    # channels-last, zero pad (conv padding + alignment), pad channels, bf16
    xt = jnp.transpose(x4, (0, 2, 3, 1)).astype(jnp.bfloat16)          # [B, L, W, Cin]
    right = s * P_rows - L - padding
    xt = jnp.pad(xt, ((0, 0), (padding, right), (0, 0), (0, Cin_p - Cin)))
    # phase decomposition along rows: xph[b, r, q*W + iw, c] = padded[b, q*s + r, iw, c]
    xph = xt.reshape(B, P_rows, s, inner, Cin_p).transpose(0, 2, 1, 3, 4)
    xph = xph.reshape(B, s, P_rows * inner, Cin_p)
    Pm = nt * MC + HH
    if xph.shape[2] < Pm:
        xph = jnp.pad(xph, ((0, 0), (0, 0), (0, Pm - xph.shape[2]), (0, 0)))
    elif xph.shape[2] > Pm:
        xph = xph[:, :, :Pm, :]
    if nt == 1:
        xwin = xph[:, :, None, :, :]                                   # [B, s, 1, MC+HH, C]
    else:
        main = xph[:, :, :nt * MC, :].reshape(B, s, nt, MC, Cin_p)
        halo = xph[:, :, MC:, :]
        halo = jnp.pad(halo, ((0, 0), (0, 0), (0, nt * MC - halo.shape[2]), (0, 0)))
        halo = halo.reshape(B, s, nt, MC, Cin_p)[:, :, :, :HH, :]
        xwin = jnp.concatenate([main, halo], axis=3)                   # [B, s, nt, MC+HH, C]

    wd = jnp.transpose(w, (2, 1, 0)).astype(jnp.bfloat16)              # [K, Cin, Cout]
    wd = jnp.pad(wd, ((0, 0), (0, Cin_p - Cin), (0, Cout_p - Cout)))
    bd = jnp.pad(b.astype(jnp.float32), ((0, Cout_p - Cout),)).reshape(1, Cout_p)

    est = (2 * (s * (MC + HH) * Cin_p * 2)      # activation window (double buffered)
           + 2 * (K * Cin_p * Cout_p * 2)       # resident weights (2 buffers allocated)
           + 2 * (MC * Cout_p * 2)              # output block
           + 2 * (MC * Cout_p * 4))             # f32 accumulator temporaries

    kernel = functools.partial(_dense_conv_kernel, K=K, stride=s, mc=MC, inner=inner,
                               apply_lrelu=apply_lrelu)
    out = pl.pallas_call(
        kernel,
        out_shape=jax.ShapeDtypeStruct((B, nt * MC, Cout_p), out_dtype),
        grid=(B, nt),
        in_specs=[
            pl.BlockSpec((1, s, 1, MC + HH, Cin_p), lambda bi, ti: (bi, 0, ti, 0, 0)),
            pl.BlockSpec((K, Cin_p, Cout_p), lambda bi, ti: (0, 0, 0)),
            pl.BlockSpec((1, Cout_p), lambda bi, ti: (0, 0)),
        ],
        out_specs=pl.BlockSpec((1, MC, Cout_p), lambda bi, ti: (bi, ti, 0)),
        compiler_params=pltpu.CompilerParams(
            dimension_semantics=("parallel", "parallel"),
            vmem_limit_bytes=_vmem_limit_bytes(est),
        ),
    )(xwin, wd, bd)

    y = out[:, :L_out * inner, :Cout].reshape(B, L_out, inner, Cout)
    return jnp.transpose(y, (0, 3, 1, 2))                              # [B, Cout, L_out, W]


@functools.partial(jax.jit, static_argnums=(3, 4, 5, 6, 7))
def _conv_transposed(x4, w, b, stride, padding, groups, apply_lrelu, out_dtype):
    """Grouped / small-Cin conv, transposed layout. x4: [B,Cin,L,W]; w: [Cout,Cin//G,K]."""
    B, Cin, L, W = x4.shape
    Cout, Cg, K = w.shape
    G = int(groups)
    Co_g = Cout // G
    s = int(stride)
    inner = W
    L_out = (L + 2 * padding - K) // s + 1
    Hr = (K - 1) // s
    HH = Hr * inner
    sCg = s * Cg

    mc_rows, nt = _pick_rows(L_out, inner, Hr, target=512, lane_mod=128)
    MC = mc_rows * inner
    P_rows = max(nt * mc_rows + Hr, -(-(L + 2 * padding) // s))
    Gp = next(d for d in (32, 16, 8, 4, 2, 1) if G % d == 0)            # groups per grid step

    xg = x4.reshape(B, G, Cg, L, W).astype(jnp.bfloat16)
    right = s * P_rows - L - padding
    xg = jnp.pad(xg, ((0, 0), (0, 0), (0, 0), (padding, right), (0, 0)))
    # phases along rows: xph[b, g, r*Cg + cg, q*W + iw] = padded[b, g, cg, q*s + r, iw]
    xph = xg.reshape(B, G, Cg, P_rows, s, W).transpose(0, 1, 4, 2, 3, 5)
    xph = xph.reshape(B, G, sCg, P_rows * inner)
    Pm = nt * MC + HH
    if xph.shape[-1] < Pm:
        xph = jnp.pad(xph, ((0, 0), (0, 0), (0, 0), (0, Pm - xph.shape[-1])))
    elif xph.shape[-1] > Pm:
        xph = xph[..., :Pm]
    if nt == 1:
        xwin = xph[:, :, None, :, :]                                    # [B, G, 1, sCg, MC+HH]
    else:
        main = xph[..., :nt * MC].reshape(B, G, sCg, nt, MC)
        halo = xph[..., MC:]
        halo = jnp.pad(halo, ((0, 0), (0, 0), (0, 0), (0, nt * MC - halo.shape[-1])))
        halo = halo.reshape(B, G, sCg, nt, MC)[..., :HH]
        xwin = jnp.concatenate([main, halo], axis=-1)
        xwin = jnp.transpose(xwin, (0, 1, 3, 2, 4))                     # [B, G, nt, sCg, MC+HH]

    # weights flattened tap-major / channel-minor (matches scratch row order k*Cg + cg)
    wg = w.reshape(G, Co_g, Cg, K).transpose(0, 1, 3, 2).reshape(G, Co_g, K * Cg)
    wg = wg.astype(jnp.bfloat16)
    bg = b.astype(jnp.float32).reshape(G, Co_g, 1)

    est = (2 * (Gp * sCg * (MC + HH) * 2)
           + 2 * (Gp * Co_g * K * Cg * 2)
           + 2 * (Gp * Co_g * MC * 2)
           + Gp * K * Cg * MC * 2               # scratch tile
           + Gp * Co_g * MC * 4)                # f32 temporaries

    kernel = functools.partial(_tconv_kernel, K=K, stride=s, Cg=Cg, Gp=Gp, mc=MC,
                               inner=inner, apply_lrelu=apply_lrelu)
    out = pl.pallas_call(
        kernel,
        out_shape=jax.ShapeDtypeStruct((B, G, Co_g, nt * MC), out_dtype),
        grid=(B, G // Gp, nt),
        in_specs=[
            pl.BlockSpec((1, Gp, 1, sCg, MC + HH), lambda bi, gi, ti: (bi, gi, ti, 0, 0)),
            pl.BlockSpec((Gp, Co_g, K * Cg), lambda bi, gi, ti: (gi, 0, 0)),
            pl.BlockSpec((Gp, Co_g, 1), lambda bi, gi, ti: (gi, 0, 0)),
        ],
        out_specs=pl.BlockSpec((1, Gp, Co_g, MC), lambda bi, gi, ti: (bi, gi, 0, ti)),
        scratch_shapes=[pltpu.VMEM((Gp, K * Cg, MC), jnp.bfloat16)],
        compiler_params=pltpu.CompilerParams(
            dimension_semantics=("parallel", "parallel", "parallel"),
            vmem_limit_bytes=_vmem_limit_bytes(est),
        ),
    )(xwin, wg, bg)

    y = out[:, :, :, :L_out * inner].reshape(B, Cout, L_out, inner)
    return y                                                            # [B, Cout, L_out, W]


def _conv(x4, w, b, stride, padding, groups, apply_lrelu, out_dtype=jnp.bfloat16):
    """Route: grouped convs and small-Cin dense convs -> transposed path (lane-dense out,
    folded contraction); large-Cin dense convs -> channels-last per-tap MXU dots."""
    cin = x4.shape[1]
    if groups > 1 or cin <= 32:
        return _conv_transposed(x4, w, b, stride, padding, groups, apply_lrelu, out_dtype)
    return _conv_dense(x4, w, b, stride, padding, apply_lrelu, out_dtype)


# --------------------------------------------------------------------------
# Parameter initialization (deterministic, synthetic)
# --------------------------------------------------------------------------
def _init_conv_params(key, cout, cin_g, k):
    kw, kb = jax.random.split(key)
    w = 0.05 * jax.random.normal(kw, (cout, cin_g, k), jnp.float32)
    b = 0.01 * jax.random.normal(kb, (cout,), jnp.float32)
    return w, b


def init_disc_s(key):
    # (cout, cin_per_group, kernel, stride, pad, groups) — matches models_dml.DiscriminatorS
    specs = [
        (16, 1, 15, 1, 7, 1),
        (64, 4, 41, 4, 20, 4),
        (256, 4, 41, 4, 20, 16),
        (1024, 4, 41, 4, 20, 64),
        (1024, 4, 41, 4, 20, 256),
        (1024, 1024, 5, 1, 2, 1),
    ]
    keys = jax.random.split(key, len(specs) + 1)
    convs = []
    for kk, (cout, cing, ks, st, pad, g) in zip(keys[:-1], specs):
        w, b = _init_conv_params(kk, cout, cing, ks)
        convs.append((w, b, st, pad, g))
    wp, bp = _init_conv_params(keys[-1], 1, 1024, 3)
    return {"convs": convs, "post": (wp, bp)}


def init_disc_p(key, period, kernel_size=5, stride=3):
    pad = (kernel_size - 1) // 2
    chans = [(32, 1), (128, 32), (512, 128), (1024, 512), (1024, 1024)]
    strides = [stride, stride, stride, stride, 1]
    keys = jax.random.split(key, 6)
    convs = []
    for kk, (cout, cin), st in zip(keys[:5], chans, strides):
        w, b = _init_conv_params(kk, cout, cin, kernel_size)
        convs.append((w, b, st, pad))
    wp, bp = _init_conv_params(keys[5], 1, 1024, 3)
    return {"period": period, "convs": convs, "post": (wp, bp)}


def init_mpd(key):
    periods = [2, 3, 5, 7, 11, 17]
    keys = jax.random.split(key, 1 + len(periods))
    return {
        "s": init_disc_s(keys[0]),
        "ps": [init_disc_p(k, p) for k, p in zip(keys[1:], periods)],
    }


# --------------------------------------------------------------------------
# Forward passes
# --------------------------------------------------------------------------
def disc_s_forward(params, x):
    # x: [B, 1, T]
    fmap = []
    h = x[..., None]                                   # [B, C, L, 1]
    for (w, b, st, pad, g) in params["convs"]:
        h = _conv(h, w, b, st, pad, g, True)
        fmap.append(h[..., 0])                         # [B, C, L]
    wp, bp = params["post"]
    h = _conv(h, wp, bp, 1, 1, 1, False, jnp.float32)
    fmap.append(h[..., 0])
    return h[..., 0].reshape(h.shape[0], -1), fmap


def disc_p_forward(params, x):
    period = params["period"]
    b_, c, t = x.shape
    if t % period != 0:
        n_pad = period - t % period
        mode = "reflect" if n_pad < t else "edge"      # guard for very short inputs
        x = jnp.pad(x, ((0, 0), (0, 0), (0, n_pad)), mode=mode)
        t = t + n_pad
    h = x.reshape(b_, c, t // period, period)          # [B, C, H, W]
    fmap = []
    for (w, bias, st, pad) in params["convs"]:
        h = _conv(h, w, bias, st, pad, 1, True)
        fmap.append(h)
    wp, bp = params["post"]
    h = _conv(h, wp, bp, 1, 1, 1, False, jnp.float32)
    fmap.append(h)
    return h.reshape(h.shape[0], -1), fmap


def mpd_forward(params, y, y_hat):
    nb = y.shape[0]
    # run y and y_hat in one pass per discriminator: weights streamed once per layer
    x = jnp.concatenate([y, y_hat], axis=0)
    y_d_rs, y_d_gs, fmap_rs, fmap_gs = [], [], [], []
    discs = [(disc_s_forward, params["s"])] + [(disc_p_forward, p) for p in params["ps"]]
    for fwd, prm in discs:
        logits, fmaps = fwd(prm, x)
        y_d_rs.append(logits[:nb])
        y_d_gs.append(logits[nb:])
        fmap_rs.append([f[:nb] for f in fmaps])
        fmap_gs.append([f[nb:] for f in fmaps])
    return y_d_rs, y_d_gs, fmap_rs, fmap_gs


# --------------------------------------------------------------------------
# Self-check against XLA convolution (bf16 inputs, f32 accumulation)
# --------------------------------------------------------------------------
def _reference_conv(x4, w, b, stride, padding, groups, apply_lrelu):
    xf = x4.astype(jnp.bfloat16).astype(jnp.float32)
    wf = w.astype(jnp.bfloat16).astype(jnp.float32)[..., None]          # [Cout, Cin_g, K, 1]
    y = jax.lax.conv_general_dilated(
        xf, wf, window_strides=(stride, 1), padding=[(padding, padding), (0, 0)],
        dimension_numbers=("NCHW", "OIHW", "NCHW"), feature_group_count=groups,
        precision=jax.lax.Precision.HIGHEST)
    y = y + b.astype(jnp.float32)[None, :, None, None]
    if apply_lrelu:
        y = jnp.maximum(y, LRELU_SLOPE * y)
    return y


def _self_check(key):
    ks = jax.random.split(key, 10)
    tol = dict(rtol=6e-2, atol=6e-2)

    # dense (channels-last) path: nt > 1, inner = 1
    x = jax.random.normal(ks[0], (2, 128, 700, 1), jnp.float32)
    w = 0.1 * jax.random.normal(ks[1], (32, 128, 5), jnp.float32)
    b = 0.01 * jax.random.normal(ks[2], (32,), jnp.float32)
    got = _conv_dense(x, w, b, 1, 2, True, jnp.bfloat16).astype(jnp.float32)
    ref = _reference_conv(x, w, b, 1, 2, 1, True)
    assert got.shape == ref.shape and bool(jnp.allclose(got, ref, **tol)), "dense nt>1"

    # dense path: period folded into M (inner > 1), stride 3
    x = jax.random.normal(ks[3], (2, 128, 23, 3), jnp.float32)
    w = 0.1 * jax.random.normal(ks[4], (64, 128, 5), jnp.float32)
    b = 0.01 * jax.random.normal(ks[5], (64,), jnp.float32)
    got = _conv_dense(x, w, b, 3, 2, True, jnp.bfloat16).astype(jnp.float32)
    ref = _reference_conv(x, w, b, 3, 2, 1, True)
    assert got.shape == ref.shape and bool(jnp.allclose(got, ref, **tol)), "dense inner>1"

    # transposed path: grouped conv (DiscriminatorS style)
    x = jax.random.normal(ks[6], (2, 16, 33, 1), jnp.float32)
    w = 0.1 * jax.random.normal(ks[7], (64, 4, 41), jnp.float32)
    b = 0.01 * jax.random.normal(ks[8], (64,), jnp.float32)
    got = _conv_transposed(x, w, b, 4, 20, 4, True, jnp.bfloat16).astype(jnp.float32)
    ref = _reference_conv(x, w, b, 4, 20, 4, True)
    assert got.shape == ref.shape and bool(jnp.allclose(got, ref, **tol)), "grouped"

    # transposed path: small-Cin dense (groups=1), inner > 1, nt > 1 (halo windows)
    x = jax.random.normal(ks[9], (2, 1, 300, 2), jnp.float32)
    w = 0.1 * jax.random.normal(ks[4], (32, 1, 15), jnp.float32)
    b = 0.01 * jax.random.normal(ks[5], (32,), jnp.float32)
    got = _conv_transposed(x, w, b, 1, 7, 1, True, jnp.bfloat16).astype(jnp.float32)
    ref = _reference_conv(x, w, b, 1, 7, 1, True)
    assert got.shape == ref.shape and bool(jnp.allclose(got, ref, **tol)), "small-Cin transposed"


# --------------------------------------------------------------------------
if __name__ == "__main__":
    key = jax.random.PRNGKey(0)
    kp, ky, kg, kc = jax.random.split(key, 4)

    _self_check(kc)

    params = init_mpd(kp)

    B, C, T = 2, 1, 64
    y = jax.random.normal(ky, (B, C, T), jnp.float32)
    y_hat = jax.random.normal(kg, (B, C, T), jnp.float32)

    out = mpd_forward(params, y, y_hat)
    out = jax.block_until_ready(out)

    y_d_rs, y_d_gs, fmap_rs, fmap_gs = out
    assert len(y_d_rs) == 7 and len(y_d_gs) == 7 and len(fmap_rs) == 7
    assert len(fmap_rs[0]) == 7 and len(fmap_gs[0]) == 7   # DiscriminatorS: 6 convs + post
    assert all(len(f) == 6 for f in fmap_rs[1:])           # DiscriminatorP: 5 convs + post
    assert all(bool(jnp.all(jnp.isfinite(v.astype(jnp.float32)))) for v in y_d_rs + y_d_gs)
    print("KERNEL_OK")
</pallas_src>

<mosaic_0001>
module attributes {stable_mosaic.version = 11 : i64} {
  func.func @_dense_conv_kernel(%arg0: i32, %arg1: i32, %arg2: memref<1x1x1x516x128xbf16, #tpu.memory_space<vmem>>, %arg3: memref<5x128x32xbf16, #tpu.memory_space<vmem>>, %arg4: memref<1x32xf32, #tpu.memory_space<vmem>>, %arg5: memref<1x512x32xbf16, #tpu.memory_space<vmem>>) attributes {dimension_semantics = [#tpu.dimension_semantics<parallel>, #tpu.dimension_semantics<parallel>], iteration_bounds = array<i64: 2, 2>, scalar_prefetch = 0 : i64, scratch_operands = 0 : i64, tpu.core_type = #tpu.core_type<tc>, window_params = [{transform_indices = @transform_0, window_bounds = array<i64: 1, 1, 1, 516, 128>}, {pipeline_mode = #tpu.pipeline_mode<synchronous>, transform_indices = @transform_1, window_bounds = array<i64: 5, 128, 32>}, {pipeline_mode = #tpu.pipeline_mode<synchronous>, transform_indices = @transform_2, window_bounds = array<i64: 1, 32>}, {transform_indices = @transform_3, window_bounds = array<i64: 1, 512, 32>}]} {
    %cst = arith.constant 0.000000e+00 : f32
    %0 = vector.broadcast %cst : f32 to vector<512x32xf32>
    %c0 = arith.constant 0 : index
    %c0_0 = arith.constant 0 : index
    %c0_1 = arith.constant 0 : index
    %c0_2 = arith.constant 0 : index
    %c0_3 = arith.constant 0 : index
    %1 = vector.load %arg2[%c0, %c0_0, %c0_1, %c0_2, %c0_3] : memref<1x1x1x516x128xbf16, #tpu.memory_space<vmem>>, vector<1x1x1x512x128xbf16>
    %2 = vector.shape_cast %1 : vector<1x1x1x512x128xbf16> to vector<512x128xbf16>
    %c0_4 = arith.constant 0 : index
    %c0_5 = arith.constant 0 : index
    %c0_6 = arith.constant 0 : index
    %3 = vector.load %arg3[%c0_4, %c0_5, %c0_6] : memref<5x128x32xbf16, #tpu.memory_space<vmem>>, vector<1x128x32xbf16>
    %4 = vector.shape_cast %3 : vector<1x128x32xbf16> to vector<128x32xbf16>
    %cst_7 = arith.constant dense<0.000000e+00> : vector<512x32xf32>
    %5 = tpu.matmul %2, %4, %cst_7 {dimension_numbers = #tpu.dot_dimension_numbers<[1], [0], [0], [1], [0, 0, 1, 1], [], []>} : vector<512x128xbf16>, vector<128x32xbf16>, vector<512x32xf32> -> vector<512x32xf32>
    %6 = arith.addf %0, %5 : vector<512x32xf32>
    %c0_8 = arith.constant 0 : index
    %c0_9 = arith.constant 0 : index
    %c0_10 = arith.constant 0 : index
    %c1 = arith.constant 1 : index
    %c0_11 = arith.constant 0 : index
    %7 = vector.load %arg2[%c0_8, %c0_9, %c0_10, %c1, %c0_11] : memref<1x1x1x516x128xbf16, #tpu.memory_space<vmem>>, vector<1x1x1x512x128xbf16>
    %8 = vector.shape_cast %7 : vector<1x1x1x512x128xbf16> to vector<512x128xbf16>
    %c1_12 = arith.constant 1 : index
    %c0_13 = arith.constant 0 : index
    %c0_14 = arith.constant 0 : index
    %9 = vector.load %arg3[%c1_12, %c0_13, %c0_14] : memref<5x128x32xbf16, #tpu.memory_space<vmem>>, vector<1x128x32xbf16>
    %10 = vector.shape_cast %9 : vector<1x128x32xbf16> to vector<128x32xbf16>
    %cst_15 = arith.constant dense<0.000000e+00> : vector<512x32xf32>
    %11 = tpu.matmul %8, %10, %cst_15 {dimension_numbers = #tpu.dot_dimension_numbers<[1], [0], [0], [1], [0, 0, 1, 1], [], []>} : vector<512x128xbf16>, vector<128x32xbf16>, vector<512x32xf32> -> vector<512x32xf32>
    %12 = arith.addf %6, %11 : vector<512x32xf32>
    %c0_16 = arith.constant 0 : index
    %c0_17 = arith.constant 0 : index
    %c0_18 = arith.constant 0 : index
    %c2 = arith.constant 2 : index
    %c0_19 = arith.constant 0 : index
    %13 = vector.load %arg2[%c0_16, %c0_17, %c0_18, %c2, %c0_19] : memref<1x1x1x516x128xbf16, #tpu.memory_space<vmem>>, vector<1x1x1x512x128xbf16>
    %14 = vector.shape_cast %13 : vector<1x1x1x512x128xbf16> to vector<512x128xbf16>
    %c2_20 = arith.constant 2 : index
    %c0_21 = arith.constant 0 : index
    %c0_22 = arith.constant 0 : index
    %15 = vector.load %arg3[%c2_20, %c0_21, %c0_22] : memref<5x128x32xbf16, #tpu.memory_space<vmem>>, vector<1x128x32xbf16>
    %16 = vector.shape_cast %15 : vector<1x128x32xbf16> to vector<128x32xbf16>
    %cst_23 = arith.constant dense<0.000000e+00> : vector<512x32xf32>
    %17 = tpu.matmul %14, %16, %cst_23 {dimension_numbers = #tpu.dot_dimension_numbers<[1], [0], [0], [1], [0, 0, 1, 1], [], []>} : vector<512x128xbf16>, vector<128x32xbf16>, vector<512x32xf32> -> vector<512x32xf32>
    %18 = arith.addf %12, %17 : vector<512x32xf32>
    %c0_24 = arith.constant 0 : index
    %c0_25 = arith.constant 0 : index
    %c0_26 = arith.constant 0 : index
    %c3 = arith.constant 3 : index
    %c0_27 = arith.constant 0 : index
    %19 = vector.load %arg2[%c0_24, %c0_25, %c0_26, %c3, %c0_27] : memref<1x1x1x516x128xbf16, #tpu.memory_space<vmem>>, vector<1x1x1x512x128xbf16>
    %20 = vector.shape_cast %19 : vector<1x1x1x512x128xbf16> to vector<512x128xbf16>
    %c3_28 = arith.constant 3 : index
    %c0_29 = arith.constant 0 : index
    %c0_30 = arith.constant 0 : index
    %21 = vector.load %arg3[%c3_28, %c0_29, %c0_30] : memref<5x128x32xbf16, #tpu.memory_space<vmem>>, vector<1x128x32xbf16>
    %22 = vector.shape_cast %21 : vector<1x128x32xbf16> to vector<128x32xbf16>
    %cst_31 = arith.constant dense<0.000000e+00> : vector<512x32xf32>
    %23 = tpu.matmul %20, %22, %cst_31 {dimension_numbers = #tpu.dot_dimension_numbers<[1], [0], [0], [1], [0, 0, 1, 1], [], []>} : vector<512x128xbf16>, vector<128x32xbf16>, vector<512x32xf32> -> vector<512x32xf32>
    %24 = arith.addf %18, %23 : vector<512x32xf32>
    %c0_32 = arith.constant 0 : index
    %c0_33 = arith.constant 0 : index
    %c0_34 = arith.constant 0 : index
    %c4 = arith.constant 4 : index
    %c0_35 = arith.constant 0 : index
    %25 = vector.load %arg2[%c0_32, %c0_33, %c0_34, %c4, %c0_35] : memref<1x1x1x516x128xbf16, #tpu.memory_space<vmem>>, vector<1x1x1x512x128xbf16>
    %26 = vector.shape_cast %25 : vector<1x1x1x512x128xbf16> to vector<512x128xbf16>
    %c4_36 = arith.constant 4 : index
    %c0_37 = arith.constant 0 : index
    %c0_38 = arith.constant 0 : index
    %27 = vector.load %arg3[%c4_36, %c0_37, %c0_38] : memref<5x128x32xbf16, #tpu.memory_space<vmem>>, vector<1x128x32xbf16>
    %28 = vector.shape_cast %27 : vector<1x128x32xbf16> to vector<128x32xbf16>
    %cst_39 = arith.constant dense<0.000000e+00> : vector<512x32xf32>
    %29 = tpu.matmul %26, %28, %cst_39 {dimension_numbers = #tpu.dot_dimension_numbers<[1], [0], [0], [1], [0, 0, 1, 1], [], []>} : vector<512x128xbf16>, vector<128x32xbf16>, vector<512x32xf32> -> vector<512x32xf32>
    %30 = arith.addf %24, %29 : vector<512x32xf32>
    %c0_40 = arith.constant 0 : index
    %c0_41 = arith.constant 0 : index
    %31 = vector.load %arg4[%c0_40, %c0_41] : memref<1x32xf32, #tpu.memory_space<vmem>>, vector<1x32xf32>
    %32 = vector.broadcast %31 : vector<1x32xf32> to vector<512x32xf32>
    %33 = arith.addf %30, %32 : vector<512x32xf32>
    %cst_42 = arith.constant 1.000000e-01 : f32
    %34 = vector.broadcast %cst_42 : f32 to vector<512x32xf32>
    %35 = arith.mulf %34, %33 : vector<512x32xf32>
    %36 = arith.maximumf %33, %35 : vector<512x32xf32>
    %37 = arith.truncf %36 : vector<512x32xf32> to vector<512x32xbf16>
    %c0_43 = arith.constant 0 : index
    %c0_44 = arith.constant 0 : index
    %c0_45 = arith.constant 0 : index
    %38 = vector.load %arg5[%c0_43, %c0_44, %c0_45] : memref<1x512x32xbf16, #tpu.memory_space<vmem>>, vector<1x512x32xbf16>
    %39 = vector.shape_cast %38 : vector<1x512x32xbf16> to vector<512x32xbf16>
    %40 = vector.shape_cast %37 : vector<512x32xbf16> to vector<1x512x32xbf16>
    tpu.vector_store %arg5[%c0_43, %c0_44, %c0_45], %40 {strides = array<i32>} : memref<1x512x32xbf16, #tpu.memory_space<vmem>>, vector<1x512x32xbf16>,
    return
  }
  func.func @transform_0(%arg0: i32, %arg1: i32) -> (i32, i32, i32, i32, i32) {
    %c0_i32 = arith.constant 0 : i32
    %c0_i32_0 = arith.constant 0 : i32
    %c0_i32_1 = arith.constant 0 : i32
    %c0_i32_2 = arith.constant 0 : i32
    return %arg0, %c0_i32, %arg1, %c0_i32_0, %c0_i32_1 : i32, i32, i32, i32, i32
  }
  func.func @transform_1(%arg0: i32, %arg1: i32) -> (i32, i32, i32) {
    %c0_i32 = arith.constant 0 : i32
    %c0_i32_0 = arith.constant 0 : i32
    %c0_i32_1 = arith.constant 0 : i32
    %c0_i32_2 = arith.constant 0 : i32
    return %c0_i32, %c0_i32_0, %c0_i32_1 : i32, i32, i32
  }
  func.func @transform_2(%arg0: i32, %arg1: i32) -> (i32, i32) {
    %c0_i32 = arith.constant 0 : i32
    %c0_i32_0 = arith.constant 0 : i32
    %c0_i32_1 = arith.constant 0 : i32
    return %c0_i32, %c0_i32_0 : i32, i32
  }
  func.func @transform_3(%arg0: i32, %arg1: i32) -> (i32, i32, i32) {
    %c0_i32 = arith.constant 0 : i32
    %c0_i32_0 = arith.constant 0 : i32
    return %arg0, %arg1, %c0_i32 : i32, i32, i32
  }
}

</mosaic_0001>

<bundles_post_ra>
// kernel: _conv_dense.1
= control target key start
LH: loop header
LB: loop body
LE: loop exit
PB: predicated region body
PF: predicated region fallthrough
CT: control target
= control target key end

     0   :  { %s3504_s12 = smov 0   ;;  %s3506_s13 = smov 0   ;;  %s4706_s0 = inlined_call_operand.vmem [shape: bf16[2,1,2,516,128], index: 0, kind: input, shape index: {}]   ;;  %s4707_s1 = inlined_call_operand.vmem [shape: bf16[5,128,32], index: 1, kind: input, shape index: {}]   ;;  %s4708_s2 = inlined_call_operand.vmem [shape: f32[1,32], index: 2, kind: input, shape index: {}]   ;;  %s4709_s3 = inlined_call_operand.vmem [shape: bf16[2,1024,32], index: 3, kind: output, shape index: {}]  }
   0x1   :  { %s3508_s14 = smov 0   ;;  %s3510_s15 = smov 0  }
   0x2   :  { %s3512_s16 = smov 0  }
   0x3 LB: > { %s22_s17 = sadd.s32 1, %s3474_s14  ;;  %s25_s18 = sadd.s32 1, %s3478_s15  ;;  %s3482_s16 = sphi %s3512_s16, %s13_s16   ;;  %s3478_s15 = sphi %s3510_s15, %s4930_s15   ;;  %s3474_s14 = sphi %s3508_s14, %s4929_s14   ;;  %s3470_s13 = sphi %s3506_s13, %s4928_s13   ;;  %s3466_s12 = sphi %s3504_s12, %s4927_s12  }
   0x4   : > { %p23_p0 = scmp.ge.s32.totalorder %s22_s17, 2  ;;  %p2926_p1 = scmp.ge.s32.totalorder %s3482_s16, 1 }
   0x5   : > { %p157_p2 = scmp.lt.s32.totalorder %s3482_s16, 5 }
   0x6   : > { %s4932_s17 = smov (%p23_p0, %s22_s17), 0  ;;  %s4934_s18 = smov (!%p23_p0, %s25_s18), %s3478_s15 }
   0x7   : > { %p158_p3 = pnand %p2926_p1, %p157_p2  ;;  %p27_p4 = scmp.ge.s32.totalorder %s4934_s18, 2 }
   0x9   : > { %s4936_s18 = smov (%p27_p4, %s4934_s18), 0  ;;  %161 = sbr.rel (%p158_p3) target bundleno = 825 (0x339), region = 32 }
   0xe   : > { %v3327_v0 = vld [vmem:[%s4707_s1 + $0x78] sm:$0xff]  ;;  %p189_p5 = scmp.lt.s32.totalorder %s3470_s13, 1  ;;  %p191_p6 = scmp.lt.s32.totalorder %s3466_s12, 1  ;;  %v3326_v1 = vld [vmem:[%s4707_s1 + $0x70] sm:$0xff]  ;;  %v3325_v2 = vld [vmem:[%s4707_s1 + $0x68] sm:$0xff]  ;;  %vm1249_vm1 = vcmask 1046528  }
   0xf   : > { %3356 = vmatpush.bf16.msra.mxu1 %v3327_v0  ;;  %3357 = vmatpush.bf16.msra.mxu2 %v3327_v0  ;;  %v3324_v3 = vld [vmem:[%s4707_s1 + $0x60] sm:$0xff]  ;;  %v3323_v4 = vld [vmem:[%s4707_s1 + $0x58] sm:$0xff]  ;;  %v3322_v11 = vld [vmem:[%s4707_s1 + $0x50] sm:$0xff]  ;;  %vm469_vm0 = vsmask.f32 7424  ;;  %vm2125_vm3 = vcmask 1045504  }
  0x10   : > { %s4938_s13 = smov (!%p189_p5, %s3470_s13), 1  ;;  %3358 = vmatpush.bf16.msra.mxu3 %v3327_v0  ;;  %810 = vmatpush.bf16.msra.mxu0 %v3327_v0  ;;  %v3321_v22 = vld [vmem:[%s4707_s1 + $0x48] sm:$0xff]  ;;  %v3320_v31 = vld [vmem:[%s4707_s1 + $0x40] sm:$0xff]  ;;  %v3335_v40 = vld [vmem:[%s4707_s1 + $0xb8] sm:$0xff]  ;;  %vm1649_vm2 = vsmask.f32 6400 }
  0x11   : > { %s192_s23 = scalar_select %p191_p6, %s3466_s12, 1  ;;  %v3343_v41 = vld [vmem:[%s4707_s1 + $0xf8] sm:$0xff]  ;;  %v3334_v48 = vld [vmem:[%s4707_s1 + $0xb0] sm:$0xff]  ;;  %v3333_v56 = vld [vmem:[%s4707_s1 + $0xa8] sm:$0xff]  ;;  %vm2764_vm4 = vcmask 257024  }
  0x12   : > { %s3381_s24 = smul.u32 130, %s4938_s13  ;;  %v3319_v46 = vld [vmem:[%s4707_s1 + $0x38] sm:$0xff]  ;;  %v3342_v49 = vld [vmem:[%s4707_s1 + $0xf0] sm:$0xff]  ;;  %v3341_v57 = vld [vmem:[%s4707_s1 + $0xe8] sm:$0xff]  ;;  %s2928_s30 = sshll.u32 %s3466_s12, 6 }
  0x13   : > { %s3380_s25 = smul.u32 65, %s192_s23  ;;  %3359 = vmatpush.bf16.msra.mxu1 %v3326_v1  ;;  %3360 = vmatpush.bf16.msra.mxu2 %v3326_v1  ;;  %v3351_v47 = vld [vmem:[%s4707_s1 + $0x138] sm:$0xff]  ;;  %v3318_v54 = vld [vmem:[%s4707_s1 + $0x30] sm:$0xff]  ;;  %p201_p7 = scmp.lt.s32.totalorder %s2928_s30, 127 }
  0x14   : > { %3361 = vmatpush.bf16.msra.mxu3 %v3326_v1  ;;  %811 = vmatpush.bf16.msra.mxu0 %v3326_v1  ;;  %v3350_v55 = vld [vmem:[%s4707_s1 + $0x130] sm:$0xff]  ;;  %s2929_s4 = sshll.u32 %s4938_s13, 7 }
  0x15   : > { %s195_s28 = sadd.s32 %s3381_s24, %s3380_s25  ;;  %s4940_s30 = smov (!%p201_p7, %s2928_s30), 127 }
  0x16   : > { %s2927_s29 = sshll.u32 %s195_s28, 2  ;;  %s204_s12 = sadd.s32 %s2929_s4, %s4940_s30 }
  0x17   : > { %3362 = vmatpush.bf16.msra.mxu1 %v3325_v2  ;;  %3363 = vmatpush.bf16.msra.mxu2 %v3325_v2  ;;  %s3556_s7 = scalar_lea.vmem %s4706_s0, %s2927_s29  ;;  %s2930_s13 = sshll.u32 %s204_s12, 2 }
  0x18   : > { %3364 = vmatpush.bf16.msra.mxu3 %v3325_v2  ;;  %812 = vmatpush.bf16.msra.mxu0 %v3325_v2  ;;  %v3562_v5 = vld [vmem:[%s3556_s7 + $0x40] sm:$0xff]  ;;  %v3574_v9 = vld [vmem:[%s3556_s7 + $0x48] sm:$0xff]  ;;  %v3658_v50 = vld [vmem:[%s3556_s7 + $0x50] sm:$0xff]  ;;  %s4241_s10 = scalar_lea.vmem %s4709_s3, %s2930_s13 }
  0x19   : > { %v3565_v6 = vld [vmem:[%s3556_s7 + $0x80] sm:$0xff]  ;;  %v3577_v10 = vld [vmem:[%s3556_s7 + $0x88] sm:$0xff]  ;;  %v4747_v12 = vshll.u32 %v3562_v5, 16  ;;  %v4748_v18 = vshrl.u32 %v3562_v5, 16  ;;  %v4745_v19 = vshll.u32 %v3574_v9, 16  ;;  %v3661_v51 = vld [vmem:[%s3556_s7 + $0x90] sm:$0xff] }
  0x1a   : > { %v3568_v7 = vld [vmem:[%s3556_s7 + $0xc0] sm:$0xff]  ;;  %v4726_v13 = vshll.u32 %v3565_v6, 16  ;;  %v3585_v14 = vld [vmem:[%s3556_s7 + $0xc8] sm:$0xff]  ;;  %v4731_v20 = vshrl.u32 %v3565_v6, 16  ;;  %v4724_v21 = vshll.u32 %v3577_v10, 16  ;;  %v3664_v52 = vld [vmem:[%s3556_s7 + $0xd0] sm:$0xff] }
  0x1b   : > { %3365 = vmatpush.bf16.msra.mxu1 %v3324_v3  ;;  %3366 = vmatpush.bf16.msra.mxu2 %v3324_v3  ;;  %4781 = vst [vmem:[#allocation2_spill] sm:$0xff] %v3568_v7  ;;  %v3571_v8 = vld [vmem:[%s3556_s7] sm:$0xff]   ;;  %v4715_v15 = vshll.u32 %v3568_v7, 16  ;;  %v3589_v16 = vld [vmem:[%s3556_s7 + $0x8] sm:$0xff]  ;;  %v3601_v23 = vrot.slane %v4747_v12, 1  ;;  %v4716_v25 = vshrl.u32 %v3568_v7, 16 }
  0x1c   : > { %3367 = vmatpush.bf16.msra.mxu3 %v3324_v3  ;;  %813 = vmatpush.bf16.msra.mxu0 %v3324_v3  ;;  %4782 = vst [vmem:[#allocation3_spill] sm:$0xff] %v3585_v14  ;;  %v473_v17 = vshll.u32 %v3571_v8, 16  ;;  %v3605_v24 = vrot.slane %v4726_v13, 1  ;;  %v4713_v26 = vshll.u32 %v3585_v14, 16  ;;  %v471_v28 = vshrl.u32 %v3571_v8, 16  ;;  %v3667_v53 = vld [vmem:[%s3556_s7 + $0x10] sm:$0xff] }
  0x1d   : > { %v3611_v27 = vrot.slane %v4715_v15, 1  ;;  %v478_v30 = vshll.u32 %v3589_v16, 16  ;;  %v540_v32 = vor.u32 %v4748_v18, %v3601_v23  ;;  %v544_v33 = vrot.slane %v4745_v19, 1  ;;  %4783 = vst [vmem:[#allocation4_spill] sm:$0xff] %v3664_v52  ;;  %v3317_v2 = vld [vmem:[%s4707_s1 + $0x28] sm:$0xff] }
  0x1e   : > { %v475_v29 = vrot.slane %v473_v17, 1  ;;  %v604_v34 = vor.u32 %v4731_v20, %v3605_v24  ;;  %v608_v35 = vrot.slane %v4724_v21, 1  ;;  %v672_v37 = vrot.slane %v4713_v26, 1  ;;  %v3349_v3 = vld [vmem:[%s4707_s1 + $0x128] sm:$0xff] }
  0x1f   : > { %3368 = vmatpush.bf16.msra.mxu1 %v3323_v4  ;;  %3369 = vmatpush.bf16.msra.mxu2 %v3323_v4  ;;  %v668_v36 = vor.u32 %v4716_v25, %v3611_v27  ;;  %v480_v39 = vrot.slane %v478_v30, 1  ;;  %v545_v42 = vsel %vm469_vm0, %v540_v32, %v544_v33  ;;  %v4746_v58 = vshrl.u32 %v3574_v9, 16 }
  0x20   : > { %3370 = vmatpush.bf16.msra.mxu3 %v3323_v4  ;;  %814 = vmatpush.bf16.msra.mxu0 %v3323_v4  ;;  %v476_v38 = vor.u32 %v475_v29, %v471_v28  ;;  %v609_v43 = vsel %vm469_vm0, %v604_v34, %v608_v35  ;;  %v4737_v59 = vshll.u32 %v3658_v50, 16  ;;  %v4725_v60 = vshrl.u32 %v3577_v10, 16 }
  0x21   : > { %v673_v44 = vsel %vm469_vm0, %v668_v36, %v672_v37  ;;  %v4722_v61 = vshll.u32 %v3661_v51, 16  ;;  %v4714_v62 = vshrl.u32 %v3585_v14, 16  ;;  %v4711_v63 = vshll.u32 %v3664_v52, 16 }
  0x22   : > { %v481_v45 = vsel %vm469_vm0, %v476_v38, %v480_v39  ;;  %v482_v0 = vshrl.u32 %v3589_v16, 16  ;;  %v486_v1 = vshll.u32 %v3667_v53, 16  ;;  %v548_v4 = vor.u32 %v4746_v58, %v544_v33  ;;  %v3719_v38 = vld [vmem:[%s3556_s7 + $0x98] sm:$0xff] }
  0x23   : > { %3371 = vmatpush.bf16.msra.mxu1 %v3322_v11  ;;  %3372 = vmatpush.bf16.msra.mxu2 %v3322_v11  ;;  %v612_v17 = vor.u32 %v4725_v60, %v608_v35  ;;  %v676_v28 = vor.u32 %v4714_v62, %v672_v37  ;;  %v680_v29 = vrot.slane %v4711_v63, 1  ;;  %v3716_v37 = vld [vmem:[%s3556_s7 + $0x58] sm:$0xff] }
  0x24   : > { %3373 = vmatpush.bf16.msra.mxu3 %v3322_v11  ;;  %815 = vmatpush.bf16.msra.mxu0 %v3322_v11  ;;  %v552_v11 = vrot.slane %v4737_v59, 1  ;;  %v488_v32 = vrot.slane %v486_v1, 1 }
  0x25   : > { %v681_v35 = vsel %vm469_vm0, %v676_v28, %v680_v29 }
  0x26   : > { %v553_v33 = vsel %vm469_vm0, %v548_v4, %v552_v11 }
  0x27   : > { %3374 = vmatpush.bf16.msra.mxu1 %v3321_v22  ;;  %3375 = vmatpush.bf16.msra.mxu2 %v3321_v22 }
  0x28   : > { %3376 = vmatpush.bf16.msra.mxu3 %v3321_v22  ;;  %816 = vmatpush.bf16.msra.mxu0 %v3321_v22  ;;  %v616_v22 = vrot.slane %v4722_v61, 1 }
  0x2a   : > { %v617_v34 = vsel %vm469_vm0, %v612_v17, %v616_v22 }
  0x2b   : > { %3377 = vmatpush.bf16.msra.mxu1 %v3320_v31  ;;  %3378 = vmatpush.bf16.msra.mxu2 %v3320_v31 }
  0x2c   : > { %3379 = vmatpush.bf16.msra.mxu3 %v3320_v31  ;;  %817 = vmatpush.bf16.msra.mxu0 %v3320_v31  ;;  %v484_v31 = vor.u32 %v482_v0, %v480_v39  ;;  %v3332_v39 = vld [vmem:[%s4707_s1 + $0xa0] sm:$0xff] }
  0x2e   : > { %858 = vmatmul.bf16.vlgmr.msra.gmra.mxu1 %v545_v42  ;;  %898 = vmatmul.bf16.vlgmr.msra.gmra.mxu2 %v609_v43  ;;  %v489_v36 = vsel %vm469_vm0, %v484_v31, %v488_v32  ;;  %v3731_v42 = vld [vmem:[%s3556_s7 + $0xd8] sm:$0xff] }
  0x2f   : > { %1395 = vmatpush.bf16.msrb.mxu2 %v3335_v40  ;;  %938 = vmatmul.bf16.vlgmr.msra.gmra.mxu3 %v673_v44  ;;  %v3340_v40 = vld [vmem:[%s4707_s1 + $0xe0] sm:$0xff]  ;;  %4784 = vst [vmem:[#allocation5_spill] sm:$0xff] %v3731_v42  ;;  %v3734_v43 = vld [vmem:[%s3556_s7 + $0x18] sm:$0xff] }
  0x30   : > { %1871 = vmatpush.bf16.msrb.mxu3 %v3343_v41  ;;  %818 = vmatmul.bf16.vlgmr.msra.gmra.mxu0 %v481_v45  ;;  %v3316_v41 = vld [vmem:[%s4707_s1 + $0x20] sm:$0xff]  ;;  %v4744_v45 = vshrl.u32 %v3658_v50, 16 }
  0x31   : > { %1059 = vmatpush.bf16.msrb.mxu1 %v3319_v46  ;;  %2271 = vmatpush.bf16.msrb.mxu0 %v3351_v47  ;;  %v3348_v44 = vld [vmem:[%s4707_s1 + $0x120] sm:$0xff]  ;;  %v4735_v46 = vshll.u32 %v3716_v37, 16  ;;  %v4723_v47 = vshrl.u32 %v3661_v51, 16 }
  0x33   : > { %1396 = vmatpush.bf16.msrb.mxu2 %v3334_v48  ;;  %v4720_v48 = vshll.u32 %v3719_v38, 16 }
  0x34   : > { %1872 = vmatpush.bf16.msrb.mxu3 %v3342_v49  ;;  %v4712_v49 = vshrl.u32 %v3664_v52, 16 }
  0x35   : > { %1060 = vmatpush.bf16.msrb.mxu1 %v3318_v54  ;;  %2272 = vmatpush.bf16.msrb.mxu0 %v3350_v55  ;;  %v4710_v54 = vshll.u32 %v3731_v42, 16  ;;  %v490_v55 = vshrl.u32 %v3667_v53, 16  ;;  %v624_v4 = vrot.slane %v4720_v48, 1 }
  0x36   : > { %v684_v17 = vor.u32 %v4712_v49, %v680_v29  ;;  %v3768_v29 = vld [vmem:[%s3556_s7 + $0x60] sm:$0xff] }
  0x37   : > { %1397 = vmatpush.bf16.msrb.mxu2 %v3333_v56  ;;  %v494_v56 = vshll.u32 %v3734_v43, 16  ;;  %v688_v28 = vrot.slane %v4710_v54, 1  ;;  %v492_v31 = vor.u32 %v490_v55, %v488_v32  ;;  %v3331_v32 = vld [vmem:[%s4707_s1 + $0x98] sm:$0xff] }
  0x38   : > { %1873 = vmatpush.bf16.msrb.mxu3 %v3341_v57  ;;  %v556_v57 = vor.u32 %v4744_v45, %v552_v11 }
  0x39   : > { %1061 = vmatpush.bf16.msrb.mxu1 %v3317_v2  ;;  %2273 = vmatpush.bf16.msrb.mxu0 %v3349_v3  ;;  %v560_v2 = vrot.slane %v4735_v46, 1  ;;  %v620_v3 = vor.u32 %v4723_v47, %v616_v22  ;;  %v496_v11 = vrot.slane %v494_v56, 1 }
  0x3b   : > { %1398 = vmatpush.bf16.msrb.mxu2 %v3332_v39  ;;  %v625_v22 = vsel %vm469_vm0, %v620_v3, %v624_v4  ;;  %v3339_v39 = vld [vmem:[%s4707_s1 + $0xd8] sm:$0xff]  ;;  %v4736_v3 = vshrl.u32 %v3716_v37, 16 }
  0x3c   : > { %1874 = vmatpush.bf16.msrb.mxu3 %v3340_v40  ;;  %v3315_v40 = vld [vmem:[%s4707_s1 + $0x18] sm:$0xff] }
  0x3d   : > { %1062 = vmatpush.bf16.msrb.mxu1 %v3316_v41  ;;  %2274 = vmatpush.bf16.msrb.mxu0 %v3348_v44  ;;  %v3783_v41 = vld [vmem:[%s3556_s7 + $0xe0] sm:$0xff] }
  0x3e   : > { %863 = vmatmul.bf16.gmra.mxu1 %v553_v33  ;;  %903 = vmatmul.bf16.gmra.mxu2 %v617_v34  ;;  %v561_v33 = vsel %vm469_vm0, %v556_v57, %v560_v2  ;;  %v689_v34 = vsel %vm469_vm0, %v684_v17, %v688_v28  ;;  %4785 = vst [vmem:[#allocation6_spill] sm:$0xff] %v3783_v41  ;;  %v3786_v44 = vld [vmem:[%s3556_s7 + $0x20] sm:$0xff]  ;;  %v3347_v57 = vld [vmem:[%s4707_s1 + $0x118] sm:$0xff]  ;;  %v4733_v17 = vshll.u32 %v3768_v29, 16 }
  0x3f   : > { %943 = vmatmul.bf16.gmra.mxu3 %v681_v35  ;;  %v497_v35 = vsel %vm469_vm0, %v492_v31, %v496_v11  ;;  %1399 = vmatpush.bf16.msrb.mxu2 %v3331_v32  ;;  %v4721_v31 = vshrl.u32 %v3719_v38, 16  ;;  %v502_v32 = vshll.u32 %v3786_v44, 16 }
  0x40   : > { %823 = vmatmul.bf16.gmra.mxu0 %v489_v36  ;;  %v3771_v36 = vld [vmem:[%s3556_s7 + $0xa0] sm:$0xff]  ;;  %1875 = vmatpush.bf16.msrb.mxu3 %v3339_v39  ;;  %v564_v39 = vor.u32 %v4736_v3, %v560_v2 }
  0x41   : > { %1063 = vmatpush.bf16.msrb.mxu1 %v3315_v40  ;;  %2275 = vmatpush.bf16.msrb.mxu0 %v3347_v57  ;;  %v568_v40 = vrot.slane %v4733_v17, 1  ;;  %v628_v57 = vor.u32 %v4721_v31, %v624_v4  ;;  %v504_v2 = vrot.slane %v502_v32, 1  ;;  %v506_v31 = vshrl.u32 %v3786_v44, 16 }
  0x43   : > { %v569_v62 = vsel %vm469_vm0, %v564_v39, %v568_v40  ;;  %v3338_v39 = vld [vmem:[%s4707_s1 + $0xd0] sm:$0xff]  ;;  %v508_v60 = vor.u32 %v506_v31, %v504_v2 }
  0x44   : > { %1876 = vmatpush.bf16.msrb.mxu3 %v3338_v39 }
  0x4e   : > { %868 = vmatmul.bf16.gmra.mxu1 %v561_v33  ;;  %908 = vmatmul.bf16.gmra.mxu2 %v625_v22  ;;  %v4719_v33 = vshll.u32 %v3771_v36, 16  ;;  %v4718_v22 = vshrl.u32 %v3731_v42, 16 }
  0x4f   : > { %948 = vmatmul.bf16.gmra.mxu3 %v689_v34  ;;  %v4717_v34 = vshll.u32 %v3783_v41, 16 }
  0x50   : > { %828 = vmatmul.bf16.gmra.mxu0 %v497_v35  ;;  %v498_v35 = vshrl.u32 %v3734_v43, 16  ;;  %v632_v54 = vrot.slane %v4719_v33, 1  ;;  %v692_v63 = vor.u32 %v4718_v22, %v688_v28  ;;  %v3820_v28 = vld [vmem:[%s3556_s7 + $0x68] sm:$0xff]  ;;  %v4730_v33 = vshrl.u32 %v3783_v41, 16 }
  0x51   : > { %v696_v49 = vrot.slane %v4717_v34, 1  ;;  %v3823_v34 = vld [vmem:[%s3556_s7 + $0xa8] sm:$0xff] }
  0x52   : > { %v500_v26 = vor.u32 %v498_v35, %v496_v11  ;;  %v633_v4 = vsel %vm469_vm0, %v628_v57, %v632_v54  ;;  %v3330_v11 = vld [vmem:[%s4707_s1 + $0x90] sm:$0xff]  ;;  %v4732_v57 = vshll.u32 %v3820_v28, 16  ;;  %v4727_v22 = vshll.u32 %v3823_v34, 16 }
  0x53   : > { %v697_v15 = vsel %vm469_vm0, %v692_v63, %v696_v49  ;;  %v3838_v63 = vld [vmem:[%s3556_s7 + $0x28] sm:$0xff]  ;;  %1400 = vmatpush.bf16.msrb.mxu2 %v3330_v11  ;;  %v700_v47 = vor.u32 %v4730_v33, %v696_v49  ;;  %v3872_v49 = vld [vmem:[%s3556_s7 + $0x70] sm:$0xff] }
  0x54   : > { %v505_v25 = vsel %vm469_vm0, %v500_v26, %v504_v2  ;;  %v3314_v26 = vld [vmem:[%s4707_s1 + $0x10] sm:$0xff]  ;;  %v4758_v11 = vshll.u32 %v3838_v63, 16  ;;  %v640_v61 = vrot.slane %v4727_v22, 1  ;;  %v3329_v2 = vld [vmem:[%s4707_s1 + $0x88] sm:$0xff]  ;;  %v4763_v17 = vshrl.u32 %v3838_v63, 16 }
  0x55   : > { %1064 = vmatpush.bf16.msrb.mxu1 %v3314_v26  ;;  %v576_v26 = vrot.slane %v4732_v57, 1 }
  0x57   : > { %1401 = vmatpush.bf16.msrb.mxu2 %v3329_v2 }
  0x5e   : > { %873 = vmatmul.bf16.gmra.mxu1 %v569_v62  ;;  %913 = vmatmul.bf16.gmra.mxu2 %v633_v4  ;;  %v3835_v62 = vld [vmem:[%s3556_s7 + $0xe8] sm:$0xff]  ;;  %v4728_v4 = vshrl.u32 %v3771_v36, 16 }
  0x5f   : > { %953 = vmatmul.bf16.gmra.mxu3 %v697_v15  ;;  %4786 = vst [vmem:[#allocation7_spill] sm:$0xff] %v3835_v62  ;;  %v3346_v15 = vld [vmem:[%s4707_s1 + $0x110] sm:$0xff]  ;;  %v4729_v48 = vshll.u32 %v3835_v62, 16  ;;  %v4742_v20 = vshrl.u32 %v3835_v62, 16 }
  0x60   : > { %833 = vmatmul.bf16.gmra.mxu0 %v505_v25  ;;  %v4734_v25 = vshrl.u32 %v3768_v29, 16 }
  0x61   : > { %2276 = vmatpush.bf16.msrb.mxu0 %v3346_v15  ;;  %v636_v15 = vor.u32 %v4728_v4, %v632_v54  ;;  %v704_v21 = vrot.slane %v4729_v48, 1  ;;  %v3875_v48 = vld [vmem:[%s3556_s7 + $0xb0] sm:$0xff] }
  0x62   : > { %v572_v39 = vor.u32 %v4734_v25, %v568_v40  ;;  %v512_v40 = vrot.slane %v4758_v11, 1  ;;  %v4739_v33 = vshll.u32 %v3875_v48, 16 }
  0x63   : > { %v641_v54 = vsel %vm469_vm0, %v636_v15, %v640_v61  ;;  %v705_v22 = vsel %vm469_vm0, %v700_v47, %v704_v21  ;;  %v3890_v47 = vld [vmem:[%s3556_s7 + $0x30] sm:$0xff]  ;;  %v4738_v15 = vshll.u32 %v3872_v49, 16  ;;  %v708_v46 = vor.u32 %v4742_v20, %v704_v21  ;;  %v3924_v21 = vld [vmem:[%s3556_s7 + $0x78] sm:$0xff] }
  0x64   : > { %v577_v13 = vsel %vm469_vm0, %v572_v39, %v576_v26  ;;  %v513_v4 = vsel %vm469_vm0, %v508_v60, %v512_v40  ;;  %v3337_v39 = vld [vmem:[%s4707_s1 + $0xc8] sm:$0xff]  ;;  %v4749_v2 = vshll.u32 %v3890_v47, 16  ;;  %v648_v25 = vrot.slane %v4739_v33, 1 }
  0x65   : > { %v3313_v60 = vld [vmem:[%s4707_s1 + $0x8] sm:$0xff]  ;;  %1877 = vmatpush.bf16.msrb.mxu3 %v3337_v39  ;;  %v516_v59 = vor.u32 %v4763_v17, %v512_v40  ;;  %v3328_v40 = vld [vmem:[%s4707_s1 + $0x80] sm:$0xff]  ;;  %v4757_v19 = vshrl.u32 %v3890_v47, 16 }
  0x66   : > { %1065 = vmatpush.bf16.msrb.mxu1 %v3313_v60  ;;  %v584_v60 = vrot.slane %v4738_v15, 1  ;;  %1402 = vmatpush.bf16.msrb.mxu2 %v3328_v40 }
  0x6e   : > { %878 = vmatmul.bf16.gmra.mxu1 %v577_v13  ;;  %918 = vmatmul.bf16.gmra.mxu2 %v641_v54  ;;  %v3887_v13 = vld [vmem:[%s3556_s7 + $0xf0] sm:$0xff]  ;;  %v4740_v54 = vshrl.u32 %v3823_v34, 16 }
  0x6f   : > { %958 = vmatmul.bf16.gmra.mxu3 %v705_v22  ;;  %4787 = vst [vmem:[#allocation8_spill] sm:$0xff] %v3887_v13  ;;  %v3345_v22 = vld [vmem:[%s4707_s1 + $0x108] sm:$0xff]  ;;  %v4741_v57 = vshll.u32 %v3887_v13, 16 }
  0x70   : > { %838 = vmatmul.bf16.gmra.mxu0 %v513_v4  ;;  %v4743_v4 = vshrl.u32 %v3820_v28, 16 }
  0x71   : > { %2277 = vmatpush.bf16.msrb.mxu0 %v3345_v22  ;;  %v644_v22 = vor.u32 %v4740_v54, %v640_v61  ;;  %v712_v3 = vrot.slane %v4741_v57, 1  ;;  %v3927_v57 = vld [vmem:[%s3556_s7 + $0xb8] sm:$0xff] }
  0x72   : > { %v580_v39 = vor.u32 %v4743_v4, %v576_v26  ;;  %v520_v26 = vrot.slane %v4749_v2, 1  ;;  %v4752_v20 = vshll.u32 %v3927_v57, 16  ;;  %v4755_v4 = vshrl.u32 %v3887_v13, 16 }
  0x73   : > { %v649_v61 = vsel %vm469_vm0, %v644_v22, %v648_v25  ;;  %v713_v33 = vsel %vm469_vm0, %v708_v46, %v712_v3  ;;  %v3939_v46 = vld [vmem:[%s3556_s7 + $0xf8] sm:$0xff]  ;;  %v4751_v22 = vshll.u32 %v3924_v21, 16 }
  0x74   : > { %v585_v15 = vsel %vm469_vm0, %v580_v39, %v584_v60  ;;  %v521_v54 = vsel %vm469_vm0, %v516_v59, %v520_v26  ;;  %v3336_v39 = vld [vmem:[%s4707_s1 + $0xc0] sm:$0xff]  ;;  %4788 = vst [vmem:[#allocation9_spill] sm:$0xff] %v3939_v46  ;;  %v4754_v45 = vshll.u32 %v3939_v46, 16  ;;  %v656_v58 = vrot.slane %v4752_v20, 1 }
  0x75   : > { %v3312_v59 = vld [vmem:[%s4707_s1] sm:$0xff]  ;;  %1878 = vmatpush.bf16.msrb.mxu3 %v3336_v39  ;;  %v716_v12 = vor.u32 %v4755_v4, %v712_v3  ;;  %v524_v2 = vor.u32 %v4757_v19, %v520_v26  ;;  %v4759_v26 = vshrl.u32 %v3924_v21, 16  ;;  %v4761_v4 = vshrl.u32 %v3927_v57, 16 }
  0x76   : > { %1066 = vmatpush.bf16.msrb.mxu1 %v3312_v59  ;;  %v592_v59 = vrot.slane %v4751_v22, 1  ;;  %v720_v18 = vrot.slane %v4754_v45, 1 }
  0x78   : > { %v721_v20 = vsel %vm469_vm0, %v716_v12, %v720_v18 }
  0x7e   : > { %883 = vmatmul.bf16.gmra.mxu1 %v585_v15  ;;  %923 = vmatmul.bf16.gmra.mxu2 %v649_v61  ;;  %v3942_v15 = vld [vmem:[%s3556_s7 + $0x38] sm:$0xff]  ;;  %v4753_v61 = vshrl.u32 %v3875_v48, 16 }
  0x7f   : > { %963 = vmatmul.bf16.gmra.mxu3 %v713_v33  ;;  %v3344_v33 = vld [vmem:[%s4707_s1 + $0x100] sm:$0xff]  ;;  %v4756_v40 = vshll.u32 %v3942_v15, 16  ;;  %v4762_v12 = vshrl.u32 %v3942_v15, 16 }
  0x80   : > { %843 = vmatmul.bf16.gmra.mxu0 %v521_v54  ;;  %v4750_v54 = vshrl.u32 %v3872_v49, 16 }
  0x81   : > { %2278 = vmatpush.bf16.msrb.mxu0 %v3344_v33  ;;  %v652_v33 = vor.u32 %v4753_v61, %v648_v25 }
  0x82   : > { %v588_v39 = vor.u32 %v4750_v54, %v584_v60  ;;  %v528_v60 = vrot.slane %v4756_v40, 1  ;;  %v288_v54 = vld [vmem:[%s3556_s7 + $0x100] sm:$0x1]  ;;  %v4760_v40 = vshrl.u32 %v3939_v46, 16 }
  0x83   : > { %v657_v25 = vsel %vm469_vm0, %v652_v33, %v656_v58  ;;  %v435_v3 = vunpack.c.l.b16 %v288_v54  ;;  %v1228_v33 = vld [vmem:[%s3556_s7] sm:$0xe]  ;;  %v3355_v54 = vunpack.c.h.b16 %v3571_v8 }
  0x84   : > { %v593_v22 = vsel %vm469_vm0, %v588_v39, %v592_v59  ;;  %v529_v61 = vsel %vm469_vm0, %v524_v2, %v528_v60  ;;  %v596_v2 = vor.u32 %v4759_v26, %v592_v59 }
  0x85   : > { %v3976_v45 = vpack.c.b16 %v435_v3, %v435_v3  ;;  %v532_v3 = vor.u32 %v4762_v12, %v528_v60 }
  0x86   : > { %v601_v19 = vsel %vm469_vm0, %v596_v2, %v3605_v24  ;;  %v1658_v24 = vrot.slane %v482_v0, 1 }
  0x87   : > { %4789 = vst [vmem:[#allocation10_spill] sm:$0xff] %v3976_v45  ;;  %v726_v39 = vshll.u32 %v3976_v45, 16 }
  0x8e   : > { %888 = vmatmul.bf16.gmra.mxu1 %v593_v22  ;;  %928 = vmatmul.bf16.gmra.mxu2 %v657_v25  ;;  %v1247_v22 = vunpack.c.l.b16 %v1228_v33  ;;  %v728_v25 = vrot.slane %v726_v39, 1  ;;  %v2104_v33 = vld [vmem:[%s3556_s7] sm:$0xc] }
  0x8f   : > { %968 = vmatmul.bf16.gmra.mxu3 %v721_v20  ;;  %v660_v20 = vor.u32 %v4761_v4, %v656_v58  ;;  %v537_v58 = vsel %vm469_vm0, %v532_v3, %v3601_v23  ;;  %v2123_v60 = vunpack.c.l.b16 %v2104_v33  ;;  %v1251_v23 = vrot.slane %v3589_v16, 1 }
  0x90   : > { %848 = vmatmul.bf16.gmra.mxu0 %v529_v61  ;;  %v724_v61 = vor.u32 %v4760_v40, %v720_v18  ;;  %v1248_v59 = vpack.c.b16 %v3355_v54, %v1247_v22  ;;  %v1663_v33 = vrot.slane %v486_v1, 2 }
  0x91   : > { %v665_v11 = vsel %vm469_vm0, %v660_v20, %v3611_v27  ;;  %v1659_v27 = vrot.slane %v478_v30, 2  ;;  %v2124_v2 = vpack.c.b16 %v3355_v54, %v2123_v60 }
  0x92   : > { %v729_v26 = vsel %vm469_vm0, %v724_v61, %v728_v25  ;;  %v1651_v18 = vshrl.u32 %v1248_v59, 16  ;;  %v1654_v39 = vshll.u32 %v1248_v59, 16  ;;  %v1250_v20 = vrot.slane %v1248_v59, 1 }
  0x94   : > { %v1653_v40 = vrot.slane %v1651_v18, 1  ;;  %v1656_v4 = vrot.slane %v1654_v39, 2  ;;  %v1252_v25 = vsel %vm1249_vm1, %v1250_v20, %v1251_v23  ;;  %v1253_v18 = vrot.slane %v3667_v53, 1 }
  0x95   : > { %v2129_v39 = vrot.slane %v3667_v53, 2 }
  0x96   : > { %v1657_v22 = vor.u32 %v1656_v4, %v1653_v40 }
  0x9e   : > { %893 = vmatmul.bf16.gmra.mxu1 %v601_v19  ;;  %933 = vmatmul.bf16.gmra.mxu2 %v665_v11  ;;  %v1660_v19 = vor.u32 %v1659_v27, %v1658_v24  ;;  %v2126_v11 = vrot.slane %v2124_v2, 2  ;;  %v1254_v2 = vsel %vm1249_vm1, %v1251_v23, %v1253_v18  ;;  %v1666_v23 = vrot.slane %v498_v35, 1 }
  0x9f   : > { %973 = vmatmul.bf16.gmra.mxu3 %v729_v26  ;;  %v2127_v26 = vrot.slane %v3589_v16, 2 }
  0xa0   : > { %853 = vmatmul.bf16.gmra.mxu0 %v537_v58  ;;  %v1661_v30 = vsel %vm1649_vm2, %v1657_v22, %v1660_v19  ;;  %v1662_v58 = vrot.slane %v490_v55, 1 }
  0xa1   : > { %v2128_v54 = vsel %vm2125_vm3, %v2126_v11, %v2127_v26  ;;  %v2130_v22 = vsel %vm2125_vm3, %v2127_v26, %v2129_v39  ;;  %v1255_v26 = vrot.slane %v3734_v43, 1 }
  0xab   : > { %v4007_v61 = vpop.f32.mrf.mxu1 }
  0xad   : > { %v4010_v0 = vpop.f32.mrf.mxu0 }
  0xae   : > { %1067 = vmatmul.bf16.vlgmr.msrb.gmra.mxu1 %v3571_v8  ;;  %1403 = vmatmul.bf16.vlgmr.msrb.gmra.mxu2 %v1252_v25  ;;  %v1664_v8 = vor.u32 %v1663_v33, %v1662_v58 }
  0xaf   : > { %1879 = vmatmul.bf16.vlgmr.msrb.gmra.mxu3 %v1661_v30 }
  0xb0   : > { %2279 = vmatmul.bf16.vlgmr.msrb.gmra.mxu0 %v2128_v54  ;;  %v1665_v55 = vsel %vm1649_vm2, %v1660_v19, %v1664_v8  ;;  %v1667_v19 = vrot.slane %v494_v56, 2  ;;  %v2131_v54 = vrot.slane %v3734_v43, 2 }
  0xb1   : > { %v4015_v4 = vpop.f32.mrf.mxu2 }
  0xb2   : > { %4790 = vst [vmem:[#allocation11_spill] sm:$0xff] %v4015_v4  ;;  %v4017_v40 = vpop.f32.mrf.mxu3  ;;  %v2132_v12 = vsel %vm2125_vm3, %v2129_v39, %v2131_v54  ;;  %v1257_v39 = vrot.slane %v3786_v44, 1 }
  0xb3   : > { %4791 = vst [vmem:[#allocation12_spill] sm:$0xff] %v4017_v40  ;;  %v4019_v3 = vpop.f32.mrf.mxu1 }
  0xb5   : > { %v4021_v59 = vpop.f32.mrf.mxu0 }
  0xb9   : > { %v4029_v60 = vpop.f32.mrf.mxu2 }
  0xba   : > { %4792 = vst [vmem:[#allocation13_spill] sm:$0xff] %v4029_v60  ;;  %v4031_v24 = vpop.f32.mrf.mxu3 }
  0xbb   : > { %4793 = vst [vmem:[#allocation14_spill] sm:$0xff] %v4031_v24  ;;  %v4033_v27 = vpop.f32.mrf.mxu1 }
  0xbd   : > { %v4036_v20 = vpop.f32.mrf.mxu0 }
  0xbe   : > { %1072 = vmatmul.bf16.gmra.mxu1 %v3589_v16  ;;  %1408 = vmatmul.bf16.gmra.mxu2 %v1254_v2  ;;  %v1668_v16 = vor.u32 %v1667_v19, %v1666_v23 }
  0xbf   : > { %1884 = vmatmul.bf16.gmra.mxu3 %v1665_v55  ;;  %v1256_v55 = vsel %vm1249_vm1, %v1253_v18, %v1255_v26  ;;  %v1670_v18 = vrot.slane %v506_v31, 1 }
  0xc0   : > { %2284 = vmatmul.bf16.gmra.mxu0 %v2130_v22  ;;  %v1669_v35 = vsel %vm1649_vm2, %v1664_v8, %v1668_v16  ;;  %v1671_v8 = vrot.slane %v502_v32, 2 }
  0xc1   : > { %v4041_v1 = vpop.f32.mrf.mxu2 }
  0xc2   : > { %4794 = vst [vmem:[#allocation15_spill] sm:$0xff] %v4041_v1  ;;  %v4043_v11 = vpop.f32.mrf.mxu3 }
  0xc3   : > { %4795 = vst [vmem:[#allocation16_spill] sm:$0xff] %v4043_v11  ;;  %v4045_v25 = vpop.f32.mrf.mxu1 }
  0xc5   : > { %v4047_v30 = vpop.f32.mrf.mxu0 }
  0xc9   : > { %v4055_v58 = vpop.f32.mrf.mxu2 }
  0xca   : > { %4796 = vst [vmem:[#allocation17_spill] sm:$0xff] %v4055_v58  ;;  %v4057_v33 = vpop.f32.mrf.mxu3 }
  0xcb   : > { %4797 = vst [vmem:[#allocation18_spill] sm:$0xff] %v4057_v33  ;;  %v4059_v2 = vpop.f32.mrf.mxu1  ;;  %v1258_v33 = vsel %vm1249_vm1, %v1255_v26, %v1257_v39  ;;  %v4804_v26 = vshrl.u32 %v3838_v63, 16 }
  0xcd   : > { %v4062_v22 = vpop.f32.mrf.mxu0  ;;  %v1674_v40 = vrot.slane %v4804_v26, 1 }
  0xce   : > { %1077 = vmatmul.bf16.gmra.mxu1 %v3667_v53  ;;  %1413 = vmatmul.bf16.gmra.mxu2 %v1256_v55  ;;  %v1672_v53 = vor.u32 %v1671_v8, %v1670_v18  ;;  %v2133_v55 = vrot.slane %v3786_v44, 2 }
  0xcf   : > { %1889 = vmatmul.bf16.gmra.mxu3 %v1669_v35 }
  0xd0   : > { %2289 = vmatmul.bf16.gmra.mxu0 %v2132_v12  ;;  %v1673_v31 = vsel %vm1649_vm2, %v1668_v16, %v1672_v53  ;;  %v2134_v24 = vsel %vm2125_vm3, %v2131_v54, %v2133_v55  ;;  %v4805_v16 = vshll.u32 %v3838_v63, 16  ;;  %v1259_v54 = vrot.slane %v3838_v63, 1 }
  0xd1   : > { %v4067_v56 = vpop.f32.mrf.mxu2 }
  0xd2   : > { %4798 = vst [vmem:[#allocation19_spill] sm:$0xff] %v4067_v56  ;;  %v4069_v23 = vpop.f32.mrf.mxu3  ;;  %v1675_v45 = vrot.slane %v4805_v16, 2  ;;  %v1260_v46 = vsel %vm1249_vm1, %v1257_v39, %v1259_v54  ;;  %v4810_v39 = vshrl.u32 %v3890_v47, 16 }
  0xd3   : > { %4799 = vst [vmem:[#allocation20_spill] sm:$0xff] %v4069_v23  ;;  %v4071_v19 = vpop.f32.mrf.mxu1 }
  0xd5   : > { %v4073_v17 = vpop.f32.mrf.mxu0 }
  0xd9   : > { %v4081_v12 = vpop.f32.mrf.mxu2 }
  0xda   : > { %4800 = vst [vmem:[#allocation21_spill] sm:$0xff] %v4081_v12  ;;  %v4083_v35 = vpop.f32.mrf.mxu3 }
  0xdb   : > { %4801 = vst [vmem:[#allocation22_spill] sm:$0xff] %v4083_v35  ;;  %v4085_v23 = vpop.f32.mrf.mxu1 }
  0xdd   : > { %v4088_v11 = vpop.f32.mrf.mxu0 }
  0xde   : > { %1082 = vmatmul.bf16.gmra.mxu1 %v3734_v43  ;;  %1418 = vmatmul.bf16.gmra.mxu2 %v1258_v33  ;;  %v1676_v43 = vor.u32 %v1675_v45, %v1674_v40  ;;  %v2135_v33 = vrot.slane %v3838_v63, 2 }
  0xdf   : > { %1894 = vmatmul.bf16.gmra.mxu3 %v1673_v31 }
  0xe0   : > { %2294 = vmatmul.bf16.gmra.mxu0 %v2134_v24  ;;  %v1677_v26 = vsel %vm1649_vm2, %v1672_v53, %v1676_v43  ;;  %v2136_v62 = vsel %vm2125_vm3, %v2133_v55, %v2135_v33  ;;  %v4811_v53 = vshll.u32 %v3890_v47, 16  ;;  %v1261_v55 = vrot.slane %v3890_v47, 1 }
  0xe1   : > { %v4093_v32 = vpop.f32.mrf.mxu2 }
  0xe2   : > { %4802 = vst [vmem:[#allocation23_spill] sm:$0xff] %v4093_v32  ;;  %v4095_v18 = vpop.f32.mrf.mxu3  ;;  %v1679_v32 = vrot.slane %v4811_v53, 2 }
  0xe3   : > { %4803 = vst [vmem:[#allocation24_spill] sm:$0xff] %v4095_v18  ;;  %v4097_v8 = vpop.f32.mrf.mxu1 }
  0xe5   : > { %v4099_v35 = vpop.f32.mrf.mxu0 }
  0xe9   : > { %v4107_v24 = vpop.f32.mrf.mxu2 }
  0xea   : > { %4806 = vst [vmem:[#allocation25_spill] sm:$0xff] %v4107_v24  ;;  %v4109_v31 = vpop.f32.mrf.mxu3  ;;  %v1678_v24 = vrot.slane %v4810_v39, 1 }
  0xeb   : > { %4807 = vst [vmem:[#allocation26_spill] sm:$0xff] %v4109_v31  ;;  %v4111_v18 = vpop.f32.mrf.mxu1 }
  0xed   : > { %v4114_v13 = vpop.f32.mrf.mxu0 }
  0xee   : > { %1087 = vmatmul.bf16.gmra.mxu1 %v3786_v44  ;;  %1423 = vmatmul.bf16.gmra.mxu2 %v1260_v46  ;;  %v1680_v44 = vor.u32 %v1679_v32, %v1678_v24  ;;  %v2137_v46 = vrot.slane %v3890_v47, 2 }
  0xef   : > { %1899 = vmatmul.bf16.gmra.mxu3 %v1677_v26 }
  0xf0   : > { %2299 = vmatmul.bf16.gmra.mxu0 %v2136_v62  ;;  %v1681_v39 = vsel %vm1649_vm2, %v1676_v43, %v1680_v44  ;;  %v2138_v41 = vsel %vm2125_vm3, %v2135_v33, %v2137_v46  ;;  %v4818_v43 = vshll.u32 %v3942_v15, 16  ;;  %v1263_v33 = vrot.slane %v3942_v15, 1 }
  0xf1   : > { %v4119_v45 = vpop.f32.mrf.mxu2 }
  0xf2   : > { %4808 = vst [vmem:[#allocation27_spill] sm:$0xff] %v4119_v45  ;;  %v4121_v40 = vpop.f32.mrf.mxu3  ;;  %v1262_v45 = vsel %vm1249_vm1, %v1259_v54, %v1261_v55  ;;  %v4817_v54 = vshrl.u32 %v3942_v15, 16  ;;  %v1683_v56 = vrot.slane %v4818_v43, 2 }
  0xf3   : > { %4809 = vst [vmem:[#allocation28_spill] sm:$0xff] %v4121_v40  ;;  %v4123_v16 = vpop.f32.mrf.mxu1 }
  0xf5   : > { %v4125_v31 = vpop.f32.mrf.mxu0 }
  0xf9   : > { %v4133_v62 = vpop.f32.mrf.mxu2 }
  0xfa   : > { %4812 = vst [vmem:[#allocation29_spill] sm:$0xff] %v4133_v62  ;;  %v4135_v26 = vpop.f32.mrf.mxu3  ;;  %v1682_v62 = vrot.slane %v4817_v54, 1 }
  0xfb   : > { %4813 = vst [vmem:[#allocation30_spill] sm:$0xff] %v4135_v26  ;;  %v4137_v40 = vpop.f32.mrf.mxu1 }
  0xfd   : > { %v4140_v12 = vpop.f32.mrf.mxu0 }
  0xfe   : > { %1092 = vmatmul.bf16.gmra.mxu1 %v3838_v63  ;;  %1428 = vmatmul.bf16.gmra.mxu2 %v1262_v45  ;;  %v1684_v63 = vor.u32 %v1683_v56, %v1682_v62  ;;  %v2139_v45 = vrot.slane %v3942_v15, 2 }
  0xff   : > { %1904 = vmatmul.bf16.gmra.mxu3 %v1681_v39 }
 0x100   : > { %2304 = vmatmul.bf16.gmra.mxu0 %v2138_v41  ;;  %v1685_v54 = vsel %vm1649_vm2, %v1680_v44, %v1684_v63  ;;  %v2140_v42 = vsel %vm2125_vm3, %v2137_v46, %v2139_v45  ;;  %v4826_v44 = vshll.u32 %v3562_v5, 16  ;;  %v1265_v46 = vrot.slane %v3562_v5, 1 }
 0x101   : > { %v4145_v32 = vpop.f32.mrf.mxu2 }
 0x102   : > { %4814 = vst [vmem:[#allocation31_spill] sm:$0xff] %v4145_v32  ;;  %v4147_v24 = vpop.f32.mrf.mxu3  ;;  %v1264_v32 = vsel %vm1249_vm1, %v1261_v55, %v1263_v33  ;;  %v4825_v55 = vshrl.u32 %v3562_v5, 16  ;;  %v1687_v1 = vrot.slane %v4826_v44, 2 }
 0x103   : > { %4815 = vst [vmem:[#allocation32_spill] sm:$0xff] %v4147_v24  ;;  %v4149_v53 = vpop.f32.mrf.mxu1 }
 0x104   : > { %4816 = vst [vmem:[#allocation33_spill] sm:$0xff] %v4149_v53 }
 0x105   : > { %v4151_v26 = vpop.f32.mrf.mxu0 }
 0x109   : > { %v4159_v41 = vpop.f32.mrf.mxu2 }
 0x10a   : > { %4819 = vst [vmem:[#allocation34_spill] sm:$0xff] %v4159_v41  ;;  %v4161_v39 = vpop.f32.mrf.mxu3  ;;  %v1686_v41 = vrot.slane %v4825_v55, 1 }
 0x10b   : > { %4820 = vst [vmem:[#allocation35_spill] sm:$0xff] %v4161_v39  ;;  %v4163_v24 = vpop.f32.mrf.mxu1 }
 0x10c   : > { %4821 = vst [vmem:[#allocation36_spill] sm:$0xff] %v4163_v24 }
 0x10d   : > { %v4166_v58 = vpop.f32.mrf.mxu0 }
 0x10e   : > { %1097 = vmatmul.bf16.gmra.mxu1 %v3890_v47  ;;  %1433 = vmatmul.bf16.gmra.mxu2 %v1264_v32  ;;  %v1688_v47 = vor.u32 %v1687_v1, %v1686_v41  ;;  %v2141_v32 = vrot.slane %v3562_v5, 2 }
 0x10f   : > { %1909 = vmatmul.bf16.gmra.mxu3 %v1685_v54 }
 0x110   : > { %2309 = vmatmul.bf16.gmra.mxu0 %v2140_v42  ;;  %v1689_v55 = vsel %vm1649_vm2, %v1684_v63, %v1688_v47  ;;  %v2142_v52 = vsel %vm2125_vm3, %v2139_v45, %v2141_v32  ;;  %v4834_v63 = vshll.u32 %v3574_v9, 16 }
 0x111   : > { %v4171_v56 = vpop.f32.mrf.mxu2 }
 0x112   : > { %4822 = vst [vmem:[#allocation37_spill] sm:$0xff] %v4171_v56  ;;  %v4173_v62 = vpop.f32.mrf.mxu3  ;;  %v1266_v56 = vsel %vm1249_vm1, %v1263_v33, %v1265_v46  ;;  %v4833_v33 = vshrl.u32 %v3574_v9, 16  ;;  %v1691_v45 = vrot.slane %v4834_v63, 2 }
 0x113   : > { %4823 = vst [vmem:[#allocation38_spill] sm:$0xff] %v4173_v62  ;;  %v4175_v43 = vpop.f32.mrf.mxu1 }
 0x114   : > { %4824 = vst [vmem:[#allocation39_spill] sm:$0xff] %v4175_v43 }
 0x115   : > { %v4177_v39 = vpop.f32.mrf.mxu0 }
 0x119   : > { %v4185_v42 = vpop.f32.mrf.mxu2 }
 0x11a   : > { %4827 = vst [vmem:[#allocation40_spill] sm:$0xff] %v4185_v42  ;;  %v4187_v54 = vpop.f32.mrf.mxu3  ;;  %v1690_v42 = vrot.slane %v4833_v33, 1 }
 0x11b   : > { %4828 = vst [vmem:[#allocation41_spill] sm:$0xff] %v4187_v54  ;;  %v4189_v62 = vpop.f32.mrf.mxu1 }
 0x11c   : > { %4829 = vst [vmem:[#allocation42_spill] sm:$0xff] %v4189_v62 }
 0x11d   : > { %v4192_v60 = vpop.f32.mrf.mxu0 }
 0x11e   : > { %1102 = vmatmul.bf16.gmra.mxu1 %v3942_v15  ;;  %1438 = vmatmul.bf16.gmra.mxu2 %v1266_v56  ;;  %v1267_v15 = vrot.slane %v3574_v9, 1  ;;  %v1692_v56 = vor.u32 %v1691_v45, %v1690_v42 }
 0x11f   : > { %1914 = vmatmul.bf16.gmra.mxu3 %v1689_v55 }
 0x120   : > { %2314 = vmatmul.bf16.gmra.mxu0 %v2142_v52  ;;  %v2143_v52 = vrot.slane %v3574_v9, 2  ;;  %v1268_v4 = vsel %vm1249_vm1, %v1265_v46, %v1267_v15  ;;  %v1693_v14 = vsel %vm1649_vm2, %v1688_v47, %v1692_v56  ;;  %v4225_v47 = vld [vmem:[%s4708_s2] ss:$0 sm:$0xff] }
 0x121   : > { %v4197_v1 = vpop.f32.mrf.mxu2 }
 0x122   : > { %4830 = vst [vmem:[#allocation43_spill] sm:$0xff] %v4197_v1  ;;  %v4199_v41 = vpop.f32.mrf.mxu3  ;;  %v2144_v33 = vsel %vm2125_vm3, %v2141_v32, %v2143_v52 }
 0x123   : > { %4831 = vst [vmem:[#allocation44_spill] sm:$0xff] %v4199_v41  ;;  %v4201_v44 = vpop.f32.mrf.mxu1 }
 0x124   : > { %4832 = vst [vmem:[#allocation45_spill] sm:$0xff] %v4201_v44 }
 0x125   : > { %v4203_v54 = vpop.f32.mrf.mxu0 }
 0x129   : > { %v4211_v55 = vpop.f32.mrf.mxu2 }
 0x12a   : > { %4835 = vst [vmem:[#allocation46_spill] sm:$0xff] %v4211_v55  ;;  %v4213_v1 = vpop.f32.mrf.mxu3 }
 0x12b   : > { %4836 = vst [vmem:[#allocation47_spill] sm:$0xff] %v4213_v1  ;;  %v1068_v41 = vpop.f32.mrf.mxu1 }
 0x12c   : > { %v1069_v9 = vadd.f32 %v1068_v41, %v4010_v0  ;;  %v1269_v41 = vrot.slane %v3658_v50, 1 }
 0x12d   : > { %v2280_v44 = vpop.f32.mrf.mxu0 }
 0x12e   : > { %1107 = vmatmul.bf16.gmra.mxu1 %v3562_v5  ;;  %1443 = vmatmul.bf16.gmra.mxu2 %v1268_v4  ;;  %v4837_v5 = vshrl.u32 %v3658_v50, 16  ;;  %v4838_v4 = vshll.u32 %v3658_v50, 16 }
 0x12f   : > { %1919 = vmatmul.bf16.gmra.mxu3 %v1693_v14 }
 0x130   : > { %2319 = vmatmul.bf16.gmra.mxu0 %v2144_v33  ;;  %v1694_v14 = vrot.slane %v4837_v5, 1  ;;  %v1695_v33 = vrot.slane %v4838_v4, 2  ;;  %v1270_v4 = vsel %vm1249_vm1, %v1267_v15, %v1269_v41 }
 0x131   : > { %v1404_v42 = vpop.f32.mrf.mxu2 }
 0x132   : > { %v1564_v63 = vadd.f32 %v1404_v42, %v1069_v9  ;;  %v1880_v45 = vpop.f32.mrf.mxu3 }
 0x133   : > { %v1070_v46 = vpop.f32.mrf.mxu1 }
 0x134   : > { %v2040_v1 = vadd.f32 %v1880_v45, %v1564_v63  ;;  %v1071_v42 = vadd.f32 %v1070_v46, %v4021_v59  ;;  %v1696_v63 = vor.u32 %v1695_v33, %v1694_v14  ;;  %v2145_v45 = vrot.slane %v3658_v50, 2  ;;  %v3423_v46 = vld [vmem:[%s3556_s7 + $0x48] sm:$0xff] }
 0x135   : > { %v2282_v32 = vpop.f32.mrf.mxu0 }
 0x136   : > { %v2440_v0 = vadd.f32 %v2280_v44, %v2040_v1  ;;  %v1697_v53 = vsel %vm1649_vm2, %v1692_v56, %v1696_v63 }
 0x138   : > { %v2508_v9 = vadd.f32 %v4225_v47, %v2440_v0  ;;  %v2146_v0 = vsel %vm2125_vm3, %v2143_v52, %v2145_v45 }
 0x139   : > { %v1406_v55 = vpop.f32.mrf.mxu2 }
 0x13a   : > { %v2572_v62 = vmul.f32 0.1, %v2508_v9  ;;  %v1565_v43 = vadd.f32 %v1406_v55, %v1071_v42  ;;  %v1882_v5 = vpop.f32.mrf.mxu3 }
 0x13b   : > { %v1073_v7 = vpop.f32.mrf.mxu1 }
 0x13c   : > { %v2636_v1 = vmax.f32 %v2508_v9, %v2572_v62  ;;  %v2041_v44 = vadd.f32 %v1882_v5, %v1565_v43  ;;  %v1074_v43 = vadd.f32 %v1073_v7, %v4036_v20  ;;  %v4839_v5 = vshrl.u32 %v3716_v37, 16 }
 0x13d   : > { %v2285_v24 = vpop.f32.mrf.mxu0 }
 0x13e   : > { %v2700_v59 = vpack.c.bf16 %v2636_v1, %v2636_v1  ;;  %v2441_v55 = vadd.f32 %v2282_v32, %v2041_v44  ;;  %1112 = vmatmul.bf16.gmra.mxu1 %v3423_v46  ;;  %1448 = vmatmul.bf16.gmra.mxu2 %v1270_v4  ;;  %v1698_v4 = vrot.slane %v4839_v5, 1  ;;  %v2147_v46 = vrot.slane %v3716_v37, 2 }
 0x13f   : > { %1924 = vmatmul.bf16.gmra.mxu3 %v1697_v53  ;;  %v4840_v53 = vshll.u32 %v3716_v37, 16 }
 0x140   : > { %2324 = vmatmul.bf16.gmra.mxu0 %v2146_v0  ;;  %2765 = vst.msk [vmem:[%s4241_s10] sm:$0xf] %vm2764_vm4, %v2700_v59  ;;  %v2509_v62 = vadd.f32 %v4225_v47, %v2441_v55  ;;  %v1271_v59 = vrot.slane %v3716_v37, 1 }
 0x141   : > { %v1409_v15 = vpop.f32.mrf.mxu2  ;;  %v1699_v1 = vrot.slane %v4840_v53, 2  ;;  %v2148_v53 = vsel %vm2125_vm3, %v2145_v45, %v2147_v46 }
 0x142   : > { %v2573_v56 = vmul.f32 0.1, %v2509_v62  ;;  %v1566_v52 = vadd.f32 %v1409_v15, %v1074_v43  ;;  %v1885_v14 = vpop.f32.mrf.mxu3 }
 0x143   : > { %v1075_v33 = vpop.f32.mrf.mxu1  ;;  %v1700_v55 = vor.u32 %v1699_v1, %v1698_v4 }
 0x144   : > { %v2637_v9 = vmax.f32 %v2509_v62, %v2573_v56  ;;  %v2042_v42 = vadd.f32 %v1885_v14, %v1566_v52  ;;  %v1076_v20 = vadd.f32 %v1075_v33, %v4047_v30  ;;  %v1272_v14 = vsel %vm1249_vm1, %v1269_v41, %v1271_v59 }
 0x145   : > { %v2287_v32 = vpop.f32.mrf.mxu0  ;;  %v1701_v5 = vsel %vm1649_vm2, %v1696_v63, %v1700_v55 }
 0x146   : > { %v2701_v44 = vpack.c.bf16 %v2637_v9, %v2637_v9  ;;  %v2442_v0 = vadd.f32 %v2285_v24, %v2042_v42 }
 0x148   : > { %2766 = vst.msk [vmem:[%s4241_s10 + $0x4] sm:$0xf] %vm2764_vm4, %v2701_v44  ;;  %v2510_v7 = vadd.f32 %v4225_v47, %v2442_v0 }
 0x149   : > { %v1411_v62 = vpop.f32.mrf.mxu2 }
 0x14a   : > { %v2574_v43 = vmul.f32 0.1, %v2510_v7  ;;  %v1567_v15 = vadd.f32 %v1411_v62, %v1076_v20  ;;  %v1887_v56 = vpop.f32.mrf.mxu3 }
 0x14b   : > { %v1078_v52 = vpop.f32.mrf.mxu1 }
 0x14c   : > { %v2638_v24 = vmax.f32 %v2510_v7, %v2574_v43  ;;  %v2043_v9 = vadd.f32 %v1887_v56, %v1567_v15  ;;  %v1079_v41 = vadd.f32 %v1078_v52, %v4062_v22  ;;  %v4842_v43 = vshll.u32 %v3768_v29, 16 }
 0x14d   : > { %v2290_v42 = vpop.f32.mrf.mxu0 }
 0x14e   : > { %v2702_v44 = vpack.c.bf16 %v2638_v24, %v2638_v24  ;;  %v2443_v30 = vadd.f32 %v2287_v32, %v2043_v9  ;;  %1117 = vmatmul.bf16.gmra.mxu1 %v3658_v50  ;;  %1453 = vmatmul.bf16.gmra.mxu2 %v1272_v14  ;;  %v4841_v50 = vshrl.u32 %v3768_v29, 16  ;;  %v1703_v15 = vrot.slane %v4842_v43, 2 }
 0x14f   : > { %1929 = vmatmul.bf16.gmra.mxu3 %v1701_v5  ;;  %v1273_v24 = vrot.slane %v3768_v29, 1  ;;  %v2149_v5 = vrot.slane %v3768_v29, 2 }
 0x150   : > { %2329 = vmatmul.bf16.gmra.mxu0 %v2148_v53  ;;  %2767 = vst.msk [vmem:[%s4241_s10 + $0x8] sm:$0xf] %vm2764_vm4, %v2702_v44  ;;  %v2511_v33 = vadd.f32 %v4225_v47, %v2443_v30  ;;  %v1702_v62 = vrot.slane %v4841_v50, 1 }
 0x151   : > { %v1414_v4 = vpop.f32.mrf.mxu2 }
 0x152   : > { %v2575_v1 = vmul.f32 0.1, %v2511_v33  ;;  %v1568_v0 = vadd.f32 %v1414_v4, %v1079_v41  ;;  %v1890_v63 = vpop.f32.mrf.mxu3  ;;  %v1704_v9 = vor.u32 %v1703_v15, %v1702_v62  ;;  %v1274_v4 = vsel %vm1249_vm1, %v1271_v59, %v1273_v24 }
 0x153   : > { %v1080_v7 = vpop.f32.mrf.mxu1 }
 0x154   : > { %v2639_v45 = vmax.f32 %v2511_v33, %v2575_v1  ;;  %v2044_v20 = vadd.f32 %v1890_v63, %v1568_v0  ;;  %v1081_v52 = vadd.f32 %v1080_v7, %v4073_v17  ;;  %v1705_v63 = vsel %vm1649_vm2, %v1700_v55, %v1704_v9 }
 0x155   : > { %v2292_v32 = vpop.f32.mrf.mxu0 }
 0x156   : > { %v2703_v56 = vpack.c.bf16 %v2639_v45, %v2639_v45  ;;  %v2444_v14 = vadd.f32 %v2290_v42, %v2044_v20  ;;  %v2150_v45 = vsel %vm2125_vm3, %v2147_v46, %v2149_v5 }
 0x158   : > { %2768 = vst.msk [vmem:[%s4241_s10 + $0xc] sm:$0xf] %vm2764_vm4, %v2703_v56  ;;  %v2512_v22 = vadd.f32 %v4225_v47, %v2444_v14 }
 0x159   : > { %v1416_v53 = vpop.f32.mrf.mxu2 }
 0x15a   : > { %v2576_v44 = vmul.f32 0.1, %v2512_v22  ;;  %v1569_v30 = vadd.f32 %v1416_v53, %v1081_v52  ;;  %v1892_v33 = vpop.f32.mrf.mxu3 }
 0x15b   : > { %v1083_v41 = vpop.f32.mrf.mxu1 }
 0x15c   : > { %v2640_v42 = vmax.f32 %v2512_v22, %v2576_v44  ;;  %v2045_v1 = vadd.f32 %v1892_v33, %v1569_v30  ;;  %v1084_v59 = vadd.f32 %v1083_v41, %v4088_v11  ;;  %v4844_v22 = vshll.u32 %v3820_v28, 16 }
 0x15d   : > { %v2295_v0 = vpop.f32.mrf.mxu0  ;;  %v1275_v30 = vrot.slane %v3820_v28, 1 }
 0x15e   : > { %v2704_v20 = vpack.c.bf16 %v2640_v42, %v2640_v42  ;;  %v2445_v17 = vadd.f32 %v2292_v32, %v2045_v1  ;;  %1122 = vmatmul.bf16.gmra.mxu1 %v3716_v37  ;;  %1458 = vmatmul.bf16.gmra.mxu2 %v1274_v4  ;;  %v4843_v37 = vshrl.u32 %v3820_v28, 16  ;;  %v1707_v52 = vrot.slane %v4844_v22, 2 }
 0x15f   : > { %1934 = vmatmul.bf16.gmra.mxu3 %v1705_v63  ;;  %v2151_v4 = vrot.slane %v3820_v28, 2 }
 0x160   : > { %2334 = vmatmul.bf16.gmra.mxu0 %v2150_v45  ;;  %2769 = vst.msk [vmem:[%s4241_s10 + $0x10] sm:$0xf] %vm2764_vm4, %v2704_v20  ;;  %v2513_v7 = vadd.f32 %v4225_v47, %v2445_v17  ;;  %v1706_v14 = vrot.slane %v4843_v37, 1  ;;  %v1276_v17 = vsel %vm1249_vm1, %v1273_v24, %v1275_v30 }
 0x161   : > { %v1419_v50 = vpop.f32.mrf.mxu2 }
 0x162   : > { %v2577_v62 = vmul.f32 0.1, %v2513_v7  ;;  %v1570_v43 = vadd.f32 %v1419_v50, %v1084_v59  ;;  %v1895_v55 = vpop.f32.mrf.mxu3  ;;  %v1708_v41 = vor.u32 %v1707_v52, %v1706_v14  ;;  %v4846_v52 = vshll.u32 %v3872_v49, 16 }
 0x163   : > { %v1085_v15 = vpop.f32.mrf.mxu1 }
 0x164   : > { %v2641_v46 = vmax.f32 %v2513_v7, %v2577_v62  ;;  %v2046_v56 = vadd.f32 %v1895_v55, %v1570_v43  ;;  %v1086_v33 = vadd.f32 %v1085_v15, %v4099_v35  ;;  %v1709_v50 = vsel %vm1649_vm2, %v1704_v9, %v1708_v41 }
 0x165   : > { %v2297_v32 = vpop.f32.mrf.mxu0  ;;  %v2152_v62 = vsel %vm2125_vm3, %v2149_v5, %v2151_v4 }
 0x166   : > { %v2705_v53 = vpack.c.bf16 %v2641_v46, %v2641_v46  ;;  %v2446_v44 = vadd.f32 %v2295_v0, %v2046_v56 }
 0x168   : > { %2770 = vst.msk [vmem:[%s4241_s10 + $0x14] sm:$0xf] %vm2764_vm4, %v2705_v53  ;;  %v2514_v11 = vadd.f32 %v4225_v47, %v2446_v44  ;;  %v1711_v53 = vrot.slane %v4846_v52, 2 }
 0x169   : > { %v1421_v42 = vpop.f32.mrf.mxu2 }
 0x16a   : > { %v2578_v1 = vmul.f32 0.1, %v2514_v11  ;;  %v1571_v63 = vadd.f32 %v1421_v42, %v1086_v33  ;;  %v1897_v45 = vpop.f32.mrf.mxu3  ;;  %v1277_v33 = vrot.slane %v3872_v49, 1 }
 0x16b   : > { %v1088_v20 = vpop.f32.mrf.mxu1 }
 0x16c   : > { %v2642_v0 = vmax.f32 %v2514_v11, %v2578_v1  ;;  %v2047_v7 = vadd.f32 %v1897_v45, %v1571_v63  ;;  %v1089_v24 = vadd.f32 %v1088_v20, %v4114_v13  ;;  %v2153_v63 = vrot.slane %v3872_v49, 2 }
 0x16d   : > { %v2300_v59 = vpop.f32.mrf.mxu0 }
 0x16e   : > { %v2706_v43 = vpack.c.bf16 %v2642_v0, %v2642_v0  ;;  %v2447_v35 = vadd.f32 %v2297_v32, %v2047_v7  ;;  %1127 = vmatmul.bf16.gmra.mxu1 %v3768_v29  ;;  %1463 = vmatmul.bf16.gmra.mxu2 %v1276_v17  ;;  %v4845_v29 = vshrl.u32 %v3872_v49, 16 }
 0x16f   : > { %1939 = vmatmul.bf16.gmra.mxu3 %v1709_v50  ;;  %v1278_v50 = vsel %vm1249_vm1, %v1275_v30, %v1277_v33 }
 0x170   : > { %2339 = vmatmul.bf16.gmra.mxu0 %v2152_v62  ;;  %2771 = vst.msk [vmem:[%s4241_s10 + $0x18] sm:$0xf] %vm2764_vm4, %v2706_v43  ;;  %v2515_v55 = vadd.f32 %v4225_v47, %v2447_v35  ;;  %v1710_v22 = vrot.slane %v4845_v29, 1 }
 0x171   : > { %v1424_v15 = vpop.f32.mrf.mxu2 }
 0x172   : > { %v2579_v46 = vmul.f32 0.1, %v2515_v55  ;;  %v1572_v56 = vadd.f32 %v1424_v15, %v1089_v24  ;;  %v1900_v9 = vpop.f32.mrf.mxu3  ;;  %v1712_v1 = vor.u32 %v1711_v53, %v1710_v22  ;;  %v1279_v53 = vrot.slane %v3924_v21, 1 }
 0x173   : > { %v1090_v37 = vpop.f32.mrf.mxu1 }
 0x174   : > { %v2643_v5 = vmax.f32 %v2515_v55, %v2579_v46  ;;  %v2048_v14 = vadd.f32 %v1900_v9, %v1572_v56  ;;  %v1091_v42 = vadd.f32 %v1090_v37, %v4125_v31  ;;  %v1713_v35 = vsel %vm1649_vm2, %v1708_v41, %v1712_v1 }
 0x175   : > { %v2302_v32 = vpop.f32.mrf.mxu0  ;;  %v2154_v55 = vsel %vm2125_vm3, %v2151_v4, %v2153_v63 }
 0x176   : > { %v2707_v44 = vpack.c.bf16 %v2643_v5, %v2643_v5  ;;  %v2448_v11 = vadd.f32 %v2300_v59, %v2048_v14 }
 0x178   : > { %2772 = vst.msk [vmem:[%s4241_s10 + $0x1c] sm:$0xf] %vm2764_vm4, %v2707_v44  ;;  %v2516_v13 = vadd.f32 %v4225_v47, %v2448_v11 }
 0x179   : > { %v1426_v45 = vpop.f32.mrf.mxu2 }
 0x17a   : > { %v2580_v20 = vmul.f32 0.1, %v2516_v13  ;;  %v1573_v17 = vadd.f32 %v1426_v45, %v1091_v42  ;;  %v1902_v0 = vpop.f32.mrf.mxu3 }
 0x17b   : > { %v1093_v7 = vpop.f32.mrf.mxu1 }
 0x17c   : > { %v2644_v59 = vmax.f32 %v2516_v13, %v2580_v20  ;;  %v2049_v62 = vadd.f32 %v1902_v0, %v1573_v17  ;;  %v1094_v30 = vadd.f32 %v1093_v7, %v4140_v12  ;;  %v2155_v13 = vrot.slane %v3924_v21, 2 }
 0x17d   : > { %v2305_v43 = vpop.f32.mrf.mxu0  ;;  %v1280_v7 = vsel %vm1249_vm1, %v1277_v33, %v1279_v53 }
 0x17e   : > { %v2708_v24 = vpack.c.bf16 %v2644_v59, %v2644_v59  ;;  %v2449_v31 = vadd.f32 %v2302_v32, %v2049_v62  ;;  %1132 = vmatmul.bf16.gmra.mxu1 %v3820_v28  ;;  %1468 = vmatmul.bf16.gmra.mxu2 %v1278_v50  ;;  %v4847_v28 = vshrl.u32 %v3924_v21, 16  ;;  %v4848_v32 = vshll.u32 %v3924_v21, 16 }
 0x17f   : > { %1944 = vmatmul.bf16.gmra.mxu3 %v1713_v35  ;;  %v2156_v35 = vsel %vm2125_vm3, %v2153_v63, %v2155_v13 }
 0x180   : > { %2344 = vmatmul.bf16.gmra.mxu0 %v2154_v55  ;;  %2773 = vst.msk [vmem:[%s4241_s10 + $0x20] sm:$0xf] %vm2764_vm4, %v2708_v24  ;;  %v2517_v49 = vadd.f32 %v4225_v47, %v2449_v31  ;;  %v1714_v14 = vrot.slane %v4847_v28, 1  ;;  %v1715_v29 = vrot.slane %v4848_v32, 2  ;;  %v3424_v24 = vld [vmem:[%s3556_s7 + $0x70] sm:$0xff] }
 0x181   : > { %v1429_v15 = vpop.f32.mrf.mxu2 }
 0x182   : > { %v2581_v46 = vmul.f32 0.1, %v2517_v49  ;;  %v1574_v56 = vadd.f32 %v1429_v15, %v1094_v30  ;;  %v1905_v41 = vpop.f32.mrf.mxu3  ;;  %v1716_v11 = vor.u32 %v1715_v29, %v1714_v14  ;;  %v3425_v14 = vld [vmem:[%s3556_s7 + $0x80] sm:$0xff] }
 0x183   : > { %v1095_v9 = vpop.f32.mrf.mxu1  ;;  %v1281_v32 = vrot.slane %v3425_v14, 1 }
 0x184   : > { %v2645_v4 = vmax.f32 %v2517_v49, %v2581_v46  ;;  %v2050_v37 = vadd.f32 %v1905_v41, %v1574_v56  ;;  %v1096_v44 = vadd.f32 %v1095_v9, %v4151_v26  ;;  %v4849_v41 = vshrl.u32 %v3565_v6, 16 }
 0x185   : > { %v2307_v5 = vpop.f32.mrf.mxu0 }
 0x186   : > { %v2709_v22 = vpack.c.bf16 %v2645_v4, %v2645_v4  ;;  %v2450_v52 = vadd.f32 %v2305_v43, %v2050_v37  ;;  %v1717_v43 = vsel %vm1649_vm2, %v1712_v1, %v1716_v11  ;;  %v1718_v9 = vrot.slane %v4849_v41, 1 }
 0x187   : > { %v4850_v4 = vshll.u32 %v3565_v6, 16 }
 0x188   : > { %2774 = vst.msk [vmem:[%s4241_s10 + $0x24] sm:$0xf] %vm2764_vm4, %v2709_v22  ;;  %v2518_v12 = vadd.f32 %v4225_v47, %v2450_v52  ;;  %v2157_v52 = vrot.slane %v3425_v14, 2 }
 0x189   : > { %v1431_v42 = vpop.f32.mrf.mxu2  ;;  %v1719_v37 = vrot.slane %v4850_v4, 2 }
 0x18a   : > { %v2582_v45 = vmul.f32 0.1, %v2518_v12  ;;  %v1575_v20 = vadd.f32 %v1431_v42, %v1096_v44  ;;  %v1907_v17 = vpop.f32.mrf.mxu3 }
 0x18b   : > { %v1098_v0 = vpop.f32.mrf.mxu1  ;;  %v1720_v22 = vor.u32 %v1719_v37, %v1718_v9 }
 0x18c   : > { %v2646_v50 = vmax.f32 %v2518_v12, %v2582_v45  ;;  %v2051_v59 = vadd.f32 %v1907_v17, %v1575_v20  ;;  %v1099_v33 = vadd.f32 %v1098_v0, %v4166_v58  ;;  %v1282_v20 = vsel %vm1249_vm1, %v1279_v53, %v1281_v32 }
 0x18d   : > { %v2310_v62 = vpop.f32.mrf.mxu0 }
 0x18e   : > { %v2710_v26 = vpack.c.bf16 %v2646_v50, %v2646_v50  ;;  %v2451_v55 = vadd.f32 %v2307_v5, %v2051_v59  ;;  %1137 = vmatmul.bf16.gmra.mxu1 %v3424_v24  ;;  %1473 = vmatmul.bf16.gmra.mxu2 %v1280_v7  ;;  %v1721_v50 = vsel %vm1649_vm2, %v1716_v11, %v1720_v22 }
 0x18f   : > { %1949 = vmatmul.bf16.gmra.mxu3 %v1717_v43  ;;  %v2158_v59 = vsel %vm2125_vm3, %v2155_v13, %v2157_v52  ;;  %v3426_v43 = vld [vmem:[%s3556_s7 + $0x78] sm:$0xff] }
 0x190   : > { %2349 = vmatmul.bf16.gmra.mxu0 %v2156_v35  ;;  %2775 = vst.msk [vmem:[%s4241_s10 + $0x28] sm:$0xf] %vm2764_vm4, %v2710_v26  ;;  %v2519_v21 = vadd.f32 %v4225_v47, %v2451_v55 }
 0x191   : > { %v1434_v31 = vpop.f32.mrf.mxu2 }
 0x192   : > { %v2583_v49 = vmul.f32 0.1, %v2519_v21  ;;  %v1576_v1 = vadd.f32 %v1434_v31, %v1099_v33  ;;  %v1910_v30 = vpop.f32.mrf.mxu3 }
 0x193   : > { %v1100_v63 = vpop.f32.mrf.mxu1 }
 0x194   : > { %v2647_v15 = vmax.f32 %v2519_v21, %v2583_v49  ;;  %v2052_v46 = vadd.f32 %v1910_v30, %v1576_v1  ;;  %v1101_v29 = vadd.f32 %v1100_v63, %v4177_v39  ;;  %v4851_v49 = vshrl.u32 %v3577_v10, 16 }
 0x195   : > { %v2312_v56 = vpop.f32.mrf.mxu0  ;;  %v4852_v30 = vshll.u32 %v3577_v10, 16 }
 0x196   : > { %v2711_v5 = vpack.c.bf16 %v2647_v15, %v2647_v15  ;;  %v2452_v28 = vadd.f32 %v2310_v62, %v2052_v46  ;;  %v1722_v1 = vrot.slane %v4851_v49, 1 }
 0x197   : > { %v1723_v63 = vrot.slane %v4852_v30, 2 }
 0x198   : > { %2776 = vst.msk [vmem:[%s4241_s10 + $0x2c] sm:$0xf] %vm2764_vm4, %v2711_v5  ;;  %v2520_v58 = vadd.f32 %v4225_v47, %v2452_v28 }
 0x199   : > { %v1436_v12 = vpop.f32.mrf.mxu2  ;;  %v1724_v4 = vor.u32 %v1723_v63, %v1722_v1 }
 0x19a   : > { %v2584_v44 = vmul.f32 0.1, %v2520_v58  ;;  %v1577_v42 = vadd.f32 %v1436_v12, %v1101_v29  ;;  %v1912_v45 = vpop.f32.mrf.mxu3 }
 0x19b   : > { %v1103_v6 = vpop.f32.mrf.mxu1 }
 0x19c   : > { %v2648_v17 = vmax.f32 %v2520_v58, %v2584_v44  ;;  %v2053_v0 = vadd.f32 %v1912_v45, %v1577_v42  ;;  %v1104_v53 = vadd.f32 %v1103_v6, %v4192_v60  ;;  %v1725_v6 = vsel %vm1649_vm2, %v1720_v22, %v1724_v4 }
 0x19d   : > { %v2315_v7 = vpop.f32.mrf.mxu0 }
 0x19e   : > { %v2712_v62 = vpack.c.bf16 %v2648_v17, %v2648_v17  ;;  %v2453_v39 = vadd.f32 %v2312_v56, %v2053_v0  ;;  %1142 = vmatmul.bf16.gmra.mxu1 %v3426_v43  ;;  %1478 = vmatmul.bf16.gmra.mxu2 %v1282_v20  ;;  %v3427_v56 = vld [vmem:[%s3556_s7 + $0x88] sm:$0xff] }
 0x19f   : > { %1954 = vmatmul.bf16.gmra.mxu3 %v1721_v50  ;;  %v1283_v41 = vrot.slane %v3427_v56, 1  ;;  %v2159_v37 = vrot.slane %v3427_v56, 2 }
 0x1a0   : > { %2354 = vmatmul.bf16.gmra.mxu0 %v2158_v59  ;;  %2777 = vst.msk [vmem:[%s4241_s10 + $0x30] sm:$0xf] %vm2764_vm4, %v2712_v62  ;;  %v2521_v35 = vadd.f32 %v4225_v47, %v2453_v39 }
 0x1a1   : > { %v1439_v26 = vpop.f32.mrf.mxu2  ;;  %v1284_v10 = vsel %vm1249_vm1, %v1281_v32, %v1283_v41  ;;  %v2160_v20 = vsel %vm2125_vm3, %v2157_v52, %v2159_v37 }
 0x1a2   : > { %v2585_v55 = vmul.f32 0.1, %v2521_v35  ;;  %v1578_v11 = vadd.f32 %v1439_v26, %v1104_v53  ;;  %v1915_v24 = vpop.f32.mrf.mxu3  ;;  %v4854_v53 = vshll.u32 %v3661_v51, 16 }
 0x1a3   : > { %v1105_v13 = vpop.f32.mrf.mxu1 }
 0x1a4   : > { %v2649_v21 = vmax.f32 %v2521_v35, %v2585_v55  ;;  %v2054_v33 = vadd.f32 %v1915_v24, %v1578_v11  ;;  %v1106_v9 = vadd.f32 %v1105_v13, %v4203_v54  ;;  %v1727_v26 = vrot.slane %v4854_v53, 2  ;;  %v3428_v24 = vld [vmem:[%s3556_s7 + $0x90] sm:$0xff] }
 0x1a5   : > { %v2317_v31 = vpop.f32.mrf.mxu0  ;;  %v1285_v13 = vrot.slane %v3428_v24, 1 }
 0x1a6   : > { %v2713_v15 = vpack.c.bf16 %v2649_v21, %v2649_v21  ;;  %v2454_v46 = vadd.f32 %v2315_v7, %v2054_v33 }
 0x1a8   : > { %2778 = vst.msk [vmem:[%s4241_s10 + $0x34] sm:$0xf] %vm2764_vm4, %v2713_v15  ;;  %v2522_v60 = vadd.f32 %v4225_v47, %v2454_v46 }
 0x1a9   : > { %v1441_v5 = vpop.f32.mrf.mxu2 }
 0x1aa   : > { %v2586_v28 = vmul.f32 0.1, %v2522_v60  ;;  %v1579_v58 = vadd.f32 %v1441_v5, %v1106_v9  ;;  %v1917_v29 = vpop.f32.mrf.mxu3 }
 0x1ab   : > { %v1108_v12 = vpop.f32.mrf.mxu1 }
 0x1ac   : > { %v2650_v44 = vmax.f32 %v2522_v60, %v2586_v28  ;;  %v2055_v42 = vadd.f32 %v1917_v29, %v1579_v58  ;;  %v1109_v32 = vadd.f32 %v1108_v12, %v4007_v61 }
 0x1ad   : > { %v2320_v45 = vpop.f32.mrf.mxu0 }
 0x1ae   : > { %v2714_v17 = vpack.c.bf16 %v2650_v44, %v2650_v44  ;;  %v2455_v0 = vadd.f32 %v2317_v31, %v2055_v42  ;;  %1147 = vmatmul.bf16.gmra.mxu1 %v3425_v14  ;;  %1483 = vmatmul.bf16.gmra.mxu2 %v1284_v10  ;;  %v4853_v14 = vshrl.u32 %v3661_v51, 16  ;;  %v2161_v31 = vrot.slane %v3428_v24, 2 }
 0x1af   : > { %1959 = vmatmul.bf16.gmra.mxu3 %v1725_v6  ;;  %v1286_v51 = vsel %vm1249_vm1, %v1283_v41, %v1285_v13 }
 0x1b0   : > { %2359 = vmatmul.bf16.gmra.mxu0 %v2160_v20  ;;  %2779 = vst.msk [vmem:[%s4241_s10 + $0x38] sm:$0xf] %vm2764_vm4, %v2714_v17  ;;  %v2523_v54 = vadd.f32 %v4225_v47, %v2455_v0  ;;  %v1726_v35 = vrot.slane %v4853_v14, 1  ;;  %v2162_v28 = vsel %vm2125_vm3, %v2159_v37, %v2161_v31  ;;  %v4856_v17 = vshll.u32 %v3719_v38, 16 }
 0x1b1   : > { %v1444_v7 = vpop.f32.mrf.mxu2 }
 0x1b2   : > { %v2587_v50 = vmul.f32 0.1, %v2523_v54  ;;  %v1580_v59 = vadd.f32 %v1444_v7, %v1109_v32  ;;  %v1920_v22 = vpop.f32.mrf.mxu3  ;;  %v1728_v33 = vor.u32 %v1727_v26, %v1726_v35  ;;  %v1731_v0 = vrot.slane %v4856_v17, 2  ;;  %v3429_v7 = vld [vmem:[%s3556_s7 + $0x98] sm:$0xff] }
 0x1b3   : > { %v1110_v62 = vpop.f32.mrf.mxu1 }
 0x1b4   : > { %v2651_v52 = vmax.f32 %v2523_v54, %v2587_v50  ;;  %v2056_v39 = vadd.f32 %v1920_v22, %v1580_v59  ;;  %v1111_v21 = vadd.f32 %v1110_v62, %v4019_v3  ;;  %v1729_v5 = vsel %vm1649_vm2, %v1724_v4, %v1728_v33 }
 0x1b5   : > { %v2322_v43 = vpop.f32.mrf.mxu0  ;;  %v1287_v50 = vrot.slane %v3429_v7, 1  ;;  %v2163_v62 = vrot.slane %v3429_v7, 2 }
 0x1b6   : > { %v2715_v55 = vpack.c.bf16 %v2651_v52, %v2651_v52  ;;  %v2456_v11 = vadd.f32 %v2320_v45, %v2056_v39 }
 0x1b8   : > { %2780 = vst.msk [vmem:[%s4241_s10 + $0x3c] sm:$0xf] %vm2764_vm4, %v2715_v55  ;;  %v2524_v61 = vadd.f32 %v4225_v47, %v2456_v11 }
 0x1b9   : > { %v1446_v49 = vpop.f32.mrf.mxu2 }
 0x1ba   : > { %v2588_v1 = vmul.f32 0.1, %v2524_v61  ;;  %v1581_v30 = vadd.f32 %v1446_v49, %v1111_v21  ;;  %v1922_v63 = vpop.f32.mrf.mxu3 }
 0x1bb   : > { %v1113_v15 = vpop.f32.mrf.mxu1 }
 0x1bc   : > { %v2652_v46 = vmax.f32 %v2524_v61, %v2588_v1  ;;  %v2057_v60 = vadd.f32 %v1922_v63, %v1581_v30  ;;  %v1114_v41 = vadd.f32 %v1113_v15, %v4033_v27  ;;  %v2164_v61 = vsel %vm2125_vm3, %v2161_v31, %v2163_v62 }
 0x1bd   : > { %v2325_v9 = vpop.f32.mrf.mxu0 }
 0x1be   : > { %v2716_v58 = vpack.c.bf16 %v2652_v46, %v2652_v46  ;;  %v2457_v29 = vadd.f32 %v2322_v43, %v2057_v60  ;;  %1152 = vmatmul.bf16.gmra.mxu1 %v3427_v56  ;;  %1488 = vmatmul.bf16.gmra.mxu2 %v1286_v51  ;;  %v4855_v56 = vshrl.u32 %v3719_v38, 16  ;;  %v1288_v38 = vsel %vm1249_vm1, %v1285_v13, %v1287_v50 }
 0x1bf   : > { %1964 = vmatmul.bf16.gmra.mxu3 %v1729_v5 }
 0x1c0   : > { %2364 = vmatmul.bf16.gmra.mxu0 %v2162_v28  ;;  %2781 = vst.msk [vmem:[%s4241_s10 + $0x40] sm:$0xf] %vm2764_vm4, %v2716_v58  ;;  %v2525_v3 = vadd.f32 %v4225_v47, %v2457_v29  ;;  %v1730_v20 = vrot.slane %v4855_v56, 1  ;;  %v3430_v29 = vld [vmem:[%s3556_s7 + $0xa0] sm:$0xff] }
 0x1c1   : > { %v1449_v12 = vpop.f32.mrf.mxu2 }
 0x1c2   : > { %v2589_v10 = vmul.f32 0.1, %v2525_v3  ;;  %v1582_v44 = vadd.f32 %v1449_v12, %v1114_v41  ;;  %v1925_v4 = vpop.f32.mrf.mxu3  ;;  %v1732_v22 = vor.u32 %v1731_v0, %v1730_v20 }
 0x1c3   : > { %v1115_v42 = vpop.f32.mrf.mxu1 }
 0x1c4   : > { %v2653_v37 = vmax.f32 %v2525_v3, %v2589_v10  ;;  %v2058_v45 = vadd.f32 %v1925_v4, %v1582_v44  ;;  %v1116_v59 = vadd.f32 %v1115_v42, %v4045_v25  ;;  %v1733_v11 = vsel %vm1649_vm2, %v1728_v33, %v1732_v22 }
 0x1c5   : > { %v2327_v6 = vpop.f32.mrf.mxu0  ;;  %v1289_v3 = vrot.slane %v3430_v29, 1  ;;  %v2165_v10 = vrot.slane %v3430_v29, 2 }
 0x1c6   : > { %v2717_v54 = vpack.c.bf16 %v2653_v37, %v2653_v37  ;;  %v2458_v32 = vadd.f32 %v2325_v9, %v2058_v45  ;;  %v4858_v9 = vshll.u32 %v3771_v36, 16 }
 0x1c7   : > { %v2166_v0 = vsel %vm2125_vm3, %v2163_v62, %v2165_v10 }
 0x1c8   : > { %2782 = vst.msk [vmem:[%s4241_s10 + $0x44] sm:$0xf] %vm2764_vm4, %v2717_v54  ;;  %v2526_v27 = vadd.f32 %v4225_v47, %v2458_v32  ;;  %v1735_v5 = vrot.slane %v4858_v9, 2 }
 0x1c9   : > { %v1451_v52 = vpop.f32.mrf.mxu2 }
 0x1ca   : > { %v2590_v39 = vmul.f32 0.1, %v2526_v27  ;;  %v1583_v43 = vadd.f32 %v1451_v52, %v1116_v59  ;;  %v1927_v14 = vpop.f32.mrf.mxu3 }
 0x1cb   : > { %v1118_v35 = vpop.f32.mrf.mxu1 }
 0x1cc   : > { %v2654_v53 = vmax.f32 %v2526_v27, %v2590_v39  ;;  %v2059_v26 = vadd.f32 %v1927_v14, %v1583_v43  ;;  %v1119_v13 = vadd.f32 %v1118_v35, %v4059_v2 }
 0x1cd   : > { %v2330_v55 = vpop.f32.mrf.mxu0 }
 0x1ce   : > { %v2718_v21 = vpack.c.bf16 %v2654_v53, %v2654_v53  ;;  %v2459_v49 = vadd.f32 %v2327_v6, %v2059_v26  ;;  %1157 = vmatmul.bf16.gmra.mxu1 %v3428_v24  ;;  %1493 = vmatmul.bf16.gmra.mxu2 %v1288_v38  ;;  %v4857_v24 = vshrl.u32 %v3771_v36, 16  ;;  %v1290_v36 = vsel %vm1249_vm1, %v1287_v50, %v1289_v3 }
 0x1cf   : > { %1969 = vmatmul.bf16.gmra.mxu3 %v1733_v11  ;;  %v4860_v38 = vshll.u32 %v3823_v34, 16  ;;  %v3431_v11 = vld [vmem:[%s3556_s7 + $0xa8] sm:$0xff] }
 0x1d0   : > { %2369 = vmatmul.bf16.gmra.mxu0 %v2164_v61  ;;  %2783 = vst.msk [vmem:[%s4241_s10 + $0x48] sm:$0xf] %vm2764_vm4, %v2718_v21  ;;  %v2527_v25 = vadd.f32 %v4225_v47, %v2459_v49  ;;  %v1734_v60 = vrot.slane %v4857_v24, 1  ;;  %v1291_v61 = vrot.slane %v3431_v11, 1 }
 0x1d1   : > { %v1454_v1 = vpop.f32.mrf.mxu2  ;;  %v1739_v53 = vrot.slane %v4860_v38, 2 }
 0x1d2   : > { %v2591_v30 = vmul.f32 0.1, %v2527_v25  ;;  %v1584_v63 = vadd.f32 %v1454_v1, %v1119_v13  ;;  %v1930_v33 = vpop.f32.mrf.mxu3  ;;  %v1736_v12 = vor.u32 %v1735_v5, %v1734_v60 }
 0x1d3   : > { %v1120_v15 = vpop.f32.mrf.mxu1 }
 0x1d4   : > { %v2655_v31 = vmax.f32 %v2527_v25, %v2591_v30  ;;  %v2060_v51 = vadd.f32 %v1930_v33, %v1584_v63  ;;  %v1121_v41 = vadd.f32 %v1120_v15, %v4071_v19  ;;  %v1737_v17 = vsel %vm1649_vm2, %v1732_v22, %v1736_v12 }
 0x1d5   : > { %v2332_v46 = vpop.f32.mrf.mxu0  ;;  %v2167_v25 = vrot.slane %v3431_v11, 2 }
 0x1d6   : > { %v2719_v28 = vpack.c.bf16 %v2655_v31, %v2655_v31  ;;  %v2460_v58 = vadd.f32 %v2330_v55, %v2060_v51 }
 0x1d7   : > { %v2168_v24 = vsel %vm2125_vm3, %v2165_v10, %v2167_v25 }
 0x1d8   : > { %2784 = vst.msk [vmem:[%s4241_s10 + $0x4c] sm:$0xf] %vm2764_vm4, %v2719_v28  ;;  %v2528_v2 = vadd.f32 %v4225_v47, %v2460_v58 }
 0x1d9   : > { %v1456_v44 = vpop.f32.mrf.mxu2 }
 0x1da   : > { %v2592_v4 = vmul.f32 0.1, %v2528_v2  ;;  %v1585_v42 = vadd.f32 %v1456_v44, %v1121_v41  ;;  %v1932_v37 = vpop.f32.mrf.mxu3 }
 0x1db   : > { %v1123_v45 = vpop.f32.mrf.mxu1 }
 0x1dc   : > { %v2656_v6 = vmax.f32 %v2528_v2, %v2592_v4  ;;  %v2061_v56 = vadd.f32 %v1932_v37, %v1585_v42  ;;  %v1124_v50 = vadd.f32 %v1123_v45, %v4085_v23  ;;  %v4862_v42 = vshll.u32 %v3875_v48, 16 }
 0x1dd   : > { %v2335_v20 = vpop.f32.mrf.mxu0 }
 0x1de   : > { %v2720_v54 = vpack.c.bf16 %v2656_v6, %v2656_v6  ;;  %v2461_v32 = vadd.f32 %v2332_v46, %v2061_v56  ;;  %1162 = vmatmul.bf16.gmra.mxu1 %v3429_v7  ;;  %1498 = vmatmul.bf16.gmra.mxu2 %v1290_v36  ;;  %v4859_v7 = vshrl.u32 %v3823_v34, 16  ;;  %v1292_v34 = vsel %vm1249_vm1, %v1289_v3, %v1291_v61  ;;  %v3432_v6 = vld [vmem:[%s3556_s7 + $0xb0] sm:$0xff] }
 0x1df   : > { %1974 = vmatmul.bf16.gmra.mxu3 %v1737_v17  ;;  %v1743_v37 = vrot.slane %v4862_v42, 2  ;;  %v1293_v56 = vrot.slane %v3432_v6, 1 }
 0x1e0   : > { %2374 = vmatmul.bf16.gmra.mxu0 %v2166_v0  ;;  %2785 = vst.msk [vmem:[%s4241_s10 + $0x50] sm:$0xf] %vm2764_vm4, %v2720_v54  ;;  %v2529_v19 = vadd.f32 %v4225_v47, %v2461_v32  ;;  %v1738_v35 = vrot.slane %v4859_v7, 1  ;;  %v2169_v0 = vrot.slane %v3432_v6, 2 }
 0x1e1   : > { %v1459_v27 = vpop.f32.mrf.mxu2 }
 0x1e2   : > { %v2593_v59 = vmul.f32 0.1, %v2529_v19  ;;  %v1586_v52 = vadd.f32 %v1459_v27, %v1124_v50  ;;  %v1935_v22 = vpop.f32.mrf.mxu3  ;;  %v1740_v49 = vor.u32 %v1739_v53, %v1738_v35 }
 0x1e3   : > { %v1125_v39 = vpop.f32.mrf.mxu1 }
 0x1e4   : > { %v2657_v62 = vmax.f32 %v2529_v19, %v2593_v59  ;;  %v2062_v43 = vadd.f32 %v1935_v22, %v1586_v52  ;;  %v1126_v21 = vadd.f32 %v1125_v39, %v4097_v8  ;;  %v1741_v46 = vsel %vm1649_vm2, %v1736_v12, %v1740_v49 }
 0x1e5   : > { %v2337_v14 = vpop.f32.mrf.mxu0 }
 0x1e6   : > { %v2721_v26 = vpack.c.bf16 %v2657_v62, %v2657_v62  ;;  %v2462_v55 = vadd.f32 %v2335_v20, %v2062_v43  ;;  %v2170_v62 = vsel %vm2125_vm3, %v2167_v25, %v2169_v0  ;;  %v4864_v25 = vshll.u32 %v3927_v57, 16 }
 0x1e8   : > { %2786 = vst.msk [vmem:[%s4241_s10 + $0x54] sm:$0xf] %vm2764_vm4, %v2721_v26  ;;  %v2530_v23 = vadd.f32 %v4225_v47, %v2462_v55 }
 0x1e9   : > { %v1461_v13 = vpop.f32.mrf.mxu2 }
 0x1ea   : > { %v2594_v1 = vmul.f32 0.1, %v2530_v23  ;;  %v1587_v30 = vadd.f32 %v1461_v13, %v1126_v21  ;;  %v1937_v63 = vpop.f32.mrf.mxu3  ;;  %v1747_v13 = vrot.slane %v4864_v25, 2  ;;  %v4871_v25 = vld [vmem:[#allocation42_spill] sm:$0xff] }
 0x1eb   : > { %v1128_v33 = vpop.f32.mrf.mxu1 }
 0x1ec   : > { %v2658_v15 = vmax.f32 %v2530_v23, %v2594_v1  ;;  %v2063_v31 = vadd.f32 %v1937_v63, %v1587_v30  ;;  %v1129_v5 = vadd.f32 %v1128_v33, %v4111_v18  ;;  %v3433_v63 = vld [vmem:[%s3556_s7 + $0xb8] sm:$0xff] }
 0x1ed   : > { %v2340_v51 = vpop.f32.mrf.mxu0  ;;  %v1295_v33 = vrot.slane %v3433_v63, 1 }
 0x1ee   : > { %v2722_v60 = vpack.c.bf16 %v2658_v15, %v2658_v15  ;;  %v2463_v9 = vadd.f32 %v2337_v14, %v2063_v31  ;;  %1167 = vmatmul.bf16.gmra.mxu1 %v3430_v29  ;;  %1503 = vmatmul.bf16.gmra.mxu2 %v1292_v34  ;;  %v4861_v29 = vshrl.u32 %v3875_v48, 16  ;;  %v1294_v48 = vsel %vm1249_vm1, %v1291_v61, %v1293_v56  ;;  %v4865_v34 = vld [vmem:[#allocation33_spill] sm:$0xff] }
 0x1ef   : > { %1979 = vmatmul.bf16.gmra.mxu3 %v1741_v46 }
 0x1f0   : > { %2379 = vmatmul.bf16.gmra.mxu0 %v2168_v24  ;;  %2787 = vst.msk [vmem:[%s4241_s10 + $0x58] sm:$0xf] %vm2764_vm4, %v2722_v60  ;;  %v2531_v8 = vadd.f32 %v4225_v47, %v2463_v9  ;;  %v1742_v4 = vrot.slane %v4861_v29, 1 }
 0x1f1   : > { %v1464_v28 = vpop.f32.mrf.mxu2 }
 0x1f2   : > { %v2595_v58 = vmul.f32 0.1, %v2531_v8  ;;  %v1588_v3 = vadd.f32 %v1464_v28, %v1129_v5  ;;  %v1940_v2 = vpop.f32.mrf.mxu3  ;;  %v1744_v17 = vor.u32 %v1743_v37, %v1742_v4 }
 0x1f3   : > { %v1130_v41 = vpop.f32.mrf.mxu1 }
 0x1f4   : > { %v2659_v12 = vmax.f32 %v2531_v8, %v2595_v58  ;;  %v2064_v10 = vadd.f32 %v1940_v2, %v1588_v3  ;;  %v1131_v20 = vadd.f32 %v1130_v41, %v4123_v16  ;;  %v1745_v39 = vsel %vm1649_vm2, %v1740_v49, %v1744_v17 }
 0x1f5   : > { %v2342_v44 = vpop.f32.mrf.mxu0 }
 0x1f6   : > { %v2723_v45 = vpack.c.bf16 %v2659_v12, %v2659_v12  ;;  %v2464_v36 = vadd.f32 %v2340_v51, %v2064_v10  ;;  %v2171_v51 = vrot.slane %v3433_v63, 2  ;;  %v4468_v12 = vld [vmem:[%s4708_s2] ss:$0 sm:$0xff] }
 0x1f8   : > { %2788 = vst.msk [vmem:[%s4241_s10 + $0x5c] sm:$0xf] %vm2764_vm4, %v2723_v45  ;;  %v2532_v18 = vadd.f32 %v4225_v47, %v2464_v36  ;;  %v2172_v2 = vsel %vm2125_vm3, %v2169_v0, %v2171_v51 }
 0x1f9   : > { %v1466_v54 = vpop.f32.mrf.mxu2 }
 0x1fa   : > { %v2596_v32 = vmul.f32 0.1, %v2532_v18  ;;  %v1589_v19 = vadd.f32 %v1466_v54, %v1131_v20  ;;  %v1942_v50 = vpop.f32.mrf.mxu3  ;;  %v4867_v20 = vld [vmem:[#allocation2_spill] sm:$0xff] }
 0x1fb   : > { %v1133_v27 = vpop.f32.mrf.mxu1  ;;  %v4869_v54 = vshll.u32 %v4867_v20, 16 }
 0x1fc   : > { %v2660_v59 = vmax.f32 %v2532_v18, %v2596_v32  ;;  %v2065_v52 = vadd.f32 %v1942_v50, %v1589_v19  ;;  %v1134_v7 = vadd.f32 %v1133_v27, %v4137_v40  ;;  %v3435_v27 = vld [vmem:[%s3556_s7 + $0xc0] sm:$0xff] }
 0x1fd   : > { %v2345_v22 = vpop.f32.mrf.mxu0  ;;  %v1751_v32 = vrot.slane %v4869_v54, 2  ;;  %v4876_v54 = vld [vmem:[#allocation11_spill] sm:$0xff] }
 0x1fe   : > { %v2724_v43 = vpack.c.bf16 %v2660_v59, %v2660_v59  ;;  %v2465_v14 = vadd.f32 %v2342_v44, %v2065_v52  ;;  %1172 = vmatmul.bf16.gmra.mxu1 %v3431_v11  ;;  %1508 = vmatmul.bf16.gmra.mxu2 %v1294_v48  ;;  %v4863_v11 = vshrl.u32 %v3927_v57, 16  ;;  %v1296_v57 = vsel %vm1249_vm1, %v1293_v56, %v1295_v33  ;;  %v4866_v44 = vld [vmem:[#allocation36_spill] sm:$0xff]  ;;  %v4870_v52 = vld [vmem:[#allocation39_spill] sm:$0xff] }
 0x1ff   : > { %1984 = vmatmul.bf16.gmra.mxu3 %v1745_v39  ;;  %v1297_v48 = vrot.slane %v3435_v27, 1 }
 0x200   : > { %2384 = vmatmul.bf16.gmra.mxu0 %v2170_v62  ;;  %2789 = vst.msk [vmem:[%s4241_s10 + $0x60] sm:$0xf] %vm2764_vm4, %v2724_v43  ;;  %v2533_v16 = vadd.f32 %v4225_v47, %v2465_v14  ;;  %v1746_v49 = vrot.slane %v4863_v11, 1  ;;  %v2173_v62 = vrot.slane %v3435_v27, 2 }
 0x201   : > { %v1469_v35 = vpop.f32.mrf.mxu2 }
 0x202   : > { %v2597_v38 = vmul.f32 0.1, %v2533_v16  ;;  %v1590_v53 = vadd.f32 %v1469_v35, %v1134_v7  ;;  %v1945_v26 = vpop.f32.mrf.mxu3  ;;  %v1748_v31 = vor.u32 %v1747_v13, %v1746_v49 }
 0x203   : > { %v1135_v55 = vpop.f32.mrf.mxu1 }
 0x204   : > { %v2661_v61 = vmax.f32 %v2533_v16, %v2597_v38  ;;  %v2066_v23 = vadd.f32 %v1945_v26, %v1590_v53  ;;  %v1136_v15 = vadd.f32 %v1135_v55, %v4865_v34  ;;  %v1749_v3 = vsel %vm1649_vm2, %v1744_v17, %v1748_v31 }
 0x205   : > { %v2347_v21 = vpop.f32.mrf.mxu0  ;;  %v4868_v17 = vshrl.u32 %v4867_v20, 16  ;;  %v1298_v38 = vsel %vm1249_vm1, %v1295_v33, %v1297_v48 }
 0x206   : > { %v2725_v1 = vpack.c.bf16 %v2661_v61, %v2661_v61  ;;  %v2466_v30 = vadd.f32 %v2345_v22, %v2066_v23  ;;  %v2174_v23 = vsel %vm2125_vm3, %v2171_v51, %v2173_v62 }
 0x207   : > { %v1750_v0 = vrot.slane %v4868_v17, 1 }
 0x208   : > { %2790 = vst.msk [vmem:[%s4241_s10 + $0x64] sm:$0xf] %vm2764_vm4, %v2725_v1  ;;  %v2534_v40 = vadd.f32 %v4225_v47, %v2466_v30 }
 0x209   : > { %v1471_v46 = vpop.f32.mrf.mxu2  ;;  %v1752_v39 = vor.u32 %v1751_v32, %v1750_v0 }
 0x20a   : > { %v2598_v24 = vmul.f32 0.1, %v2534_v40  ;;  %v1591_v60 = vadd.f32 %v1471_v46, %v1136_v15  ;;  %v1947_v9 = vpop.f32.mrf.mxu3 }
 0x20b   : > { %v1138_v8 = vpop.f32.mrf.mxu1  ;;  %v1753_v61 = vsel %vm1649_vm2, %v1748_v31, %v1752_v39 }
 0x20c   : > { %v2662_v5 = vmax.f32 %v2534_v40, %v2598_v24  ;;  %v2067_v28 = vadd.f32 %v1947_v9, %v1591_v60  ;;  %v1139_v29 = vadd.f32 %v1138_v8, %v4866_v44 }
 0x20d   : > { %v2350_v58 = vpop.f32.mrf.mxu0 }
 0x20e   : > { %v2726_v47 = vpack.c.bf16 %v2662_v5, %v2662_v5  ;;  %v2467_v41 = vadd.f32 %v2347_v21, %v2067_v28  ;;  %1177 = vmatmul.bf16.gmra.mxu1 %v3432_v6  ;;  %1513 = vmatmul.bf16.gmra.mxu2 %v1296_v57  ;;  %v3436_v5 = vld [vmem:[%s3556_s7 + $0xc8] sm:$0xff] }
 0x20f   : > { %1989 = vmatmul.bf16.gmra.mxu3 %v1749_v3  ;;  %v1299_v28 = vrot.slane %v3436_v5, 1  ;;  %v4875_v3 = vld [vmem:[#allocation45_spill] sm:$0xff] }
 0x210   : > { %2389 = vmatmul.bf16.gmra.mxu0 %v2172_v2  ;;  %2791 = vst.msk [vmem:[%s4241_s10 + $0x68] sm:$0xf] %vm2764_vm4, %v2726_v47  ;;  %v2535_v10 = vadd.f32 %v4468_v12, %v2467_v41  ;;  %v2175_v41 = vrot.slane %v3436_v5, 2 }
 0x211   : > { %v1474_v4 = vpop.f32.mrf.mxu2 }
 0x212   : > { %v2599_v42 = vmul.f32 0.1, %v2535_v10  ;;  %v1592_v37 = vadd.f32 %v1474_v4, %v1139_v29  ;;  %v1950_v45 = vpop.f32.mrf.mxu3 }
 0x213   : > { %v1140_v36 = vpop.f32.mrf.mxu1 }
 0x214   : > { %v2663_v6 = vmax.f32 %v2535_v10, %v2599_v42  ;;  %v2068_v56 = vadd.f32 %v1950_v45, %v1592_v37  ;;  %v1141_v22 = vadd.f32 %v1140_v36, %v4870_v52  ;;  %v1300_v37 = vsel %vm1249_vm1, %v1297_v48, %v1299_v28 }
 0x215   : > { %v2352_v18 = vpop.f32.mrf.mxu0 }
 0x216   : > { %v2727_v19 = vpack.c.bf16 %v2663_v6, %v2663_v6  ;;  %v2468_v50 = vadd.f32 %v2350_v58, %v2068_v56 }
 0x218   : > { %2792 = vst.msk [vmem:[%s4241_s10 + $0x6c] sm:$0xf] %vm2764_vm4, %v2727_v19  ;;  %v2536_v59 = vadd.f32 %v4468_v12, %v2468_v50 }
 0x219   : > { %v1476_v43 = vpop.f32.mrf.mxu2 }
 0x21a   : > { %v2600_v14 = vmul.f32 0.1, %v2536_v59  ;;  %v1593_v16 = vadd.f32 %v1476_v43, %v1141_v22  ;;  %v1952_v7 = vpop.f32.mrf.mxu3 }
 0x21b   : > { %v1143_v35 = vpop.f32.mrf.mxu1 }
 0x21c   : > { %v2664_v53 = vmax.f32 %v2536_v59, %v2600_v14  ;;  %v2069_v26 = vadd.f32 %v1952_v7, %v1593_v16  ;;  %v1144_v13 = vadd.f32 %v1143_v35, %v4871_v25 }
 0x21d   : > { %v2355_v55 = vpop.f32.mrf.mxu0 }
 0x21e   : > { %v2728_v21 = vpack.c.bf16 %v2664_v53, %v2664_v53  ;;  %v2469_v11 = vadd.f32 %v2352_v18, %v2069_v26  ;;  %1182 = vmatmul.bf16.gmra.mxu1 %v3433_v63  ;;  %1518 = vmatmul.bf16.gmra.mxu2 %v1298_v38  ;;  %v4872_v63 = vld [vmem:[#allocation3_spill] sm:$0xff]  ;;  %v2176_v18 = vsel %vm2125_vm3, %v2173_v62, %v2175_v41  ;;  %v3437_v53 = vld [vmem:[%s3556_s7 + $0xd0] sm:$0xff] }
 0x21f   : > { %1994 = vmatmul.bf16.gmra.mxu3 %v1753_v61  ;;  %v4873_v46 = vshrl.u32 %v4872_v63, 16  ;;  %v4874_v60 = vshll.u32 %v4872_v63, 16  ;;  %v1301_v26 = vrot.slane %v3437_v53, 1  ;;  %v4880_v61 = vld [vmem:[#allocation13_spill] sm:$0xff] }
 0x220   : > { %2394 = vmatmul.bf16.gmra.mxu0 %v2174_v23  ;;  %2793 = vst.msk [vmem:[%s4241_s10 + $0x70] sm:$0xf] %vm2764_vm4, %v2728_v21  ;;  %v2537_v49 = vadd.f32 %v4468_v12, %v2469_v11  ;;  %v2177_v11 = vrot.slane %v3437_v53, 2 }
 0x221   : > { %v1479_v1 = vpop.f32.mrf.mxu2  ;;  %v1754_v24 = vrot.slane %v4873_v46, 1  ;;  %v1755_v9 = vrot.slane %v4874_v60, 2  ;;  %v4881_v60 = vld [vmem:[#allocation15_spill] sm:$0xff] }
 0x222   : > { %v2601_v30 = vmul.f32 0.1, %v2537_v49  ;;  %v1594_v33 = vadd.f32 %v1479_v1, %v1144_v13  ;;  %v1955_v40 = vpop.f32.mrf.mxu3 }
 0x223   : > { %v1145_v34 = vpop.f32.mrf.mxu1  ;;  %v1756_v47 = vor.u32 %v1755_v9, %v1754_v24 }
 0x224   : > { %v2665_v15 = vmax.f32 %v2537_v49, %v2601_v30  ;;  %v2070_v31 = vadd.f32 %v1955_v40, %v1594_v33  ;;  %v1146_v2 = vadd.f32 %v1145_v34, %v4875_v3  ;;  %v1302_v33 = vsel %vm1249_vm1, %v1299_v28, %v1301_v26 }
 0x225   : > { %v2357_v51 = vpop.f32.mrf.mxu0  ;;  %v1757_v56 = vsel %vm1649_vm2, %v1752_v39, %v1756_v47 }
 0x226   : > { %v2729_v8 = vpack.c.bf16 %v2665_v15, %v2665_v15  ;;  %v2470_v57 = vadd.f32 %v2355_v55, %v2070_v31 }
 0x228   : > { %2794 = vst.msk [vmem:[%s4241_s10 + $0x74] sm:$0xf] %vm2764_vm4, %v2729_v8  ;;  %v2538_v58 = vadd.f32 %v4468_v12, %v2470_v57 }
 0x229   : > { %v1481_v10 = vpop.f32.mrf.mxu2 }
 0x22a   : > { %v2602_v44 = vmul.f32 0.1, %v2538_v58  ;;  %v1595_v29 = vadd.f32 %v1481_v10, %v1146_v2  ;;  %v1957_v4 = vpop.f32.mrf.mxu3 }
 0x22b   : > { %v1148_v42 = vpop.f32.mrf.mxu1 }
 0x22c   : > { %v2666_v45 = vmax.f32 %v2538_v58, %v2602_v44  ;;  %v2071_v36 = vadd.f32 %v1957_v4, %v1595_v29  ;;  %v1149_v32 = vadd.f32 %v1148_v42, %v4876_v54 }
 0x22d   : > { %v2360_v6 = vpop.f32.mrf.mxu0 }
 0x22e   : > { %v2730_v20 = vpack.c.bf16 %v2666_v45, %v2666_v45  ;;  %v2471_v17 = vadd.f32 %v2357_v51, %v2071_v36  ;;  %1187 = vmatmul.bf16.gmra.mxu1 %v3435_v27  ;;  %1523 = vmatmul.bf16.gmra.mxu2 %v1300_v37  ;;  %v4877_v27 = vld [vmem:[#allocation4_spill] sm:$0xff]  ;;  %v2178_v51 = vsel %vm2125_vm3, %v2175_v41, %v2177_v11  ;;  %v3438_v45 = vld [vmem:[%s3556_s7 + $0xd8] sm:$0xff] }
 0x22f   : > { %1999 = vmatmul.bf16.gmra.mxu3 %v1757_v56  ;;  %v4878_v43 = vshrl.u32 %v4877_v27, 16  ;;  %v4879_v16 = vshll.u32 %v4877_v27, 16  ;;  %v1303_v36 = vrot.slane %v3438_v45, 1  ;;  %v4885_v56 = vld [vmem:[#allocation17_spill] sm:$0xff] }
 0x230   : > { %2399 = vmatmul.bf16.gmra.mxu0 %v2176_v18  ;;  %2795 = vst.msk [vmem:[%s4241_s10 + $0x78] sm:$0xf] %vm2764_vm4, %v2730_v20  ;;  %v2539_v0 = vadd.f32 %v4468_v12, %v2471_v17  ;;  %v2179_v17 = vrot.slane %v3438_v45, 2 }
 0x231   : > { %v1484_v19 = vpop.f32.mrf.mxu2  ;;  %v1758_v14 = vrot.slane %v4878_v43, 1  ;;  %v1759_v7 = vrot.slane %v4879_v16, 2  ;;  %v4886_v16 = vld [vmem:[#allocation19_spill] sm:$0xff] }
 0x232   : > { %v2603_v50 = vmul.f32 0.1, %v2539_v0  ;;  %v1596_v48 = vadd.f32 %v1484_v19, %v1149_v32  ;;  %v1960_v59 = vpop.f32.mrf.mxu3 }
 0x233   : > { %v1150_v52 = vpop.f32.mrf.mxu1  ;;  %v1760_v21 = vor.u32 %v1759_v7, %v1758_v14 }
 0x234   : > { %v2667_v22 = vmax.f32 %v2539_v0, %v2603_v50  ;;  %v2072_v39 = vadd.f32 %v1960_v59, %v1596_v48  ;;  %v1151_v23 = vadd.f32 %v1150_v52, %v4880_v61  ;;  %v1304_v48 = vsel %vm1249_vm1, %v1301_v26, %v1303_v36 }
 0x235   : > { %v2362_v62 = vpop.f32.mrf.mxu0  ;;  %v1761_v31 = vsel %vm1649_vm2, %v1756_v47, %v1760_v21 }
 0x236   : > { %v2731_v35 = vpack.c.bf16 %v2667_v22, %v2667_v22  ;;  %v2472_v38 = vadd.f32 %v2360_v6, %v2072_v39 }
 0x238   : > { %2796 = vst.msk [vmem:[%s4241_s10 + $0x7c] sm:$0xf] %vm2764_vm4, %v2731_v35  ;;  %v2540_v55 = vadd.f32 %v4468_v12, %v2472_v38 }
 0x239   : > { %v1486_v49 = vpop.f32.mrf.mxu2 }
 0x23a   : > { %v2604_v25 = vmul.f32 0.1, %v2540_v55  ;;  %v1597_v13 = vadd.f32 %v1486_v49, %v1151_v23  ;;  %v1962_v1 = vpop.f32.mrf.mxu3 }
 0x23b   : > { %v1153_v30 = vpop.f32.mrf.mxu1 }
 0x23c   : > { %v2668_v40 = vmax.f32 %v2540_v55, %v2604_v25  ;;  %v2073_v34 = vadd.f32 %v1962_v1, %v1597_v13  ;;  %v1154_v9 = vadd.f32 %v1153_v30, %v4881_v60 }
 0x23d   : > { %v2365_v15 = vpop.f32.mrf.mxu0 }
 0x23e   : > { %v2732_v63 = vpack.c.bf16 %v2668_v40, %v2668_v40  ;;  %v2473_v46 = vadd.f32 %v2362_v62, %v2073_v34  ;;  %1192 = vmatmul.bf16.gmra.mxu1 %v3436_v5  ;;  %1528 = vmatmul.bf16.gmra.mxu2 %v1302_v33  ;;  %v4882_v5 = vld [vmem:[#allocation5_spill] sm:$0xff]  ;;  %v2180_v62 = vsel %vm2125_vm3, %v2177_v11, %v2179_v17  ;;  %v3439_v40 = vld [vmem:[%s3556_s7 + $0xe0] sm:$0xff] }
 0x23f   : > { %2004 = vmatmul.bf16.gmra.mxu3 %v1761_v31  ;;  %v4883_v10 = vshrl.u32 %v4882_v5, 16  ;;  %v4884_v29 = vshll.u32 %v4882_v5, 16  ;;  %v1305_v34 = vrot.slane %v3439_v40, 1  ;;  %v4890_v31 = vld [vmem:[#allocation21_spill] sm:$0xff] }
 0x240   : > { %2404 = vmatmul.bf16.gmra.mxu0 %v2178_v51  ;;  %2797 = vst.msk [vmem:[%s4241_s10 + $0x80] sm:$0xf] %vm2764_vm4, %v2732_v63  ;;  %v2541_v24 = vadd.f32 %v4468_v12, %v2473_v46  ;;  %v2181_v46 = vrot.slane %v3439_v40, 2 }
 0x241   : > { %v1489_v8 = vpop.f32.mrf.mxu2  ;;  %v1762_v44 = vrot.slane %v4883_v10, 1  ;;  %v1763_v4 = vrot.slane %v4884_v29, 2  ;;  %v4891_v29 = vld [vmem:[#allocation23_spill] sm:$0xff] }
 0x242   : > { %v2605_v57 = vmul.f32 0.1, %v2541_v24  ;;  %v1598_v28 = vadd.f32 %v1489_v8, %v1154_v9  ;;  %v1965_v58 = vpop.f32.mrf.mxu3 }
 0x243   : > { %v1155_v3 = vpop.f32.mrf.mxu1  ;;  %v1764_v20 = vor.u32 %v1763_v4, %v1762_v44 }
 0x244   : > { %v2669_v2 = vmax.f32 %v2541_v24, %v2605_v57  ;;  %v2074_v47 = vadd.f32 %v1965_v58, %v1598_v28  ;;  %v1156_v18 = vadd.f32 %v1155_v3, %v4885_v56  ;;  %v1306_v28 = vsel %vm1249_vm1, %v1303_v36, %v1305_v34 }
 0x245   : > { %v2367_v41 = vpop.f32.mrf.mxu0  ;;  %v1765_v39 = vsel %vm1649_vm2, %v1760_v21, %v1764_v20 }
 0x246   : > { %v2733_v42 = vpack.c.bf16 %v2669_v2, %v2669_v2  ;;  %v2474_v37 = vadd.f32 %v2365_v15, %v2074_v47 }
 0x248   : > { %2798 = vst.msk [vmem:[%s4241_s10 + $0x84] sm:$0xf] %vm2764_vm4, %v2733_v42  ;;  %v2542_v6 = vadd.f32 %v4468_v12, %v2474_v37 }
 0x249   : > { %v1491_v0 = vpop.f32.mrf.mxu2 }
 0x24a   : > { %v2606_v54 = vmul.f32 0.1, %v2542_v6  ;;  %v1599_v32 = vadd.f32 %v1491_v0, %v1156_v18  ;;  %v1967_v19 = vpop.f32.mrf.mxu3 }
 0x24b   : > { %v1158_v50 = vpop.f32.mrf.mxu1 }
 0x24c   : > { %v2670_v59 = vmax.f32 %v2542_v6, %v2606_v54  ;;  %v2075_v52 = vadd.f32 %v1967_v19, %v1599_v32  ;;  %v1159_v7 = vadd.f32 %v1158_v50, %v4886_v16 }
 0x24d   : > { %v2370_v22 = vpop.f32.mrf.mxu0 }
 0x24e   : > { %v2734_v27 = vpack.c.bf16 %v2670_v59, %v2670_v59  ;;  %v2475_v43 = vadd.f32 %v2367_v41, %v2075_v52  ;;  %1197 = vmatmul.bf16.gmra.mxu1 %v3437_v53  ;;  %1533 = vmatmul.bf16.gmra.mxu2 %v1304_v48  ;;  %v4887_v53 = vld [vmem:[#allocation6_spill] sm:$0xff]  ;;  %v2182_v41 = vsel %vm2125_vm3, %v2179_v17, %v2181_v46  ;;  %v3440_v59 = vld [vmem:[%s3556_s7 + $0xe8] sm:$0xff] }
 0x24f   : > { %2009 = vmatmul.bf16.gmra.mxu3 %v1765_v39  ;;  %v4888_v49 = vshrl.u32 %v4887_v53, 16  ;;  %v4889_v13 = vshll.u32 %v4887_v53, 16  ;;  %v1307_v52 = vrot.slane %v3440_v59, 1  ;;  %v4895_v39 = vld [vmem:[#allocation25_spill] sm:$0xff] }
 0x250   : > { %2409 = vmatmul.bf16.gmra.mxu0 %v2180_v62  ;;  %2799 = vst.msk [vmem:[%s4241_s10 + $0x88] sm:$0xf] %vm2764_vm4, %v2734_v27  ;;  %v2543_v14 = vadd.f32 %v4468_v12, %v2475_v43  ;;  %v2183_v43 = vrot.slane %v3440_v59, 2 }
 0x251   : > { %v1494_v35 = vpop.f32.mrf.mxu2  ;;  %v1766_v25 = vrot.slane %v4888_v49, 1  ;;  %v1767_v1 = vrot.slane %v4889_v13, 2  ;;  %v4896_v13 = vld [vmem:[#allocation27_spill] sm:$0xff] }
 0x252   : > { %v2607_v38 = vmul.f32 0.1, %v2543_v14  ;;  %v1600_v26 = vadd.f32 %v1494_v35, %v1159_v7  ;;  %v1970_v55 = vpop.f32.mrf.mxu3 }
 0x253   : > { %v1160_v61 = vpop.f32.mrf.mxu1  ;;  %v1768_v63 = vor.u32 %v1767_v1, %v1766_v25 }
 0x254   : > { %v2671_v23 = vmax.f32 %v2543_v14, %v2607_v38  ;;  %v2076_v21 = vadd.f32 %v1970_v55, %v1600_v26  ;;  %v1161_v51 = vadd.f32 %v1160_v61, %v4890_v31  ;;  %v1308_v26 = vsel %vm1249_vm1, %v1305_v34, %v1307_v52 }
 0x255   : > { %v2372_v11 = vpop.f32.mrf.mxu0  ;;  %v1769_v47 = vsel %vm1649_vm2, %v1764_v20, %v1768_v63 }
 0x256   : > { %v2735_v30 = vpack.c.bf16 %v2671_v23, %v2671_v23  ;;  %v2476_v33 = vadd.f32 %v2370_v22, %v2076_v21 }
 0x258   : > { %2800 = vst.msk [vmem:[%s4241_s10 + $0x8c] sm:$0xf] %vm2764_vm4, %v2735_v30  ;;  %v2544_v15 = vadd.f32 %v4468_v12, %v2476_v33 }
 0x259   : > { %v1496_v24 = vpop.f32.mrf.mxu2 }
 0x25a   : > { %v2608_v60 = vmul.f32 0.1, %v2544_v15  ;;  %v1601_v9 = vadd.f32 %v1496_v24, %v1161_v51  ;;  %v1972_v8 = vpop.f32.mrf.mxu3 }
 0x25b   : > { %v1163_v57 = vpop.f32.mrf.mxu1 }
 0x25c   : > { %v2672_v58 = vmax.f32 %v2544_v15, %v2608_v60  ;;  %v2077_v3 = vadd.f32 %v1972_v8, %v1601_v9  ;;  %v1164_v4 = vadd.f32 %v1163_v57, %v4891_v29 }
 0x25d   : > { %v2375_v2 = vpop.f32.mrf.mxu0 }
 0x25e   : > { %v2736_v5 = vpack.c.bf16 %v2672_v58, %v2672_v58  ;;  %v2477_v10 = vadd.f32 %v2372_v11, %v2077_v3  ;;  %1202 = vmatmul.bf16.gmra.mxu1 %v3438_v45  ;;  %1538 = vmatmul.bf16.gmra.mxu2 %v1306_v28  ;;  %v4892_v45 = vld [vmem:[#allocation7_spill] sm:$0xff]  ;;  %v2184_v11 = vsel %vm2125_vm3, %v2181_v46, %v2183_v43  ;;  %v3441_v58 = vld [vmem:[%s3556_s7 + $0xf0] sm:$0xff] }
 0x25f   : > { %2014 = vmatmul.bf16.gmra.mxu3 %v1769_v47  ;;  %v4893_v0 = vshrl.u32 %v4892_v45, 16  ;;  %v4894_v32 = vshll.u32 %v4892_v45, 16  ;;  %v1309_v3 = vrot.slane %v3441_v58, 1  ;;  %v4900_v47 = vld [vmem:[#allocation29_spill] sm:$0xff] }
 0x260   : > { %2414 = vmatmul.bf16.gmra.mxu0 %v2182_v41  ;;  %2801 = vst.msk [vmem:[%s4241_s10 + $0x90] sm:$0xf] %vm2764_vm4, %v2736_v5  ;;  %v2545_v44 = vadd.f32 %v4468_v12, %v2477_v10  ;;  %v2185_v10 = vrot.slane %v3441_v58, 2 }
 0x261   : > { %v1499_v42 = vpop.f32.mrf.mxu2  ;;  %v1770_v54 = vrot.slane %v4893_v0, 1  ;;  %v1771_v19 = vrot.slane %v4894_v32, 2  ;;  %v4901_v32 = vld [vmem:[#allocation31_spill] sm:$0xff] }
 0x262   : > { %v2609_v37 = vmul.f32 0.1, %v2545_v44  ;;  %v1602_v36 = vadd.f32 %v1499_v42, %v1164_v4  ;;  %v1975_v6 = vpop.f32.mrf.mxu3 }
 0x263   : > { %v1165_v56 = vpop.f32.mrf.mxu1  ;;  %v1772_v27 = vor.u32 %v1771_v19, %v1770_v54 }
 0x264   : > { %v2673_v18 = vmax.f32 %v2545_v44, %v2609_v37  ;;  %v2078_v20 = vadd.f32 %v1975_v6, %v1602_v36  ;;  %v1166_v62 = vadd.f32 %v1165_v56, %v4895_v39  ;;  %v1310_v36 = vsel %vm1249_vm1, %v1307_v52, %v1309_v3 }
 0x265   : > { %v2377_v17 = vpop.f32.mrf.mxu0  ;;  %v1773_v21 = vsel %vm1649_vm2, %v1768_v63, %v1772_v27 }
 0x266   : > { %v2737_v50 = vpack.c.bf16 %v2673_v18, %v2673_v18  ;;  %v2478_v48 = vadd.f32 %v2375_v2, %v2078_v20 }
 0x268   : > { %2802 = vst.msk [vmem:[%s4241_s10 + $0x94] sm:$0xf] %vm2764_vm4, %v2737_v50  ;;  %v2546_v22 = vadd.f32 %v4468_v12, %v2478_v48 }
 0x269   : > { %v1501_v14 = vpop.f32.mrf.mxu2 }
 0x26a   : > { %v2610_v16 = vmul.f32 0.1, %v2546_v22  ;;  %v1603_v7 = vadd.f32 %v1501_v14, %v1166_v62  ;;  %v1977_v35 = vpop.f32.mrf.mxu3  ;;  %v4902_v62 = vld [vmem:[#allocation9_spill] sm:$0xff] }
 0x26b   : > { %v1168_v38 = vpop.f32.mrf.mxu1 }
 0x26c   : > { %v2674_v55 = vmax.f32 %v2546_v22, %v2610_v16  ;;  %v2079_v61 = vadd.f32 %v1977_v35, %v1603_v7  ;;  %v1169_v1 = vadd.f32 %v1168_v38, %v4896_v13  ;;  %v1628_v38 = vld [vmem:[%s3556_s7 + $0x100] sm:$0x3] }
 0x26d   : > { %v2380_v23 = vpop.f32.mrf.mxu0  ;;  %v1647_v13 = vunpack.c.l.b16 %v1628_v38  ;;  %v4909_v38 = vld [vmem:[#allocation43_spill] sm:$0xff] }
 0x26e   : > { %v2738_v53 = vpack.c.bf16 %v2674_v55, %v2674_v55  ;;  %v2479_v49 = vadd.f32 %v2377_v17, %v2079_v61  ;;  %1207 = vmatmul.bf16.gmra.mxu1 %v3439_v40  ;;  %1543 = vmatmul.bf16.gmra.mxu2 %v1308_v26  ;;  %v4897_v40 = vld [vmem:[#allocation8_spill] sm:$0xff]  ;;  %v2186_v17 = vsel %vm2125_vm3, %v2183_v43, %v2185_v10  ;;  %v4904_v43 = vshll.u32 %v4902_v62, 16  ;;  %v3442_v61 = vld [vmem:[%s3556_s7 + $0xf8] sm:$0xff] }
 0x26f   : > { %2019 = vmatmul.bf16.gmra.mxu3 %v1773_v21  ;;  %v4898_v24 = vshrl.u32 %v4897_v40, 16  ;;  %v4899_v9 = vshll.u32 %v4897_v40, 16 }
 0x270   : > { %2419 = vmatmul.bf16.gmra.mxu0 %v2184_v11  ;;  %2803 = vst.msk [vmem:[%s4241_s10 + $0x98] sm:$0xf] %vm2764_vm4, %v2738_v53  ;;  %v2547_v25 = vadd.f32 %v4468_v12, %v2479_v49  ;;  %v1779_v14 = vrot.slane %v4904_v43, 2  ;;  %v4905_v53 = vld [vmem:[#allocation34_spill] sm:$0xff] }
 0x271   : > { %v1504_v30 = vpop.f32.mrf.mxu2  ;;  %v1774_v60 = vrot.slane %v4898_v24, 1  ;;  %v1775_v8 = vrot.slane %v4899_v9, 2 }
 0x272   : > { %v2611_v33 = vmul.f32 0.1, %v2547_v25  ;;  %v1604_v34 = vadd.f32 %v1504_v30, %v1169_v1  ;;  %v1980_v15 = vpop.f32.mrf.mxu3 }
 0x273   : > { %v1170_v31 = vpop.f32.mrf.mxu1  ;;  %v1776_v5 = vor.u32 %v1775_v8, %v1774_v60  ;;  %v1648_v60 = vpack.c.b16 %v1647_v13, %v1647_v13 }
 0x274   : > { %v2675_v51 = vmax.f32 %v2547_v25, %v2611_v33  ;;  %v2080_v63 = vadd.f32 %v1980_v15, %v1604_v34  ;;  %v1171_v41 = vadd.f32 %v1170_v31, %v4900_v47  ;;  %v2187_v25 = vrot.slane %v3442_v61, 2 }
 0x275   : > { %v2382_v46 = vpop.f32.mrf.mxu0  ;;  %v1777_v20 = vsel %vm1649_vm2, %v1772_v27, %v1776_v5  ;;  %v4903_v27 = vshrl.u32 %v4902_v62, 16  ;;  %v1786_v47 = vshll.u32 %v1648_v60, 16 }
 0x276   : > { %v2739_v57 = vpack.c.bf16 %v2675_v51, %v2675_v51  ;;  %v2480_v28 = vadd.f32 %v2380_v23, %v2080_v63  ;;  %v1311_v23 = vrot.slane %v3442_v61, 1  ;;  %v2188_v24 = vsel %vm2125_vm3, %v2185_v10, %v2187_v25 }
 0x278   : > { %2804 = vst.msk [vmem:[%s4241_s10 + $0x9c] sm:$0xf] %vm2764_vm4, %v2739_v57  ;;  %v2548_v2 = vadd.f32 %v4468_v12, %v2480_v28  ;;  %v1312_v31 = vsel %vm1249_vm1, %v1309_v3, %v1311_v23  ;;  %v4906_v28 = vld [vmem:[#allocation37_spill] sm:$0xff] }
 0x279   : > { %v1506_v44 = vpop.f32.mrf.mxu2 }
 0x27a   : > { %v2612_v29 = vmul.f32 0.1, %v2548_v2  ;;  %v1605_v4 = vadd.f32 %v1506_v44, %v1171_v41  ;;  %v1982_v42 = vpop.f32.mrf.mxu3 }
 0x27b   : > { %v1173_v37 = vpop.f32.mrf.mxu1 }
 0x27c   : > { %v2676_v6 = vmax.f32 %v2548_v2, %v2612_v29  ;;  %v2081_v56 = vadd.f32 %v1982_v42, %v1605_v4  ;;  %v1174_v19 = vadd.f32 %v1173_v37, %v4901_v32  ;;  %v1783_v2 = vshrl.u32 %v1648_v60, 16 }
 0x27d   : > { %v2385_v18 = vpop.f32.mrf.mxu0  ;;  %v2189_v32 = vrot.slane %v1648_v60, 2 }
 0x27e   : > { %v2740_v45 = vpack.c.bf16 %v2676_v6, %v2676_v6  ;;  %v2481_v0 = vadd.f32 %v2382_v46, %v2081_v56  ;;  %1212 = vmatmul.bf16.gmra.mxu1 %v3440_v59  ;;  %1548 = vmatmul.bf16.gmra.mxu2 %v1310_v36  ;;  %v1778_v59 = vrot.slane %v4903_v27, 1  ;;  %v1785_v37 = vrot.slane %v1783_v2, 1 }
 0x27f   : > { %2024 = vmatmul.bf16.gmra.mxu3 %v1777_v20  ;;  %v1788_v36 = vrot.slane %v1786_v47, 2 }
 0x280   : > { %2424 = vmatmul.bf16.gmra.mxu0 %v2186_v17  ;;  %2805 = vst.msk [vmem:[%s4241_s10 + $0xa0] sm:$0xf] %vm2764_vm4, %v2740_v45  ;;  %v2549_v54 = vadd.f32 %v4468_v12, %v2481_v0  ;;  %v1780_v21 = vor.u32 %v1779_v14, %v1778_v59  ;;  %v4908_v45 = vld [vmem:[#allocation40_spill] sm:$0xff]  ;;  %v2190_v14 = vsel %vm2125_vm3, %v2187_v25, %v2189_v32 }
 0x281   : > { %v1509_v50 = vpop.f32.mrf.mxu2 }
 0x282   : > { %v2613_v48 = vmul.f32 0.1, %v2549_v54  ;;  %v1606_v52 = vadd.f32 %v1509_v50, %v1174_v19  ;;  %v1985_v22 = vpop.f32.mrf.mxu3  ;;  %v1781_v51 = vsel %vm1649_vm2, %v1776_v5, %v1780_v21 }
 0x283   : > { %v1175_v39 = vpop.f32.mrf.mxu1 }
 0x284   : > { %v2677_v16 = vmax.f32 %v2549_v54, %v2613_v48  ;;  %v2082_v7 = vadd.f32 %v1985_v22, %v1606_v52  ;;  %v1176_v49 = vadd.f32 %v1175_v39, %v4905_v53  ;;  %v1789_v54 = vor.u32 %v1788_v36, %v1785_v37  ;;  %v4912_v36 = vld [vmem:[#allocation14_spill] sm:$0xff] }
 0x285   : > { %v2387_v35 = vpop.f32.mrf.mxu0 }
 0x286   : > { %v2741_v26 = vpack.c.bf16 %v2677_v16, %v2677_v16  ;;  %v2482_v55 = vadd.f32 %v2385_v18, %v2082_v7  ;;  %v4907_v18 = vld [vmem:[#allocation10_spill] sm:$0xff]  ;;  %v1790_v43 = vsel %vm1649_vm2, %v1780_v21, %v1789_v54 }
 0x287   : > { %v1313_v20 = vrot.slane %v4907_v18, 1 }
 0x288   : > { %2806 = vst.msk [vmem:[%s4241_s10 + $0xa4] sm:$0xf] %vm2764_vm4, %v2741_v26  ;;  %v2550_v11 = vadd.f32 %v4468_v12, %v2482_v55 }
 0x289   : > { %v1511_v1 = vpop.f32.mrf.mxu2  ;;  %v1314_v39 = vsel %vm1249_vm1, %v1311_v23, %v1313_v20 }
 0x28a   : > { %v2614_v30 = vmul.f32 0.1, %v2550_v11  ;;  %v1607_v33 = vadd.f32 %v1511_v1, %v1176_v49  ;;  %v1987_v34 = vpop.f32.mrf.mxu3 }
 0x28b   : > { %v1178_v15 = vpop.f32.mrf.mxu1 }
 0x28c   : > { %v2678_v63 = vmax.f32 %v2550_v11, %v2614_v30  ;;  %v2083_v46 = vadd.f32 %v1987_v34, %v1607_v33  ;;  %v1179_v3 = vadd.f32 %v1178_v15, %v4906_v28  ;;  %v4910_v33 = vld [vmem:[#allocation46_spill] sm:$0xff]  ;;  %v4911_v28 = vld [vmem:[#allocation12_spill] sm:$0xff] }
 0x28d   : > { %v2390_v40 = vpop.f32.mrf.mxu0 }
 0x28e   : > { %v2742_v9 = vpack.c.bf16 %v2678_v63, %v2678_v63  ;;  %v2483_v8 = vadd.f32 %v2387_v35, %v2083_v46  ;;  %1217 = vmatmul.bf16.gmra.mxu1 %v3441_v58  ;;  %1553 = vmatmul.bf16.gmra.mxu2 %v1312_v31 }
 0x28f   : > { %2029 = vmatmul.bf16.gmra.mxu3 %v1781_v51 }
 0x290   : > { %2429 = vmatmul.bf16.gmra.mxu0 %v2188_v24  ;;  %2807 = vst.msk [vmem:[%s4241_s10 + $0xa8] sm:$0xf] %vm2764_vm4, %v2742_v9  ;;  %v2551_v57 = vadd.f32 %v4468_v12, %v2483_v8 }
 0x291   : > { %v1514_v41 = vpop.f32.mrf.mxu2 }
 0x292   : > { %v2615_v5 = vmul.f32 0.1, %v2551_v57  ;;  %v1608_v44 = vadd.f32 %v1514_v41, %v1179_v3  ;;  %v1990_v10 = vpop.f32.mrf.mxu3 }
 0x293   : > { %v1180_v29 = vpop.f32.mrf.mxu1 }
 0x294   : > { %v2679_v4 = vmax.f32 %v2551_v57, %v2615_v5  ;;  %v2084_v42 = vadd.f32 %v1990_v10, %v1608_v44  ;;  %v1181_v0 = vadd.f32 %v1180_v29, %v4908_v45 }
 0x295   : > { %v2392_v58 = vpop.f32.mrf.mxu0 }
 0x296   : > { %v2743_v6 = vpack.c.bf16 %v2679_v4, %v2679_v4  ;;  %v2484_v56 = vadd.f32 %v2390_v40, %v2084_v42 }
 0x298   : > { %2808 = vst.msk [vmem:[%s4241_s10 + $0xac] sm:$0xf] %vm2764_vm4, %v2743_v6  ;;  %v2552_v17 = vadd.f32 %v4468_v12, %v2484_v56 }
 0x299   : > { %v1516_v19 = vpop.f32.mrf.mxu2 }
 0x29a   : > { %v2616_v50 = vmul.f32 0.1, %v2552_v17  ;;  %v1609_v48 = vadd.f32 %v1516_v19, %v1181_v0  ;;  %v1992_v52 = vpop.f32.mrf.mxu3 }
 0x29b   : > { %v1183_v22 = vpop.f32.mrf.mxu1 }
 0x29c   : > { %v2680_v62 = vmax.f32 %v2552_v17, %v2616_v50  ;;  %v2085_v27 = vadd.f32 %v1992_v52, %v1609_v48  ;;  %v1184_v26 = vadd.f32 %v1183_v22, %v4909_v38  ;;  %v4913_v52 = vld [vmem:[#allocation16_spill] sm:$0xff] }
 0x29d   : > { %v2395_v59 = vpop.f32.mrf.mxu0 }
 0x29e   : > { %v2744_v16 = vpack.c.bf16 %v2680_v62, %v2680_v62  ;;  %v2485_v7 = vadd.f32 %v2392_v58, %v2085_v27  ;;  %1222 = vmatmul.bf16.gmra.mxu1 %v3442_v61  ;;  %1558 = vmatmul.bf16.gmra.mxu2 %v1314_v39 }
 0x29f   : > { %2034 = vmatmul.bf16.gmra.mxu3 %v1790_v43 }
 0x2a0   : > { %2434 = vmatmul.bf16.gmra.mxu0 %v2190_v14  ;;  %2809 = vst.msk [vmem:[%s4241_s10 + $0xb0] sm:$0xf] %vm2764_vm4, %v2744_v16  ;;  %v2553_v35 = vadd.f32 %v4468_v12, %v2485_v7 }
 0x2a1   : > { %v1519_v55 = vpop.f32.mrf.mxu2 }
 0x2a2   : > { %v2617_v23 = vmul.f32 0.1, %v2553_v35  ;;  %v1610_v11 = vadd.f32 %v1519_v55, %v1184_v26  ;;  %v1995_v53 = vpop.f32.mrf.mxu3  ;;  %v4914_v55 = vld [vmem:[#allocation18_spill] sm:$0xff] }
 0x2a3   : > { %v1185_v21 = vpop.f32.mrf.mxu1 }
 0x2a4   : > { %v2681_v49 = vmax.f32 %v2553_v35, %v2617_v23  ;;  %v2086_v25 = vadd.f32 %v1995_v53, %v1610_v11  ;;  %v1186_v34 = vadd.f32 %v1185_v21, %v4910_v33 }
 0x2a5   : > { %v2397_v13 = vpop.f32.mrf.mxu0 }
 0x2a6   : > { %v2745_v61 = vpack.c.bf16 %v2681_v49, %v2681_v49  ;;  %v2486_v1 = vadd.f32 %v2395_v59, %v2086_v25 }
 0x2a8   : > { %2810 = vst.msk [vmem:[%s4241_s10 + $0xb4] sm:$0xf] %vm2764_vm4, %v2745_v61  ;;  %v2554_v30 = vadd.f32 %v4468_v12, %v2486_v1 }
 0x2a9   : > { %v1521_v15 = vpop.f32.mrf.mxu2 }
 0x2aa   : > { %v2618_v31 = vmul.f32 0.1, %v2554_v30  ;;  %v1611_v51 = vadd.f32 %v1521_v15, %v1186_v34  ;;  %v1997_v63 = vpop.f32.mrf.mxu3  ;;  %v4915_v15 = vld [vmem:[#allocation20_spill] sm:$0xff] }
 0x2ab   : > { %v1188_v46 = vpop.f32.mrf.mxu1 }
 0x2ac   : > { %v2682_v40 = vmax.f32 %v2554_v30, %v2618_v31  ;;  %v2087_v24 = vadd.f32 %v1997_v63, %v1611_v51  ;;  %v1189_v3 = vadd.f32 %v1188_v46, %v4911_v28 }
 0x2ad   : > { %v2400_v60 = vpop.f32.mrf.mxu0 }
 0x2ae   : > { %v2746_v9 = vpack.c.bf16 %v2682_v40, %v2682_v40  ;;  %v2487_v8 = vadd.f32 %v2397_v13, %v2087_v24 }
 0x2b0   : > { %2811 = vst.msk [vmem:[%s4241_s10 + $0xb8] sm:$0xf] %vm2764_vm4, %v2746_v9  ;;  %v2555_v57 = vadd.f32 %v4468_v12, %v2487_v8 }
 0x2b1   : > { %v1524_v2 = vpop.f32.mrf.mxu2 }
 0x2b2   : > { %v2619_v47 = vmul.f32 0.1, %v2555_v57  ;;  %v1612_v41 = vadd.f32 %v1524_v2, %v1189_v3  ;;  %v2000_v5 = vpop.f32.mrf.mxu3  ;;  %v4916_v2 = vld [vmem:[#allocation22_spill] sm:$0xff] }
 0x2b3   : > { %v1190_v44 = vpop.f32.mrf.mxu1 }
 0x2b4   : > { %v2683_v10 = vmax.f32 %v2555_v57, %v2619_v47  ;;  %v2088_v29 = vadd.f32 %v2000_v5, %v1612_v41  ;;  %v1191_v6 = vadd.f32 %v1190_v44, %v4912_v36 }
 0x2b5   : > { %v2402_v4 = vpop.f32.mrf.mxu0 }
 0x2b6   : > { %v2747_v42 = vpack.c.bf16 %v2683_v10, %v2683_v10  ;;  %v2488_v58 = vadd.f32 %v2400_v60, %v2088_v29 }
 0x2b8   : > { %2812 = vst.msk [vmem:[%s4241_s10 + $0xbc] sm:$0xf] %vm2764_vm4, %v2747_v42  ;;  %v2556_v37 = vadd.f32 %v4468_v12, %v2488_v58 }
 0x2b9   : > { %v1526_v56 = vpop.f32.mrf.mxu2 }
 0x2ba   : > { %v2620_v18 = vmul.f32 0.1, %v2556_v37  ;;  %v1613_v20 = vadd.f32 %v1526_v56, %v1191_v6  ;;  %v2002_v17 = vpop.f32.mrf.mxu3  ;;  %v4917_v56 = vld [vmem:[#allocation24_spill] sm:$0xff] }
 0x2bb   : > { %v1193_v45 = vpop.f32.mrf.mxu1 }
 0x2bc   : > { %v2684_v0 = vmax.f32 %v2556_v37, %v2620_v18  ;;  %v2089_v54 = vadd.f32 %v2002_v17, %v1613_v20  ;;  %v1194_v22 = vadd.f32 %v1193_v45, %v4913_v52 }
 0x2bd   : > { %v2405_v32 = vpop.f32.mrf.mxu0 }
 0x2be   : > { %v2748_v19 = vpack.c.bf16 %v2684_v0, %v2684_v0  ;;  %v2489_v50 = vadd.f32 %v2402_v4, %v2089_v54 }
 0x2c0   : > { %2813 = vst.msk [vmem:[%s4241_s10 + $0xc0] sm:$0xf] %vm2764_vm4, %v2748_v19  ;;  %v2557_v48 = vadd.f32 %v4468_v12, %v2489_v50 }
 0x2c1   : > { %v1529_v39 = vpop.f32.mrf.mxu2 }
 0x2c2   : > { %v2621_v62 = vmul.f32 0.1, %v2557_v48  ;;  %v1614_v27 = vadd.f32 %v1529_v39, %v1194_v22  ;;  %v2005_v59 = vpop.f32.mrf.mxu3  ;;  %v4918_v39 = vld [vmem:[#allocation26_spill] sm:$0xff] }
 0x2c3   : > { %v1195_v43 = vpop.f32.mrf.mxu1 }
 0x2c4   : > { %v2685_v14 = vmax.f32 %v2557_v48, %v2621_v62  ;;  %v2090_v16 = vadd.f32 %v2005_v59, %v1614_v27  ;;  %v1196_v23 = vadd.f32 %v1195_v43, %v4914_v55 }
 0x2c5   : > { %v2407_v7 = vpop.f32.mrf.mxu0 }
 0x2c6   : > { %v2749_v35 = vpack.c.bf16 %v2685_v14, %v2685_v14  ;;  %v2490_v38 = vadd.f32 %v2405_v32, %v2090_v16 }
 0x2c8   : > { %2814 = vst.msk [vmem:[%s4241_s10 + $0xc4] sm:$0xf] %vm2764_vm4, %v2749_v35  ;;  %v2558_v26 = vadd.f32 %v4468_v12, %v2490_v38 }
 0x2c9   : > { %v1531_v11 = vpop.f32.mrf.mxu2 }
 0x2ca   : > { %v2622_v53 = vmul.f32 0.1, %v2558_v26  ;;  %v1615_v21 = vadd.f32 %v1531_v11, %v1196_v23  ;;  %v2007_v49 = vpop.f32.mrf.mxu3  ;;  %v4919_v11 = vld [vmem:[#allocation28_spill] sm:$0xff] }
 0x2cb   : > { %v1198_v25 = vpop.f32.mrf.mxu1 }
 0x2cc   : > { %v2686_v13 = vmax.f32 %v2558_v26, %v2622_v53  ;;  %v2091_v61 = vadd.f32 %v2007_v49, %v1615_v21  ;;  %v1199_v31 = vadd.f32 %v1198_v25, %v4915_v15 }
 0x2cd   : > { %v2410_v1 = vpop.f32.mrf.mxu0 }
 0x2ce   : > { %v2750_v30 = vpack.c.bf16 %v2686_v13, %v2686_v13  ;;  %v2491_v33 = vadd.f32 %v2407_v7, %v2091_v61 }
 0x2d0   : > { %2815 = vst.msk [vmem:[%s4241_s10 + $0xc8] sm:$0xf] %vm2764_vm4, %v2750_v30  ;;  %v2559_v34 = vadd.f32 %v4468_v12, %v2491_v33 }
 0x2d1   : > { %v1534_v51 = vpop.f32.mrf.mxu2 }
 0x2d2   : > { %v2623_v63 = vmul.f32 0.1, %v2559_v34  ;;  %v1616_v46 = vadd.f32 %v1534_v51, %v1199_v31  ;;  %v2010_v40 = vpop.f32.mrf.mxu3  ;;  %v4920_v51 = vld [vmem:[#allocation30_spill] sm:$0xff] }
 0x2d3   : > { %v1200_v24 = vpop.f32.mrf.mxu1 }
 0x2d4   : > { %v2687_v60 = vmax.f32 %v2559_v34, %v2623_v63  ;;  %v2092_v9 = vadd.f32 %v2010_v40, %v1616_v46  ;;  %v1201_v47 = vadd.f32 %v1200_v24, %v4916_v2 }
 0x2d5   : > { %v2412_v8 = vpop.f32.mrf.mxu0 }
 0x2d6   : > { %v2751_v57 = vpack.c.bf16 %v2687_v60, %v2687_v60  ;;  %v2492_v28 = vadd.f32 %v2410_v1, %v2092_v9 }
 0x2d8   : > { %2816 = vst.msk [vmem:[%s4241_s10 + $0xcc] sm:$0xf] %vm2764_vm4, %v2751_v57  ;;  %v2560_v3 = vadd.f32 %v4468_v12, %v2492_v28 }
 0x2d9   : > { %v1536_v41 = vpop.f32.mrf.mxu2 }
 0x2da   : > { %v2624_v5 = vmul.f32 0.1, %v2560_v3  ;;  %v1617_v44 = vadd.f32 %v1536_v41, %v1201_v47  ;;  %v2012_v10 = vpop.f32.mrf.mxu3  ;;  %v4921_v41 = vld [vmem:[#allocation32_spill] sm:$0xff] }
 0x2db   : > { %v1203_v29 = vpop.f32.mrf.mxu1 }
 0x2dc   : > { %v2688_v4 = vmax.f32 %v2560_v3, %v2624_v5  ;;  %v2093_v42 = vadd.f32 %v2012_v10, %v1617_v44  ;;  %v1204_v18 = vadd.f32 %v1203_v29, %v4917_v56 }
 0x2dd   : > { %v2415_v58 = vpop.f32.mrf.mxu0 }
 0x2de   : > { %v2752_v37 = vpack.c.bf16 %v2688_v4, %v2688_v4  ;;  %v2493_v36 = vadd.f32 %v2412_v8, %v2093_v42 }
 0x2e0   : > { %2817 = vst.msk [vmem:[%s4241_s10 + $0xd0] sm:$0xf] %vm2764_vm4, %v2752_v37  ;;  %v2561_v6 = vadd.f32 %v4468_v12, %v2493_v36 }
 0x2e1   : > { %v1539_v20 = vpop.f32.mrf.mxu2 }
 0x2e2   : > { %v2625_v17 = vmul.f32 0.1, %v2561_v6  ;;  %v1618_v45 = vadd.f32 %v1539_v20, %v1204_v18  ;;  %v2015_v0 = vpop.f32.mrf.mxu3  ;;  %v4666_v18 = vld [vmem:[%s4708_s2] ss:$0 sm:$0xff]  ;;  %v4922_v20 = vld [vmem:[#allocation35_spill] sm:$0xff] }
 0x2e3   : > { %v1205_v54 = vpop.f32.mrf.mxu1 }
 0x2e4   : > { %v2689_v32 = vmax.f32 %v2561_v6, %v2625_v17  ;;  %v2094_v19 = vadd.f32 %v2015_v0, %v1618_v45  ;;  %v1206_v62 = vadd.f32 %v1205_v54, %v4918_v39 }
 0x2e5   : > { %v2417_v50 = vpop.f32.mrf.mxu0 }
 0x2e6   : > { %v2753_v48 = vpack.c.bf16 %v2689_v32, %v2689_v32  ;;  %v2494_v52 = vadd.f32 %v2415_v58, %v2094_v19 }
 0x2e8   : > { %2818 = vst.msk [vmem:[%s4241_s10 + $0xd4] sm:$0xf] %vm2764_vm4, %v2753_v48  ;;  %v2562_v22 = vadd.f32 %v4468_v12, %v2494_v52 }
 0x2e9   : > { %v1541_v27 = vpop.f32.mrf.mxu2 }
 0x2ea   : > { %v2626_v59 = vmul.f32 0.1, %v2562_v22  ;;  %v1619_v43 = vadd.f32 %v1541_v27, %v1206_v62  ;;  %v2017_v14 = vpop.f32.mrf.mxu3  ;;  %v4923_v27 = vld [vmem:[#allocation38_spill] sm:$0xff] }
 0x2eb   : > { %v1208_v16 = vpop.f32.mrf.mxu1 }
 0x2ec   : > { %v2690_v7 = vmax.f32 %v2562_v22, %v2626_v59  ;;  %v2095_v35 = vadd.f32 %v2017_v14, %v1619_v43  ;;  %v1209_v53 = vadd.f32 %v1208_v16, %v4919_v11 }
 0x2ed   : > { %v2420_v38 = vpop.f32.mrf.mxu0 }
 0x2ee   : > { %v2754_v26 = vpack.c.bf16 %v2690_v7, %v2690_v7  ;;  %v2495_v55 = vadd.f32 %v2417_v50, %v2095_v35 }
 0x2f0   : > { %2819 = vst.msk [vmem:[%s4241_s10 + $0xd8] sm:$0xf] %vm2764_vm4, %v2754_v26  ;;  %v2563_v23 = vadd.f32 %v4468_v12, %v2495_v55 }
 0x2f1   : > { %v1544_v21 = vpop.f32.mrf.mxu2 }
 0x2f2   : > { %v2627_v49 = vmul.f32 0.1, %v2563_v23  ;;  %v1620_v25 = vadd.f32 %v1544_v21, %v1209_v53  ;;  %v2020_v13 = vpop.f32.mrf.mxu3  ;;  %v4924_v53 = vld [vmem:[#allocation41_spill] sm:$0xff] }
 0x2f3   : > { %v1210_v61 = vpop.f32.mrf.mxu1 }
 0x2f4   : > { %v2691_v1 = vmax.f32 %v2563_v23, %v2627_v49  ;;  %v2096_v30 = vadd.f32 %v2020_v13, %v1620_v25  ;;  %v1211_v63 = vadd.f32 %v1210_v61, %v4920_v51 }
 0x2f5   : > { %v2422_v33 = vpop.f32.mrf.mxu0 }
 0x2f6   : > { %v2755_v34 = vpack.c.bf16 %v2691_v1, %v2691_v1  ;;  %v2496_v15 = vadd.f32 %v2420_v38, %v2096_v30 }
 0x2f8   : > { %2820 = vst.msk [vmem:[%s4241_s10 + $0xdc] sm:$0xf] %vm2764_vm4, %v2755_v34  ;;  %v2564_v31 = vadd.f32 %v4468_v12, %v2496_v15 }
 0x2f9   : > { %v1546_v46 = vpop.f32.mrf.mxu2 }
 0x2fa   : > { %v2628_v40 = vmul.f32 0.1, %v2564_v31  ;;  %v1621_v24 = vadd.f32 %v1546_v46, %v1211_v63  ;;  %v2022_v60 = vpop.f32.mrf.mxu3  ;;  %v4925_v63 = vld [vmem:[#allocation44_spill] sm:$0xff] }
 0x2fb   : > { %v1213_v9 = vpop.f32.mrf.mxu1 }
 0x2fc   : > { %v2692_v8 = vmax.f32 %v2564_v31, %v2628_v40  ;;  %v2097_v57 = vadd.f32 %v2022_v60, %v1621_v24  ;;  %v1214_v5 = vadd.f32 %v1213_v9, %v4921_v41 }
 0x2fd   : > { %v2425_v28 = vpop.f32.mrf.mxu0 }
 0x2fe   : > { %v2756_v3 = vpack.c.bf16 %v2692_v8, %v2692_v8  ;;  %v2497_v2 = vadd.f32 %v2422_v33, %v2097_v57 }
 0x300   : > { %2821 = vst.msk [vmem:[%s4241_s10 + $0xe0] sm:$0xf] %vm2764_vm4, %v2756_v3  ;;  %v2565_v47 = vadd.f32 %v4468_v12, %v2497_v2 }
 0x301   : > { %v1549_v44 = vpop.f32.mrf.mxu2 }
 0x302   : > { %v2629_v10 = vmul.f32 0.1, %v2565_v47  ;;  %v1622_v29 = vadd.f32 %v1549_v44, %v1214_v5  ;;  %v2025_v4 = vpop.f32.mrf.mxu3  ;;  %v4926_v5 = vld [vmem:[#allocation47_spill] sm:$0xff] }
 0x303   : > { %v1215_v42 = vpop.f32.mrf.mxu1 }
 0x304   : > { %v2693_v58 = vmax.f32 %v2565_v47, %v2629_v10  ;;  %v2098_v37 = vadd.f32 %v2025_v4, %v1622_v29  ;;  %v1216_v17 = vadd.f32 %v1215_v42, %v4922_v20 }
 0x305   : > { %v2427_v36 = vpop.f32.mrf.mxu0 }
 0x306   : > { %v2757_v6 = vpack.c.bf16 %v2693_v58, %v2693_v58  ;;  %v2498_v56 = vadd.f32 %v2425_v28, %v2098_v37 }
 0x308   : > { %2822 = vst.msk [vmem:[%s4241_s10 + $0xe4] sm:$0xf] %vm2764_vm4, %v2757_v6  ;;  %v2566_v12 = vadd.f32 %v4666_v18, %v2498_v56 }
 0x309   : > { %v1551_v45 = vpop.f32.mrf.mxu2 }
 0x30a   : > { %v2630_v0 = vmul.f32 0.1, %v2566_v12  ;;  %v1623_v54 = vadd.f32 %v1551_v45, %v1216_v17  ;;  %v2027_v32 = vpop.f32.mrf.mxu3 }
 0x30b   : > { %v1218_v19 = vpop.f32.mrf.mxu1 }
 0x30c   : > { %v2694_v50 = vmax.f32 %v2566_v12, %v2630_v0  ;;  %v2099_v48 = vadd.f32 %v2027_v32, %v1623_v54  ;;  %v1219_v59 = vadd.f32 %v1218_v19, %v4923_v27 }
 0x30d   : > { %v2430_v39 = vpop.f32.mrf.mxu0 }
 0x30e   : > { %v2758_v52 = vpack.c.bf16 %v2694_v50, %v2694_v50  ;;  %v2499_v22 = vadd.f32 %v2427_v36, %v2099_v48 }
 0x310   : > { %2823 = vst.msk [vmem:[%s4241_s10 + $0xe8] sm:$0xf] %vm2764_vm4, %v2758_v52  ;;  %v2567_v62 = vadd.f32 %v4666_v18, %v2499_v22 }
 0x311   : > { %v1554_v43 = vpop.f32.mrf.mxu2 }
 0x312   : > { %v2631_v14 = vmul.f32 0.1, %v2567_v62  ;;  %v1624_v16 = vadd.f32 %v1554_v43, %v1219_v59  ;;  %v2030_v7 = vpop.f32.mrf.mxu3 }
 0x313   : > { %v1220_v35 = vpop.f32.mrf.mxu1 }
 0x314   : > { %v2695_v38 = vmax.f32 %v2567_v62, %v2631_v14  ;;  %v2100_v26 = vadd.f32 %v2030_v7, %v1624_v16  ;;  %v1221_v21 = vadd.f32 %v1220_v35, %v4924_v53 }
 0x315   : > { %v2432_v49 = vpop.f32.mrf.mxu0 }
 0x316   : > { %v2759_v55 = vpack.c.bf16 %v2695_v38, %v2695_v38  ;;  %v2500_v23 = vadd.f32 %v2430_v39, %v2100_v26 }
 0x318   : > { %2824 = vst.msk [vmem:[%s4241_s10 + $0xec] sm:$0xf] %vm2764_vm4, %v2759_v55  ;;  %v2568_v11 = vadd.f32 %v4666_v18, %v2500_v23 }
 0x319   : > { %v1556_v25 = vpop.f32.mrf.mxu2 }
 0x31a   : > { %v2632_v13 = vmul.f32 0.1, %v2568_v11  ;;  %v1625_v61 = vadd.f32 %v1556_v25, %v1221_v21  ;;  %v2032_v1 = vpop.f32.mrf.mxu3 }
 0x31b   : > { %v1223_v30 = vpop.f32.mrf.mxu1 }
 0x31c   : > { %v2696_v33 = vmax.f32 %v2568_v11, %v2632_v13  ;;  %v2101_v34 = vadd.f32 %v2032_v1, %v1625_v61  ;;  %v1224_v46 = vadd.f32 %v1223_v30, %v4925_v63 }
 0x31d   : > { %v2435_v8 = vpop.f32.mrf.mxu0 }
 0x31e   : > { %v2760_v15 = vpack.c.bf16 %v2696_v33, %v2696_v33  ;;  %v2501_v31 = vadd.f32 %v2432_v49, %v2101_v34 }
 0x320   : > { %2825 = vst.msk [vmem:[%s4241_s10 + $0xf0] sm:$0xf] %vm2764_vm4, %v2760_v15  ;;  %v2569_v51 = vadd.f32 %v4666_v18, %v2501_v31 }
 0x321   : > { %v1559_v40 = vpop.f32.mrf.mxu2 }
 0x322   : > { %v2633_v24 = vmul.f32 0.1, %v2569_v51  ;;  %v1626_v60 = vadd.f32 %v1559_v40, %v1224_v46  ;;  %v2035_v9 = vpop.f32.mrf.mxu3 }
 0x323   : > { %v1225_v3 = vpop.f32.mrf.mxu1 }
 0x324   : > { %v2697_v57 = vmax.f32 %v2569_v51, %v2633_v24  ;;  %v2102_v28 = vadd.f32 %v2035_v9, %v1626_v60  ;;  %v1226_v44 = vadd.f32 %v1225_v3, %v4926_v5 }
 0x325   : > { %v2437_v36 = vpop.f32.mrf.mxu0 }
 0x326   : > { %v2761_v2 = vpack.c.bf16 %v2697_v57, %v2697_v57  ;;  %v2502_v47 = vadd.f32 %v2435_v8, %v2102_v28 }
 0x328   : > { %2826 = vst.msk [vmem:[%s4241_s10 + $0xf4] sm:$0xf] %vm2764_vm4, %v2761_v2  ;;  %v2570_v41 = vadd.f32 %v4666_v18, %v2502_v47 }
 0x329   : > { %v1561_v10 = vpop.f32.mrf.mxu2 }
 0x32a   : > { %v2634_v29 = vmul.f32 0.1, %v2570_v41  ;;  %v1627_v4 = vadd.f32 %v1561_v10, %v1226_v44  ;;  %v2037_v42 = vpop.f32.mrf.mxu3 }
 0x32c   : > { %v2698_v58 = vmax.f32 %v2570_v41, %v2634_v29  ;;  %v2103_v37 = vadd.f32 %v2037_v42, %v1627_v4 }
 0x32e   : > { %v2762_v6 = vpack.c.bf16 %v2698_v58, %v2698_v58  ;;  %v2503_v56 = vadd.f32 %v2437_v36, %v2103_v37 }
 0x330   : > { %2827 = vst.msk [vmem:[%s4241_s10 + $0xf8] sm:$0xf] %vm2764_vm4, %v2762_v6  ;;  %v2571_v12 = vadd.f32 %v4666_v18, %v2503_v56 }
 0x332   : > { %v2635_v20 = vmul.f32 0.1, %v2571_v12 }
 0x334   : > { %v2699_v17 = vmax.f32 %v2571_v12, %v2635_v20 }
 0x336   : > { %v2763_v45 = vpack.c.bf16 %v2699_v17, %v2699_v17 }
 0x338   : > { %2828 = vst.msk [vmem:[%s4241_s10 + $0xfc] sm:$0xf] %vm2764_vm4, %v2763_v45 }
 0x339 PF: > { %s13_s16 = sadd.s32 1, %s3482_s16   ;;  %s4927_s12 = smov %s3474_s14 }
 0x33a   : > { %p10_p8 = scmp.ge.s32.totalorder %s13_s16, 6   ;;  %s4928_s13 = smov %s3478_s15 }
 0x33b   : > { %s4929_s14 = smov %s4932_s17  ;;  %s4930_s15 = smov %s4936_s18 }
 0x33c   :  { %12 = sbr.rel (!%p10_p8) target bundleno = 3 (0x3), region = 66 }

</bundles_post_ra>
